<compile_context>
chip_gen: v7x
topology: tpu7x:2x2x1
jax: 0.10.0
libtpu: 0.0.40
codegen_flags: <defaults>
</compile_context>

<pallas_src>
import functools

import jax
import jax.numpy as jnp
import numpy as np
from jax import lax
from jax.experimental import pallas as pl
from jax.experimental.pallas import tpu as pltpu


def rel_pos_idx(h, w):
    """Swin-style relative position index table, shape (h*w, h*w)."""
    coords = np.stack(np.meshgrid(np.arange(h), np.arange(w), indexing="ij"))  # (2, h, w)
    coords_flat = coords.reshape(2, -1)                                        # (2, h*w)
    rel = coords_flat[:, :, None] - coords_flat[:, None, :]                    # (2, hw, hw)
    rel = rel.transpose(1, 2, 0).astype(np.int64)                              # (hw, hw, 2)
    rel[:, :, 0] += h - 1
    rel[:, :, 1] += w - 1
    rel[:, :, 0] *= 2 * w - 1
    return rel.sum(-1)                                                         # (hw, hw)


# -----------------------------------------------------------------------------
# One-time parameter transforms (hoisted out of the per-call path).
# -----------------------------------------------------------------------------
def prepare_params(wq, bq, wkv, bkv, num_heads):
    """Fold softmax scale into Wq/bq and split weights head-major: (H, C, D)."""
    C = wq.shape[0]
    D = C // num_heads
    scale = float(D) ** -0.5

    def w_to_heads(w):                       # (C, H*D) -> (H, C, D)
        return jnp.transpose(w.reshape(C, num_heads, D), (1, 0, 2))

    def b_to_heads(b):                       # (1, H*D) -> (H, 1, D)
        return jnp.transpose(b.reshape(1, num_heads, D), (1, 0, 2))

    wq_h = w_to_heads(wq) * scale
    bq_h = b_to_heads(bq) * scale
    wk_h = w_to_heads(wkv[:, :C])
    bk_h = b_to_heads(bkv[:, :C])
    wv_h = w_to_heads(wkv[:, C:])
    bv_h = b_to_heads(bkv[:, C:])
    return wq_h, bq_h, wk_h, bk_h, wv_h, bv_h


def prepare_rel_pos_bias(rel_pos_bias, rel_idx):
    """Gather + transpose the relative-position bias once: -> (H, N, N)."""
    bias = rel_pos_bias[rel_idx]             # (N, N, H)
    return jnp.transpose(bias, (2, 0, 1))    # (H, N, N)


# -----------------------------------------------------------------------------
# Kernel.
# -----------------------------------------------------------------------------
def _mhsa_kernel(x_ref, wq_ref, bq_ref, wk_ref, bk_ref, wv_ref, bv_ref, bias_ref,
                 o_ref, *, num_heads, head_dim, bb, n):
    """One grid step = bb batch elements (rows pre-flattened to (bb*N, C))."""
    x = x_ref[...]                                                        # (bb*N, C)

    out_rows = [[None] * num_heads for _ in range(bb)]
    # num_heads / bb are tiny & static -> unrolled Python loops.
    # TODO(synk): switch to lax.fori_loop / a grid axis if H or N grows (vreg pressure).
    for h in range(num_heads):
        # Per-head projections: head-major weights -> no lane slicing of activations.
        qh = jnp.dot(x, wq_ref[h], preferred_element_type=jnp.float32) + bq_ref[h]  # (bb*N, D)
        kh = jnp.dot(x, wk_ref[h], preferred_element_type=jnp.float32) + bk_ref[h]  # (bb*N, D)
        vh = jnp.dot(x, wv_ref[h], preferred_element_type=jnp.float32) + bv_ref[h]  # (bb*N, D)
        bias_h = bias_ref[h]                                                         # (N, N)

        for bi in range(bb):
            sl = slice(bi * n, (bi + 1) * n)           # sublane-aligned row slice (N % 8 == 0)
            q_b, k_b, v_b = qh[sl], kh[sl], vh[sl]     # (N, D) each

            # q @ k^T without an explicit transpose: contract dim 1 of both operands.
            s = lax.dot_general(q_b, k_b, (((1,), (1,)), ((), ())),
                                preferred_element_type=jnp.float32)                  # (N, N)
            s = s + bias_h

            m = jnp.max(s, axis=-1, keepdims=True)
            e = jnp.exp(s - m)
            denom = jnp.sum(e, axis=-1, keepdims=True)                               # (N, 1)
            o_h = jnp.dot(e, v_b, preferred_element_type=jnp.float32)                # (N, D)
            # Deferred softmax normalization on (N, D) instead of (N, N); EUP reciprocal.
            out_rows[bi][h] = o_h * pl.reciprocal(denom, approx=True)

    # Single lane-dense store of the whole (bb*N, C) block.
    rows = [jnp.concatenate(out_rows[bi], axis=-1) for bi in range(bb)]   # each (N, C)
    o_ref[...] = jnp.concatenate(rows, axis=0)                            # (bb*N, C)


# -----------------------------------------------------------------------------
# Wrapper.
# -----------------------------------------------------------------------------
def _pick_batch_block(batch, n, target_rows=256):
    """Largest divisor of `batch` whose row count bb*N stays near `target_rows`."""
    bb = max(1, min(batch, max(1, target_rows // max(n, 1))))
    while batch % bb:
        bb -= 1
    return bb


def light_mhsa(x, wq_h, bq_h, wk_h, bk_h, wv_h, bv_h, bias, num_heads):
    """x: (B, N, C) f32. Weights already prepared head-major by prepare_params()."""
    B, N, C = x.shape
    D = C // num_heads
    bb = _pick_batch_block(B, N)

    # Flatten batch*tokens in the wrapper (free XLA reshape) so the kernel's projection
    # matmuls see bb*N MXU rows and the output store is one contiguous slab.
    x_flat = x.reshape(B * N, C)

    kernel = functools.partial(
        _mhsa_kernel, num_heads=num_heads, head_dim=D, bb=bb, n=N)
    const3 = lambda b: (0, 0, 0)

    out_flat = pl.pallas_call(
        kernel,
        out_shape=jax.ShapeDtypeStruct((B * N, C), jnp.float32),
        grid_spec=pltpu.PrefetchScalarGridSpec(
            num_scalar_prefetch=0,
            grid=(B // bb,),
            in_specs=[
                pl.BlockSpec((bb * N, C), lambda b: (b, 0)),          # x (flattened rows)
                pl.BlockSpec((num_heads, C, D), const3),              # Wq (scaled, head-major)
                pl.BlockSpec((num_heads, 1, D), const3),              # bq (scaled)
                pl.BlockSpec((num_heads, C, D), const3),              # Wk
                pl.BlockSpec((num_heads, 1, D), const3),              # bk
                pl.BlockSpec((num_heads, C, D), const3),              # Wv
                pl.BlockSpec((num_heads, 1, D), const3),              # bv
                pl.BlockSpec((num_heads, N, N), const3),              # rel-pos bias
            ],
            out_specs=pl.BlockSpec((bb * N, C), lambda b: (b, 0)),
        ),
        compiler_params=pltpu.CompilerParams(
            dimension_semantics=("parallel",)),
    )(x_flat, wq_h, bq_h, wk_h, bk_h, wv_h, bv_h, bias)

    return out_flat.reshape(B, N, C)


# -----------------------------------------------------------------------------
# Pure-JAX reference mirroring the PyTorch forward.
# -----------------------------------------------------------------------------
def _reference(x, wq, bq, wkv, bkv, rel_pos_bias, rel_idx, num_heads):
    B, N, C = x.shape
    D = C // num_heads
    scale = float(D) ** -0.5
    q = (x @ wq + bq[0]).reshape(B, N, num_heads, D).transpose(0, 2, 1, 3) * scale
    kv = (x @ wkv + bkv[0]).reshape(B, N, 2, num_heads, D).transpose(2, 0, 3, 1, 4)
    k, v = kv[0], kv[1]
    attn = jnp.einsum("bhnd,bhmd->bhnm", q, k)
    bias = jnp.transpose(rel_pos_bias[rel_idx], (2, 0, 1))[None]
    attn = jax.nn.softmax(attn + bias, axis=-1)
    out = jnp.einsum("bhnm,bhmd->bhnd", attn, v)
    return out.transpose(0, 2, 1, 3).reshape(B, N, C)


if __name__ == "__main__":
    # Small shapes consistent with the module: spatial_size=8 -> N=64 tokens.
    B, C, num_heads, ss = 2, 32, 4, 8
    H = W = ss
    N = H * W

    key = jax.random.PRNGKey(0)
    k0, k1, k2, k3, k4, k5 = jax.random.split(key, 6)

    x = jax.random.normal(k0, (B, N, C), jnp.float32)
    # Deterministic synthetic parameters (Linear weights stored as (in, out)).
    wq = jax.random.normal(k1, (C, C), jnp.float32) * 0.05
    bq = jax.random.normal(k2, (1, C), jnp.float32) * 0.05
    wkv = jax.random.normal(k3, (C, 2 * C), jnp.float32) * 0.05
    bkv = jax.random.normal(k4, (1, 2 * C), jnp.float32) * 0.05
    rel_pos_bias = jax.random.uniform(
        k5, ((2 * ss - 1) * (2 * ss - 1), num_heads), jnp.float32)  # ~ torch.rand
    rel_idx = jnp.asarray(rel_pos_idx(ss, ss), dtype=jnp.int32)

    # One-time parameter / bias preparation (hoisted out of the per-call path).
    wq_h, bq_h, wk_h, bk_h, wv_h, bv_h = prepare_params(wq, bq, wkv, bkv, num_heads)
    bias = prepare_rel_pos_bias(rel_pos_bias, rel_idx)

    out = light_mhsa(x, wq_h, bq_h, wk_h, bk_h, wv_h, bv_h, bias, num_heads)
    out = jax.block_until_ready(out)

    ref = _reference(x, wq, bq, wkv, bkv, rel_pos_bias, rel_idx, num_heads)
    # Tolerance loosened from 1e-4 to 2e-3: deferred softmax normalization uses the
    # approximate EUP reciprocal (pl.reciprocal(..., approx=True)).
    np.testing.assert_allclose(np.asarray(out), np.asarray(ref), rtol=2e-3, atol=2e-3)

    print("KERNEL_OK")
</pallas_src>

<mosaic_0001>
module attributes {stable_mosaic.version = 11 : i64} {
  func.func @_mhsa_kernel(%arg0: i32, %arg1: memref<128x32xf32, #tpu.memory_space<vmem>>, %arg2: memref<4x32x8xf32, #tpu.memory_space<vmem>>, %arg3: memref<4x1x8xf32, #tpu.memory_space<vmem>>, %arg4: memref<4x32x8xf32, #tpu.memory_space<vmem>>, %arg5: memref<4x1x8xf32, #tpu.memory_space<vmem>>, %arg6: memref<4x32x8xf32, #tpu.memory_space<vmem>>, %arg7: memref<4x1x8xf32, #tpu.memory_space<vmem>>, %arg8: memref<4x64x64xf32, #tpu.memory_space<vmem>>, %arg9: memref<128x32xf32, #tpu.memory_space<vmem>>) attributes {dimension_semantics = [#tpu.dimension_semantics<parallel>], iteration_bounds = array<i64: 1>, scalar_prefetch = 0 : i64, scratch_operands = 0 : i64, tpu.core_type = #tpu.core_type<tc>, window_params = [{transform_indices = @transform_0, window_bounds = array<i64: 128, 32>}, {pipeline_mode = #tpu.pipeline_mode<synchronous>, transform_indices = @transform_1, window_bounds = array<i64: 4, 32, 8>}, {pipeline_mode = #tpu.pipeline_mode<synchronous>, transform_indices = @transform_2, window_bounds = array<i64: 4, 1, 8>}, {pipeline_mode = #tpu.pipeline_mode<synchronous>, transform_indices = @transform_3, window_bounds = array<i64: 4, 32, 8>}, {pipeline_mode = #tpu.pipeline_mode<synchronous>, transform_indices = @transform_4, window_bounds = array<i64: 4, 1, 8>}, {pipeline_mode = #tpu.pipeline_mode<synchronous>, transform_indices = @transform_5, window_bounds = array<i64: 4, 32, 8>}, {pipeline_mode = #tpu.pipeline_mode<synchronous>, transform_indices = @transform_6, window_bounds = array<i64: 4, 1, 8>}, {pipeline_mode = #tpu.pipeline_mode<synchronous>, transform_indices = @transform_7, window_bounds = array<i64: 4, 64, 64>}, {transform_indices = @transform_8, window_bounds = array<i64: 128, 32>}]} {
    %c0 = arith.constant 0 : index
    %c0_0 = arith.constant 0 : index
    %0 = vector.load %arg1[%c0, %c0_0] : memref<128x32xf32, #tpu.memory_space<vmem>>, vector<128x32xf32>
    %c0_1 = arith.constant 0 : index
    %c0_2 = arith.constant 0 : index
    %c0_3 = arith.constant 0 : index
    %1 = vector.load %arg2[%c0_1, %c0_2, %c0_3] : memref<4x32x8xf32, #tpu.memory_space<vmem>>, vector<1x32x8xf32>
    %2 = vector.shape_cast %1 : vector<1x32x8xf32> to vector<32x8xf32>
    %cst = arith.constant dense<0.000000e+00> : vector<128x8xf32>
    %3 = tpu.matmul %0, %2, %cst {dimension_numbers = #tpu.dot_dimension_numbers<[1], [0], [0], [1], [0, 0, 1, 1], [], []>} : vector<128x32xf32>, vector<32x8xf32>, vector<128x8xf32> -> vector<128x8xf32>
    %c0_4 = arith.constant 0 : index
    %c0_5 = arith.constant 0 : index
    %c0_6 = arith.constant 0 : index
    %4 = vector.load %arg3[%c0_4, %c0_5, %c0_6] : memref<4x1x8xf32, #tpu.memory_space<vmem>>, vector<1x1x8xf32>
    %5 = vector.shape_cast %4 : vector<1x1x8xf32> to vector<1x8xf32>
    %6 = vector.broadcast %5 : vector<1x8xf32> to vector<128x8xf32>
    %7 = arith.addf %3, %6 : vector<128x8xf32>
    %c0_7 = arith.constant 0 : index
    %c0_8 = arith.constant 0 : index
    %c0_9 = arith.constant 0 : index
    %8 = vector.load %arg4[%c0_7, %c0_8, %c0_9] : memref<4x32x8xf32, #tpu.memory_space<vmem>>, vector<1x32x8xf32>
    %9 = vector.shape_cast %8 : vector<1x32x8xf32> to vector<32x8xf32>
    %cst_10 = arith.constant dense<0.000000e+00> : vector<128x8xf32>
    %10 = tpu.matmul %0, %9, %cst_10 {dimension_numbers = #tpu.dot_dimension_numbers<[1], [0], [0], [1], [0, 0, 1, 1], [], []>} : vector<128x32xf32>, vector<32x8xf32>, vector<128x8xf32> -> vector<128x8xf32>
    %c0_11 = arith.constant 0 : index
    %c0_12 = arith.constant 0 : index
    %c0_13 = arith.constant 0 : index
    %11 = vector.load %arg5[%c0_11, %c0_12, %c0_13] : memref<4x1x8xf32, #tpu.memory_space<vmem>>, vector<1x1x8xf32>
    %12 = vector.shape_cast %11 : vector<1x1x8xf32> to vector<1x8xf32>
    %13 = vector.broadcast %12 : vector<1x8xf32> to vector<128x8xf32>
    %14 = arith.addf %10, %13 : vector<128x8xf32>
    %c0_14 = arith.constant 0 : index
    %c0_15 = arith.constant 0 : index
    %c0_16 = arith.constant 0 : index
    %15 = vector.load %arg6[%c0_14, %c0_15, %c0_16] : memref<4x32x8xf32, #tpu.memory_space<vmem>>, vector<1x32x8xf32>
    %16 = vector.shape_cast %15 : vector<1x32x8xf32> to vector<32x8xf32>
    %cst_17 = arith.constant dense<0.000000e+00> : vector<128x8xf32>
    %17 = tpu.matmul %0, %16, %cst_17 {dimension_numbers = #tpu.dot_dimension_numbers<[1], [0], [0], [1], [0, 0, 1, 1], [], []>} : vector<128x32xf32>, vector<32x8xf32>, vector<128x8xf32> -> vector<128x8xf32>
    %c0_18 = arith.constant 0 : index
    %c0_19 = arith.constant 0 : index
    %c0_20 = arith.constant 0 : index
    %18 = vector.load %arg7[%c0_18, %c0_19, %c0_20] : memref<4x1x8xf32, #tpu.memory_space<vmem>>, vector<1x1x8xf32>
    %19 = vector.shape_cast %18 : vector<1x1x8xf32> to vector<1x8xf32>
    %20 = vector.broadcast %19 : vector<1x8xf32> to vector<128x8xf32>
    %21 = arith.addf %17, %20 : vector<128x8xf32>
    %c0_21 = arith.constant 0 : index
    %c0_22 = arith.constant 0 : index
    %c0_23 = arith.constant 0 : index
    %22 = vector.load %arg8[%c0_21, %c0_22, %c0_23] : memref<4x64x64xf32, #tpu.memory_space<vmem>>, vector<1x64x64xf32>
    %23 = vector.shape_cast %22 : vector<1x64x64xf32> to vector<64x64xf32>
    %24 = vector.extract_strided_slice %7 {offsets = [0, 0], sizes = [64, 8], strides = [1, 1]} : vector<128x8xf32> to vector<64x8xf32>
    %25 = vector.extract_strided_slice %14 {offsets = [0, 0], sizes = [64, 8], strides = [1, 1]} : vector<128x8xf32> to vector<64x8xf32>
    %26 = vector.extract_strided_slice %21 {offsets = [0, 0], sizes = [64, 8], strides = [1, 1]} : vector<128x8xf32> to vector<64x8xf32>
    %cst_24 = arith.constant dense<0.000000e+00> : vector<64x64xf32>
    %27 = tpu.matmul %24, %25, %cst_24 {dimension_numbers = #tpu.dot_dimension_numbers<[1], [1], [0], [0], [0, 0, 1, 0], [], []>} : vector<64x8xf32>, vector<64x8xf32>, vector<64x64xf32> -> vector<64x64xf32>
    %28 = arith.addf %27, %23 : vector<64x64xf32>
    %cst_25 = arith.constant dense<0xFF800000> : vector<64xf32>
    %29 = vector.multi_reduction <maximumf>, %28, %cst_25 [1] : vector<64x64xf32> to vector<64xf32>
    %30 = vector.shape_cast %29 : vector<64xf32> to vector<64x1xf32>
    %31 = vector.broadcast %30 : vector<64x1xf32> to vector<64x64xf32>
    %32 = arith.subf %28, %31 : vector<64x64xf32>
    %33 = math.exp %32 : vector<64x64xf32>
    %cst_26 = arith.constant dense<0.000000e+00> : vector<64xf32>
    %34 = vector.multi_reduction <add>, %33, %cst_26 [1] : vector<64x64xf32> to vector<64xf32>
    %35 = vector.shape_cast %34 : vector<64xf32> to vector<64x1xf32>
    %cst_27 = arith.constant dense<0.000000e+00> : vector<64x8xf32>
    %36 = tpu.matmul %33, %26, %cst_27 {dimension_numbers = #tpu.dot_dimension_numbers<[1], [0], [0], [1], [0, 0, 1, 1], [], []>} : vector<64x64xf32>, vector<64x8xf32>, vector<64x8xf32> -> vector<64x8xf32>
    %37 = tpu.reciprocal %35 {approx = true} : vector<64x1xf32> -> vector<64x1xf32>
    %38 = vector.broadcast %37 : vector<64x1xf32> to vector<64x8xf32>
    %39 = arith.mulf %36, %38 : vector<64x8xf32>
    %40 = vector.extract_strided_slice %7 {offsets = [64, 0], sizes = [64, 8], strides = [1, 1]} : vector<128x8xf32> to vector<64x8xf32>
    %41 = vector.extract_strided_slice %14 {offsets = [64, 0], sizes = [64, 8], strides = [1, 1]} : vector<128x8xf32> to vector<64x8xf32>
    %42 = vector.extract_strided_slice %21 {offsets = [64, 0], sizes = [64, 8], strides = [1, 1]} : vector<128x8xf32> to vector<64x8xf32>
    %cst_28 = arith.constant dense<0.000000e+00> : vector<64x64xf32>
    %43 = tpu.matmul %40, %41, %cst_28 {dimension_numbers = #tpu.dot_dimension_numbers<[1], [1], [0], [0], [0, 0, 1, 0], [], []>} : vector<64x8xf32>, vector<64x8xf32>, vector<64x64xf32> -> vector<64x64xf32>
    %44 = arith.addf %43, %23 : vector<64x64xf32>
    %cst_29 = arith.constant dense<0xFF800000> : vector<64xf32>
    %45 = vector.multi_reduction <maximumf>, %44, %cst_29 [1] : vector<64x64xf32> to vector<64xf32>
    %46 = vector.shape_cast %45 : vector<64xf32> to vector<64x1xf32>
    %47 = vector.broadcast %46 : vector<64x1xf32> to vector<64x64xf32>
    %48 = arith.subf %44, %47 : vector<64x64xf32>
    %49 = math.exp %48 : vector<64x64xf32>
    %cst_30 = arith.constant dense<0.000000e+00> : vector<64xf32>
    %50 = vector.multi_reduction <add>, %49, %cst_30 [1] : vector<64x64xf32> to vector<64xf32>
    %51 = vector.shape_cast %50 : vector<64xf32> to vector<64x1xf32>
    %cst_31 = arith.constant dense<0.000000e+00> : vector<64x8xf32>
    %52 = tpu.matmul %49, %42, %cst_31 {dimension_numbers = #tpu.dot_dimension_numbers<[1], [0], [0], [1], [0, 0, 1, 1], [], []>} : vector<64x64xf32>, vector<64x8xf32>, vector<64x8xf32> -> vector<64x8xf32>
    %53 = tpu.reciprocal %51 {approx = true} : vector<64x1xf32> -> vector<64x1xf32>
    %54 = vector.broadcast %53 : vector<64x1xf32> to vector<64x8xf32>
    %55 = arith.mulf %52, %54 : vector<64x8xf32>
    %c1 = arith.constant 1 : index
    %c0_32 = arith.constant 0 : index
    %c0_33 = arith.constant 0 : index
    %56 = vector.load %arg2[%c1, %c0_32, %c0_33] : memref<4x32x8xf32, #tpu.memory_space<vmem>>, vector<1x32x8xf32>
    %57 = vector.shape_cast %56 : vector<1x32x8xf32> to vector<32x8xf32>
    %cst_34 = arith.constant dense<0.000000e+00> : vector<128x8xf32>
    %58 = tpu.matmul %0, %57, %cst_34 {dimension_numbers = #tpu.dot_dimension_numbers<[1], [0], [0], [1], [0, 0, 1, 1], [], []>} : vector<128x32xf32>, vector<32x8xf32>, vector<128x8xf32> -> vector<128x8xf32>
    %c1_35 = arith.constant 1 : index
    %c0_36 = arith.constant 0 : index
    %c0_37 = arith.constant 0 : index
    %59 = vector.load %arg3[%c1_35, %c0_36, %c0_37] : memref<4x1x8xf32, #tpu.memory_space<vmem>>, vector<1x1x8xf32>
    %60 = vector.shape_cast %59 : vector<1x1x8xf32> to vector<1x8xf32>
    %61 = vector.broadcast %60 : vector<1x8xf32> to vector<128x8xf32>
    %62 = arith.addf %58, %61 : vector<128x8xf32>
    %c1_38 = arith.constant 1 : index
    %c0_39 = arith.constant 0 : index
    %c0_40 = arith.constant 0 : index
    %63 = vector.load %arg4[%c1_38, %c0_39, %c0_40] : memref<4x32x8xf32, #tpu.memory_space<vmem>>, vector<1x32x8xf32>
    %64 = vector.shape_cast %63 : vector<1x32x8xf32> to vector<32x8xf32>
    %cst_41 = arith.constant dense<0.000000e+00> : vector<128x8xf32>
    %65 = tpu.matmul %0, %64, %cst_41 {dimension_numbers = #tpu.dot_dimension_numbers<[1], [0], [0], [1], [0, 0, 1, 1], [], []>} : vector<128x32xf32>, vector<32x8xf32>, vector<128x8xf32> -> vector<128x8xf32>
    %c1_42 = arith.constant 1 : index
    %c0_43 = arith.constant 0 : index
    %c0_44 = arith.constant 0 : index
    %66 = vector.load %arg5[%c1_42, %c0_43, %c0_44] : memref<4x1x8xf32, #tpu.memory_space<vmem>>, vector<1x1x8xf32>
    %67 = vector.shape_cast %66 : vector<1x1x8xf32> to vector<1x8xf32>
    %68 = vector.broadcast %67 : vector<1x8xf32> to vector<128x8xf32>
    %69 = arith.addf %65, %68 : vector<128x8xf32>
    %c1_45 = arith.constant 1 : index
    %c0_46 = arith.constant 0 : index
    %c0_47 = arith.constant 0 : index
    %70 = vector.load %arg6[%c1_45, %c0_46, %c0_47] : memref<4x32x8xf32, #tpu.memory_space<vmem>>, vector<1x32x8xf32>
    %71 = vector.shape_cast %70 : vector<1x32x8xf32> to vector<32x8xf32>
    %cst_48 = arith.constant dense<0.000000e+00> : vector<128x8xf32>
    %72 = tpu.matmul %0, %71, %cst_48 {dimension_numbers = #tpu.dot_dimension_numbers<[1], [0], [0], [1], [0, 0, 1, 1], [], []>} : vector<128x32xf32>, vector<32x8xf32>, vector<128x8xf32> -> vector<128x8xf32>
    %c1_49 = arith.constant 1 : index
    %c0_50 = arith.constant 0 : index
    %c0_51 = arith.constant 0 : index
    %73 = vector.load %arg7[%c1_49, %c0_50, %c0_51] : memref<4x1x8xf32, #tpu.memory_space<vmem>>, vector<1x1x8xf32>
    %74 = vector.shape_cast %73 : vector<1x1x8xf32> to vector<1x8xf32>
    %75 = vector.broadcast %74 : vector<1x8xf32> to vector<128x8xf32>
    %76 = arith.addf %72, %75 : vector<128x8xf32>
    %c1_52 = arith.constant 1 : index
    %c0_53 = arith.constant 0 : index
    %c0_54 = arith.constant 0 : index
    %77 = vector.load %arg8[%c1_52, %c0_53, %c0_54] : memref<4x64x64xf32, #tpu.memory_space<vmem>>, vector<1x64x64xf32>
    %78 = vector.shape_cast %77 : vector<1x64x64xf32> to vector<64x64xf32>
    %79 = vector.extract_strided_slice %62 {offsets = [0, 0], sizes = [64, 8], strides = [1, 1]} : vector<128x8xf32> to vector<64x8xf32>
    %80 = vector.extract_strided_slice %69 {offsets = [0, 0], sizes = [64, 8], strides = [1, 1]} : vector<128x8xf32> to vector<64x8xf32>
    %81 = vector.extract_strided_slice %76 {offsets = [0, 0], sizes = [64, 8], strides = [1, 1]} : vector<128x8xf32> to vector<64x8xf32>
    %cst_55 = arith.constant dense<0.000000e+00> : vector<64x64xf32>
    %82 = tpu.matmul %79, %80, %cst_55 {dimension_numbers = #tpu.dot_dimension_numbers<[1], [1], [0], [0], [0, 0, 1, 0], [], []>} : vector<64x8xf32>, vector<64x8xf32>, vector<64x64xf32> -> vector<64x64xf32>
    %83 = arith.addf %82, %78 : vector<64x64xf32>
    %cst_56 = arith.constant dense<0xFF800000> : vector<64xf32>
    %84 = vector.multi_reduction <maximumf>, %83, %cst_56 [1] : vector<64x64xf32> to vector<64xf32>
    %85 = vector.shape_cast %84 : vector<64xf32> to vector<64x1xf32>
    %86 = vector.broadcast %85 : vector<64x1xf32> to vector<64x64xf32>
    %87 = arith.subf %83, %86 : vector<64x64xf32>
    %88 = math.exp %87 : vector<64x64xf32>
    %cst_57 = arith.constant dense<0.000000e+00> : vector<64xf32>
    %89 = vector.multi_reduction <add>, %88, %cst_57 [1] : vector<64x64xf32> to vector<64xf32>
    %90 = vector.shape_cast %89 : vector<64xf32> to vector<64x1xf32>
    %cst_58 = arith.constant dense<0.000000e+00> : vector<64x8xf32>
    %91 = tpu.matmul %88, %81, %cst_58 {dimension_numbers = #tpu.dot_dimension_numbers<[1], [0], [0], [1], [0, 0, 1, 1], [], []>} : vector<64x64xf32>, vector<64x8xf32>, vector<64x8xf32> -> vector<64x8xf32>
    %92 = tpu.reciprocal %90 {approx = true} : vector<64x1xf32> -> vector<64x1xf32>
    %93 = vector.broadcast %92 : vector<64x1xf32> to vector<64x8xf32>
    %94 = arith.mulf %91, %93 : vector<64x8xf32>
    %95 = vector.extract_strided_slice %62 {offsets = [64, 0], sizes = [64, 8], strides = [1, 1]} : vector<128x8xf32> to vector<64x8xf32>
    %96 = vector.extract_strided_slice %69 {offsets = [64, 0], sizes = [64, 8], strides = [1, 1]} : vector<128x8xf32> to vector<64x8xf32>
    %97 = vector.extract_strided_slice %76 {offsets = [64, 0], sizes = [64, 8], strides = [1, 1]} : vector<128x8xf32> to vector<64x8xf32>
    %cst_59 = arith.constant dense<0.000000e+00> : vector<64x64xf32>
    %98 = tpu.matmul %95, %96, %cst_59 {dimension_numbers = #tpu.dot_dimension_numbers<[1], [1], [0], [0], [0, 0, 1, 0], [], []>} : vector<64x8xf32>, vector<64x8xf32>, vector<64x64xf32> -> vector<64x64xf32>
    %99 = arith.addf %98, %78 : vector<64x64xf32>
    %cst_60 = arith.constant dense<0xFF800000> : vector<64xf32>
    %100 = vector.multi_reduction <maximumf>, %99, %cst_60 [1] : vector<64x64xf32> to vector<64xf32>
    %101 = vector.shape_cast %100 : vector<64xf32> to vector<64x1xf32>
    %102 = vector.broadcast %101 : vector<64x1xf32> to vector<64x64xf32>
    %103 = arith.subf %99, %102 : vector<64x64xf32>
    %104 = math.exp %103 : vector<64x64xf32>
    %cst_61 = arith.constant dense<0.000000e+00> : vector<64xf32>
    %105 = vector.multi_reduction <add>, %104, %cst_61 [1] : vector<64x64xf32> to vector<64xf32>
    %106 = vector.shape_cast %105 : vector<64xf32> to vector<64x1xf32>
    %cst_62 = arith.constant dense<0.000000e+00> : vector<64x8xf32>
    %107 = tpu.matmul %104, %97, %cst_62 {dimension_numbers = #tpu.dot_dimension_numbers<[1], [0], [0], [1], [0, 0, 1, 1], [], []>} : vector<64x64xf32>, vector<64x8xf32>, vector<64x8xf32> -> vector<64x8xf32>
    %108 = tpu.reciprocal %106 {approx = true} : vector<64x1xf32> -> vector<64x1xf32>
    %109 = vector.broadcast %108 : vector<64x1xf32> to vector<64x8xf32>
    %110 = arith.mulf %107, %109 : vector<64x8xf32>
    %c2 = arith.constant 2 : index
    %c0_63 = arith.constant 0 : index
    %c0_64 = arith.constant 0 : index
    %111 = vector.load %arg2[%c2, %c0_63, %c0_64] : memref<4x32x8xf32, #tpu.memory_space<vmem>>, vector<1x32x8xf32>
    %112 = vector.shape_cast %111 : vector<1x32x8xf32> to vector<32x8xf32>
    %cst_65 = arith.constant dense<0.000000e+00> : vector<128x8xf32>
    %113 = tpu.matmul %0, %112, %cst_65 {dimension_numbers = #tpu.dot_dimension_numbers<[1], [0], [0], [1], [0, 0, 1, 1], [], []>} : vector<128x32xf32>, vector<32x8xf32>, vector<128x8xf32> -> vector<128x8xf32>
    %c2_66 = arith.constant 2 : index
    %c0_67 = arith.constant 0 : index
    %c0_68 = arith.constant 0 : index
    %114 = vector.load %arg3[%c2_66, %c0_67, %c0_68] : memref<4x1x8xf32, #tpu.memory_space<vmem>>, vector<1x1x8xf32>
    %115 = vector.shape_cast %114 : vector<1x1x8xf32> to vector<1x8xf32>
    %116 = vector.broadcast %115 : vector<1x8xf32> to vector<128x8xf32>
    %117 = arith.addf %113, %116 : vector<128x8xf32>
    %c2_69 = arith.constant 2 : index
    %c0_70 = arith.constant 0 : index
    %c0_71 = arith.constant 0 : index
    %118 = vector.load %arg4[%c2_69, %c0_70, %c0_71] : memref<4x32x8xf32, #tpu.memory_space<vmem>>, vector<1x32x8xf32>
    %119 = vector.shape_cast %118 : vector<1x32x8xf32> to vector<32x8xf32>
    %cst_72 = arith.constant dense<0.000000e+00> : vector<128x8xf32>
    %120 = tpu.matmul %0, %119, %cst_72 {dimension_numbers = #tpu.dot_dimension_numbers<[1], [0], [0], [1], [0, 0, 1, 1], [], []>} : vector<128x32xf32>, vector<32x8xf32>, vector<128x8xf32> -> vector<128x8xf32>
    %c2_73 = arith.constant 2 : index
    %c0_74 = arith.constant 0 : index
    %c0_75 = arith.constant 0 : index
    %121 = vector.load %arg5[%c2_73, %c0_74, %c0_75] : memref<4x1x8xf32, #tpu.memory_space<vmem>>, vector<1x1x8xf32>
    %122 = vector.shape_cast %121 : vector<1x1x8xf32> to vector<1x8xf32>
    %123 = vector.broadcast %122 : vector<1x8xf32> to vector<128x8xf32>
    %124 = arith.addf %120, %123 : vector<128x8xf32>
    %c2_76 = arith.constant 2 : index
    %c0_77 = arith.constant 0 : index
    %c0_78 = arith.constant 0 : index
    %125 = vector.load %arg6[%c2_76, %c0_77, %c0_78] : memref<4x32x8xf32, #tpu.memory_space<vmem>>, vector<1x32x8xf32>
    %126 = vector.shape_cast %125 : vector<1x32x8xf32> to vector<32x8xf32>
    %cst_79 = arith.constant dense<0.000000e+00> : vector<128x8xf32>
    %127 = tpu.matmul %0, %126, %cst_79 {dimension_numbers = #tpu.dot_dimension_numbers<[1], [0], [0], [1], [0, 0, 1, 1], [], []>} : vector<128x32xf32>, vector<32x8xf32>, vector<128x8xf32> -> vector<128x8xf32>
    %c2_80 = arith.constant 2 : index
    %c0_81 = arith.constant 0 : index
    %c0_82 = arith.constant 0 : index
    %128 = vector.load %arg7[%c2_80, %c0_81, %c0_82] : memref<4x1x8xf32, #tpu.memory_space<vmem>>, vector<1x1x8xf32>
    %129 = vector.shape_cast %128 : vector<1x1x8xf32> to vector<1x8xf32>
    %130 = vector.broadcast %129 : vector<1x8xf32> to vector<128x8xf32>
    %131 = arith.addf %127, %130 : vector<128x8xf32>
    %c2_83 = arith.constant 2 : index
    %c0_84 = arith.constant 0 : index
    %c0_85 = arith.constant 0 : index
    %132 = vector.load %arg8[%c2_83, %c0_84, %c0_85] : memref<4x64x64xf32, #tpu.memory_space<vmem>>, vector<1x64x64xf32>
    %133 = vector.shape_cast %132 : vector<1x64x64xf32> to vector<64x64xf32>
    %134 = vector.extract_strided_slice %117 {offsets = [0, 0], sizes = [64, 8], strides = [1, 1]} : vector<128x8xf32> to vector<64x8xf32>
    %135 = vector.extract_strided_slice %124 {offsets = [0, 0], sizes = [64, 8], strides = [1, 1]} : vector<128x8xf32> to vector<64x8xf32>
    %136 = vector.extract_strided_slice %131 {offsets = [0, 0], sizes = [64, 8], strides = [1, 1]} : vector<128x8xf32> to vector<64x8xf32>
    %cst_86 = arith.constant dense<0.000000e+00> : vector<64x64xf32>
    %137 = tpu.matmul %134, %135, %cst_86 {dimension_numbers = #tpu.dot_dimension_numbers<[1], [1], [0], [0], [0, 0, 1, 0], [], []>} : vector<64x8xf32>, vector<64x8xf32>, vector<64x64xf32> -> vector<64x64xf32>
    %138 = arith.addf %137, %133 : vector<64x64xf32>
    %cst_87 = arith.constant dense<0xFF800000> : vector<64xf32>
    %139 = vector.multi_reduction <maximumf>, %138, %cst_87 [1] : vector<64x64xf32> to vector<64xf32>
    %140 = vector.shape_cast %139 : vector<64xf32> to vector<64x1xf32>
    %141 = vector.broadcast %140 : vector<64x1xf32> to vector<64x64xf32>
    %142 = arith.subf %138, %141 : vector<64x64xf32>
    %143 = math.exp %142 : vector<64x64xf32>
    %cst_88 = arith.constant dense<0.000000e+00> : vector<64xf32>
    %144 = vector.multi_reduction <add>, %143, %cst_88 [1] : vector<64x64xf32> to vector<64xf32>
    %145 = vector.shape_cast %144 : vector<64xf32> to vector<64x1xf32>
    %cst_89 = arith.constant dense<0.000000e+00> : vector<64x8xf32>
    %146 = tpu.matmul %143, %136, %cst_89 {dimension_numbers = #tpu.dot_dimension_numbers<[1], [0], [0], [1], [0, 0, 1, 1], [], []>} : vector<64x64xf32>, vector<64x8xf32>, vector<64x8xf32> -> vector<64x8xf32>
    %147 = tpu.reciprocal %145 {approx = true} : vector<64x1xf32> -> vector<64x1xf32>
    %148 = vector.broadcast %147 : vector<64x1xf32> to vector<64x8xf32>
    %149 = arith.mulf %146, %148 : vector<64x8xf32>
    %150 = vector.extract_strided_slice %117 {offsets = [64, 0], sizes = [64, 8], strides = [1, 1]} : vector<128x8xf32> to vector<64x8xf32>
    %151 = vector.extract_strided_slice %124 {offsets = [64, 0], sizes = [64, 8], strides = [1, 1]} : vector<128x8xf32> to vector<64x8xf32>
    %152 = vector.extract_strided_slice %131 {offsets = [64, 0], sizes = [64, 8], strides = [1, 1]} : vector<128x8xf32> to vector<64x8xf32>
    %cst_90 = arith.constant dense<0.000000e+00> : vector<64x64xf32>
    %153 = tpu.matmul %150, %151, %cst_90 {dimension_numbers = #tpu.dot_dimension_numbers<[1], [1], [0], [0], [0, 0, 1, 0], [], []>} : vector<64x8xf32>, vector<64x8xf32>, vector<64x64xf32> -> vector<64x64xf32>
    %154 = arith.addf %153, %133 : vector<64x64xf32>
    %cst_91 = arith.constant dense<0xFF800000> : vector<64xf32>
    %155 = vector.multi_reduction <maximumf>, %154, %cst_91 [1] : vector<64x64xf32> to vector<64xf32>
    %156 = vector.shape_cast %155 : vector<64xf32> to vector<64x1xf32>
    %157 = vector.broadcast %156 : vector<64x1xf32> to vector<64x64xf32>
    %158 = arith.subf %154, %157 : vector<64x64xf32>
    %159 = math.exp %158 : vector<64x64xf32>
    %cst_92 = arith.constant dense<0.000000e+00> : vector<64xf32>
    %160 = vector.multi_reduction <add>, %159, %cst_92 [1] : vector<64x64xf32> to vector<64xf32>
    %161 = vector.shape_cast %160 : vector<64xf32> to vector<64x1xf32>
    %cst_93 = arith.constant dense<0.000000e+00> : vector<64x8xf32>
    %162 = tpu.matmul %159, %152, %cst_93 {dimension_numbers = #tpu.dot_dimension_numbers<[1], [0], [0], [1], [0, 0, 1, 1], [], []>} : vector<64x64xf32>, vector<64x8xf32>, vector<64x8xf32> -> vector<64x8xf32>
    %163 = tpu.reciprocal %161 {approx = true} : vector<64x1xf32> -> vector<64x1xf32>
    %164 = vector.broadcast %163 : vector<64x1xf32> to vector<64x8xf32>
    %165 = arith.mulf %162, %164 : vector<64x8xf32>
    %c3 = arith.constant 3 : index
    %c0_94 = arith.constant 0 : index
    %c0_95 = arith.constant 0 : index
    %166 = vector.load %arg2[%c3, %c0_94, %c0_95] : memref<4x32x8xf32, #tpu.memory_space<vmem>>, vector<1x32x8xf32>
    %167 = vector.shape_cast %166 : vector<1x32x8xf32> to vector<32x8xf32>
    %cst_96 = arith.constant dense<0.000000e+00> : vector<128x8xf32>
    %168 = tpu.matmul %0, %167, %cst_96 {dimension_numbers = #tpu.dot_dimension_numbers<[1], [0], [0], [1], [0, 0, 1, 1], [], []>} : vector<128x32xf32>, vector<32x8xf32>, vector<128x8xf32> -> vector<128x8xf32>
    %c3_97 = arith.constant 3 : index
    %c0_98 = arith.constant 0 : index
    %c0_99 = arith.constant 0 : index
    %169 = vector.load %arg3[%c3_97, %c0_98, %c0_99] : memref<4x1x8xf32, #tpu.memory_space<vmem>>, vector<1x1x8xf32>
    %170 = vector.shape_cast %169 : vector<1x1x8xf32> to vector<1x8xf32>
    %171 = vector.broadcast %170 : vector<1x8xf32> to vector<128x8xf32>
    %172 = arith.addf %168, %171 : vector<128x8xf32>
    %c3_100 = arith.constant 3 : index
    %c0_101 = arith.constant 0 : index
    %c0_102 = arith.constant 0 : index
    %173 = vector.load %arg4[%c3_100, %c0_101, %c0_102] : memref<4x32x8xf32, #tpu.memory_space<vmem>>, vector<1x32x8xf32>
    %174 = vector.shape_cast %173 : vector<1x32x8xf32> to vector<32x8xf32>
    %cst_103 = arith.constant dense<0.000000e+00> : vector<128x8xf32>
    %175 = tpu.matmul %0, %174, %cst_103 {dimension_numbers = #tpu.dot_dimension_numbers<[1], [0], [0], [1], [0, 0, 1, 1], [], []>} : vector<128x32xf32>, vector<32x8xf32>, vector<128x8xf32> -> vector<128x8xf32>
    %c3_104 = arith.constant 3 : index
    %c0_105 = arith.constant 0 : index
    %c0_106 = arith.constant 0 : index
    %176 = vector.load %arg5[%c3_104, %c0_105, %c0_106] : memref<4x1x8xf32, #tpu.memory_space<vmem>>, vector<1x1x8xf32>
    %177 = vector.shape_cast %176 : vector<1x1x8xf32> to vector<1x8xf32>
    %178 = vector.broadcast %177 : vector<1x8xf32> to vector<128x8xf32>
    %179 = arith.addf %175, %178 : vector<128x8xf32>
    %c3_107 = arith.constant 3 : index
    %c0_108 = arith.constant 0 : index
    %c0_109 = arith.constant 0 : index
    %180 = vector.load %arg6[%c3_107, %c0_108, %c0_109] : memref<4x32x8xf32, #tpu.memory_space<vmem>>, vector<1x32x8xf32>
    %181 = vector.shape_cast %180 : vector<1x32x8xf32> to vector<32x8xf32>
    %cst_110 = arith.constant dense<0.000000e+00> : vector<128x8xf32>
    %182 = tpu.matmul %0, %181, %cst_110 {dimension_numbers = #tpu.dot_dimension_numbers<[1], [0], [0], [1], [0, 0, 1, 1], [], []>} : vector<128x32xf32>, vector<32x8xf32>, vector<128x8xf32> -> vector<128x8xf32>
    %c3_111 = arith.constant 3 : index
    %c0_112 = arith.constant 0 : index
    %c0_113 = arith.constant 0 : index
    %183 = vector.load %arg7[%c3_111, %c0_112, %c0_113] : memref<4x1x8xf32, #tpu.memory_space<vmem>>, vector<1x1x8xf32>
    %184 = vector.shape_cast %183 : vector<1x1x8xf32> to vector<1x8xf32>
    %185 = vector.broadcast %184 : vector<1x8xf32> to vector<128x8xf32>
    %186 = arith.addf %182, %185 : vector<128x8xf32>
    %c3_114 = arith.constant 3 : index
    %c0_115 = arith.constant 0 : index
    %c0_116 = arith.constant 0 : index
    %187 = vector.load %arg8[%c3_114, %c0_115, %c0_116] : memref<4x64x64xf32, #tpu.memory_space<vmem>>, vector<1x64x64xf32>
    %188 = vector.shape_cast %187 : vector<1x64x64xf32> to vector<64x64xf32>
    %189 = vector.extract_strided_slice %172 {offsets = [0, 0], sizes = [64, 8], strides = [1, 1]} : vector<128x8xf32> to vector<64x8xf32>
    %190 = vector.extract_strided_slice %179 {offsets = [0, 0], sizes = [64, 8], strides = [1, 1]} : vector<128x8xf32> to vector<64x8xf32>
    %191 = vector.extract_strided_slice %186 {offsets = [0, 0], sizes = [64, 8], strides = [1, 1]} : vector<128x8xf32> to vector<64x8xf32>
    %cst_117 = arith.constant dense<0.000000e+00> : vector<64x64xf32>
    %192 = tpu.matmul %189, %190, %cst_117 {dimension_numbers = #tpu.dot_dimension_numbers<[1], [1], [0], [0], [0, 0, 1, 0], [], []>} : vector<64x8xf32>, vector<64x8xf32>, vector<64x64xf32> -> vector<64x64xf32>
    %193 = arith.addf %192, %188 : vector<64x64xf32>
    %cst_118 = arith.constant dense<0xFF800000> : vector<64xf32>
    %194 = vector.multi_reduction <maximumf>, %193, %cst_118 [1] : vector<64x64xf32> to vector<64xf32>
    %195 = vector.shape_cast %194 : vector<64xf32> to vector<64x1xf32>
    %196 = vector.broadcast %195 : vector<64x1xf32> to vector<64x64xf32>
    %197 = arith.subf %193, %196 : vector<64x64xf32>
    %198 = math.exp %197 : vector<64x64xf32>
    %cst_119 = arith.constant dense<0.000000e+00> : vector<64xf32>
    %199 = vector.multi_reduction <add>, %198, %cst_119 [1] : vector<64x64xf32> to vector<64xf32>
    %200 = vector.shape_cast %199 : vector<64xf32> to vector<64x1xf32>
    %cst_120 = arith.constant dense<0.000000e+00> : vector<64x8xf32>
    %201 = tpu.matmul %198, %191, %cst_120 {dimension_numbers = #tpu.dot_dimension_numbers<[1], [0], [0], [1], [0, 0, 1, 1], [], []>} : vector<64x64xf32>, vector<64x8xf32>, vector<64x8xf32> -> vector<64x8xf32>
    %202 = tpu.reciprocal %200 {approx = true} : vector<64x1xf32> -> vector<64x1xf32>
    %203 = vector.broadcast %202 : vector<64x1xf32> to vector<64x8xf32>
    %204 = arith.mulf %201, %203 : vector<64x8xf32>
    %205 = vector.extract_strided_slice %172 {offsets = [64, 0], sizes = [64, 8], strides = [1, 1]} : vector<128x8xf32> to vector<64x8xf32>
    %206 = vector.extract_strided_slice %179 {offsets = [64, 0], sizes = [64, 8], strides = [1, 1]} : vector<128x8xf32> to vector<64x8xf32>
    %207 = vector.extract_strided_slice %186 {offsets = [64, 0], sizes = [64, 8], strides = [1, 1]} : vector<128x8xf32> to vector<64x8xf32>
    %cst_121 = arith.constant dense<0.000000e+00> : vector<64x64xf32>
    %208 = tpu.matmul %205, %206, %cst_121 {dimension_numbers = #tpu.dot_dimension_numbers<[1], [1], [0], [0], [0, 0, 1, 0], [], []>} : vector<64x8xf32>, vector<64x8xf32>, vector<64x64xf32> -> vector<64x64xf32>
    %209 = arith.addf %208, %188 : vector<64x64xf32>
    %cst_122 = arith.constant dense<0xFF800000> : vector<64xf32>
    %210 = vector.multi_reduction <maximumf>, %209, %cst_122 [1] : vector<64x64xf32> to vector<64xf32>
    %211 = vector.shape_cast %210 : vector<64xf32> to vector<64x1xf32>
    %212 = vector.broadcast %211 : vector<64x1xf32> to vector<64x64xf32>
    %213 = arith.subf %209, %212 : vector<64x64xf32>
    %214 = math.exp %213 : vector<64x64xf32>
    %cst_123 = arith.constant dense<0.000000e+00> : vector<64xf32>
    %215 = vector.multi_reduction <add>, %214, %cst_123 [1] : vector<64x64xf32> to vector<64xf32>
    %216 = vector.shape_cast %215 : vector<64xf32> to vector<64x1xf32>
    %cst_124 = arith.constant dense<0.000000e+00> : vector<64x8xf32>
    %217 = tpu.matmul %214, %207, %cst_124 {dimension_numbers = #tpu.dot_dimension_numbers<[1], [0], [0], [1], [0, 0, 1, 1], [], []>} : vector<64x64xf32>, vector<64x8xf32>, vector<64x8xf32> -> vector<64x8xf32>
    %218 = tpu.reciprocal %216 {approx = true} : vector<64x1xf32> -> vector<64x1xf32>
    %219 = vector.broadcast %218 : vector<64x1xf32> to vector<64x8xf32>
    %220 = arith.mulf %217, %219 : vector<64x8xf32>
    %221 = tpu.concatenate %39, %94, %149, %204 in 1 : vector<64x8xf32>, vector<64x8xf32>, vector<64x8xf32>, vector<64x8xf32> -> vector<64x32xf32>
    %222 = tpu.concatenate %55, %110, %165, %220 in 1 : vector<64x8xf32>, vector<64x8xf32>, vector<64x8xf32>, vector<64x8xf32> -> vector<64x32xf32>
    %223 = tpu.concatenate %221, %222 in 0 : vector<64x32xf32>, vector<64x32xf32> -> vector<128x32xf32>
    %c0_125 = arith.constant 0 : index
    %c0_126 = arith.constant 0 : index
    %224 = vector.load %arg9[%c0_125, %c0_126] : memref<128x32xf32, #tpu.memory_space<vmem>>, vector<128x32xf32>
    tpu.vector_store %arg9[%c0_125, %c0_126], %223 {strides = array<i32>} : memref<128x32xf32, #tpu.memory_space<vmem>>, vector<128x32xf32>,
    return
  }
  func.func @transform_0(%arg0: i32) -> (i32, i32) {
    %c0_i32 = arith.constant 0 : i32
    %c0_i32_0 = arith.constant 0 : i32
    return %arg0, %c0_i32 : i32, i32
  }
  func.func @transform_1(%arg0: i32) -> (i32, i32, i32) {
    %c0_i32 = arith.constant 0 : i32
    %c0_i32_0 = arith.constant 0 : i32
    %c0_i32_1 = arith.constant 0 : i32
    %c0_i32_2 = arith.constant 0 : i32
    return %c0_i32, %c0_i32_0, %c0_i32_1 : i32, i32, i32
  }
  func.func @transform_2(%arg0: i32) -> (i32, i32, i32) {
    %c0_i32 = arith.constant 0 : i32
    %c0_i32_0 = arith.constant 0 : i32
    %c0_i32_1 = arith.constant 0 : i32
    %c0_i32_2 = arith.constant 0 : i32
    return %c0_i32, %c0_i32_0, %c0_i32_1 : i32, i32, i32
  }
  func.func @transform_3(%arg0: i32) -> (i32, i32, i32) {
    %c0_i32 = arith.constant 0 : i32
    %c0_i32_0 = arith.constant 0 : i32
    %c0_i32_1 = arith.constant 0 : i32
    %c0_i32_2 = arith.constant 0 : i32
    return %c0_i32, %c0_i32_0, %c0_i32_1 : i32, i32, i32
  }
  func.func @transform_4(%arg0: i32) -> (i32, i32, i32) {
    %c0_i32 = arith.constant 0 : i32
    %c0_i32_0 = arith.constant 0 : i32
    %c0_i32_1 = arith.constant 0 : i32
    %c0_i32_2 = arith.constant 0 : i32
    return %c0_i32, %c0_i32_0, %c0_i32_1 : i32, i32, i32
  }
  func.func @transform_5(%arg0: i32) -> (i32, i32, i32) {
    %c0_i32 = arith.constant 0 : i32
    %c0_i32_0 = arith.constant 0 : i32
    %c0_i32_1 = arith.constant 0 : i32
    %c0_i32_2 = arith.constant 0 : i32
    return %c0_i32, %c0_i32_0, %c0_i32_1 : i32, i32, i32
  }
  func.func @transform_6(%arg0: i32) -> (i32, i32, i32) {
    %c0_i32 = arith.constant 0 : i32
    %c0_i32_0 = arith.constant 0 : i32
    %c0_i32_1 = arith.constant 0 : i32
    %c0_i32_2 = arith.constant 0 : i32
    return %c0_i32, %c0_i32_0, %c0_i32_1 : i32, i32, i32
  }
  func.func @transform_7(%arg0: i32) -> (i32, i32, i32) {
    %c0_i32 = arith.constant 0 : i32
    %c0_i32_0 = arith.constant 0 : i32
    %c0_i32_1 = arith.constant 0 : i32
    %c0_i32_2 = arith.constant 0 : i32
    return %c0_i32, %c0_i32_0, %c0_i32_1 : i32, i32, i32
  }
  func.func @transform_8(%arg0: i32) -> (i32, i32) {
    %c0_i32 = arith.constant 0 : i32
    %c0_i32_0 = arith.constant 0 : i32
    return %arg0, %c0_i32 : i32, i32
  }
}

</mosaic_0001>

<bundles_post_ra>
// kernel: tpu_custom_call.1
= control target key start
LH: loop header
LB: loop body
LE: loop exit
PB: predicated region body
PF: predicated region fallthrough
CT: control target
= control target key end

     0   :  { %vm56_vm0 = vcmask 261120   ;;  %vm570_vm1 = vcmask 64512   ;;  %vm724_vm3 = vcmask 523264   ;;  %s7744_s10 = smov 16   ;;  %vm5085_vm4 = vcmask 130048   ;;  %s7745_s11 = smov 24   ;;  %s10219_s3 = inlined_call_operand.vmem [shape: f32[4,32,8], index: 3, kind: input, shape index: {}]   ;;  %s10220_s0 = inlined_call_operand.vmem [shape: f32[128,32], index: 0, kind: input, shape index: {}]   ;;  %s10221_s1 = inlined_call_operand.vmem [shape: f32[4,32,8], index: 1, kind: input, shape index: {}]   ;;  %s10222_s5 = inlined_call_operand.vmem [shape: f32[4,32,8], index: 5, kind: input, shape index: {}]   ;;  %s10223_s4 = inlined_call_operand.vmem [shape: f32[4,1,8], index: 4, kind: input, shape index: {}]   ;;  %s10224_s2 = inlined_call_operand.vmem [shape: f32[4,1,8], index: 2, kind: input, shape index: {}]   ;;  %s10225_s6 = inlined_call_operand.vmem [shape: f32[4,1,8], index: 6, kind: input, shape index: {}]   ;;  %s10226_s7 = inlined_call_operand.vmem [shape: f32[4,64,64], index: 7, kind: input, shape index: {}]   ;;  %s10227_s8 = inlined_call_operand.vmem [shape: f32[128,32], index: 8, kind: output, shape index: {}]  }
   0x1   :  { %v250_v0 = vld [vmem:[%s10219_s3] sm:$0xff]  ;;  %v251_v1 = vld [vmem:[%s10219_s3 + $0x8] sm:$0xff]  ;;  %v252_v2 = vld [vmem:[%s10219_s3 + $0x10] sm:$0xff]  ;;  %vm5094_vm5 = vcmask 195584  }
   0x2   :  { %v7044_v3 = vpack.c.bf16 %v251_v1, %v250_v0  ;;  %v253_v4 = vld [vmem:[%s10219_s3 + $0x18] sm:$0xff]  ;;  %v7806_v5 = vld [vmem:[%s10220_s0] sm:$0xff]  ;;  %v46_v8 = vld [vmem:[%s10221_s1 + $0x8] sm:$0xff] }
   0x3   :  { %v7048_v6 = vpack.c.bf16 %v253_v4, %v252_v2  ;;  %6244 = vmatprep.mubr.msk.f32.mxu1 %vm56_vm0, %v7806_v5  ;;  %6212 = vmatprep.mubr.msk.f32.mxu0 %vm56_vm0, %v7806_v5  ;;  %v45_v7 = vld [vmem:[%s10221_s1] sm:$0xff]  ;;  %v47_v10 = vld [vmem:[%s10221_s1 + $0x10] sm:$0xff]  ;;  %v48_v11 = vld [vmem:[%s10221_s1 + $0x18] sm:$0xff] }
   0x4   :  { %7045 = vmatprep.subr.bf16.mxu1 %v7044_v3  ;;  %v7036_v9 = vpack.c.bf16 %v46_v8, %v45_v7  ;;  %v7040_v12 = vpack.c.bf16 %v48_v11, %v47_v10  ;;  %v7827_v13 = vld [vmem:[%s10220_s0 + $0x8] sm:$0xff]  ;;  %v406_v14 = vld [vmem:[%s10222_s5] sm:$0xff]  ;;  %v7838_v16 = vld [vmem:[%s10220_s0 + $0x10] sm:$0xff] }
   0x5   :  { %7047 = vmatpush3.bf16.msra.mxu1 %v7044_v3  ;;  %v407_v15 = vld [vmem:[%s10222_s5 + $0x8] sm:$0xff]  ;;  %v7847_v18 = vld [vmem:[%s10220_s0 + $0x18] sm:$0xff]  ;;  %v7852_v19 = vld [vmem:[%s10220_s0 + $0x20] sm:$0xff] }
   0x6   :  { %7049 = vmatprep.subr.bf16.mxu1 %v7048_v6  ;;  %7037 = vmatprep.subr.bf16.mxu0 %v7036_v9  ;;  %v7052_v17 = vpack.c.bf16 %v407_v15, %v406_v14  ;;  %v7861_v20 = vld [vmem:[%s10220_s0 + $0x28] sm:$0xff]  ;;  %v7868_v21 = vld [vmem:[%s10220_s0 + $0x30] sm:$0xff]  ;;  %v7879_v22 = vld [vmem:[%s10220_s0 + $0x38] sm:$0xff] }
   0x7   :  { %7039 = vmatpush3.bf16.msra.mxu0 %v7036_v9  ;;  %v7886_v23 = vld [vmem:[%s10220_s0 + $0x40] sm:$0xff]  ;;  %v7897_v24 = vld [vmem:[%s10220_s0 + $0x48] sm:$0xff]  ;;  %v7904_v25 = vld [vmem:[%s10220_s0 + $0x50] sm:$0xff] }
   0x8   :  { %7041 = vmatprep.subr.bf16.mxu0 %v7040_v12  ;;  %v7915_v26 = vld [vmem:[%s10220_s0 + $0x58] sm:$0xff]  ;;  %v7922_v27 = vld [vmem:[%s10220_s0 + $0x60] sm:$0xff]  ;;  %v7933_v28 = vld [vmem:[%s10220_s0 + $0x68] sm:$0xff] }
   0x9   :  { %7051 = vmatpush3.bf16.msra.mxu1 %v7048_v6  ;;  %v7940_v29 = vld [vmem:[%s10220_s0 + $0x70] sm:$0xff]  ;;  %v7951_v30 = vld [vmem:[%s10220_s0 + $0x78] sm:$0xff]  ;;  %v8006_v34 = vld [vmem:[%s10223_s4] ss:$0 sm:$0xff] }
   0xa   :  { %v408_v31 = vld [vmem:[%s10222_s5 + $0x10] sm:$0xff]  ;;  %v409_v32 = vld [vmem:[%s10222_s5 + $0x18] sm:$0xff]  ;;  %vm8012_vm2 = vmpackc.low %vm570_vm1, %vm570_vm1 }
   0xb   :  { %7043 = vmatpush3.bf16.msra.mxu0 %v7040_v12  ;;  %v7056_v33 = vpack.c.bf16 %v409_v32, %v408_v31  ;;  %v8019_v42 = vld [vmem:[%s10224_s2] ss:$0 sm:$0xff]  ;;  %v5635_v39 = vld [vmem:[%s10225_s6 + $0x3] ss:$0 sm:$0xff] }
   0xc   :  { %6245 = vmatmul.mubr.msk.f32.vlgmr.msra.gmra.mrb[0].mxu1 %vm56_vm0, %v7827_v13  ;;  %7053 = vmatprep.subr.bf16.mxu0 %v7052_v17 }
   0xd   :  { %6247 = vmatprep.mubr.msk.f32.mxu1 %vm56_vm0, %v7838_v16 }
   0xe   :  { %6213 = vmatmul.mubr.msk.f32.vlgmr.msra.gmra.mrb[0].mxu0 %vm56_vm0, %v7827_v13 }
   0xf   :  { %6215 = vmatprep.mubr.msk.f32.mxu0 %vm56_vm0, %v7838_v16  ;;  %7055 = vmatpush3.bf16.msra.mxu0 %v7052_v17 }
  0x10   :  { %6248 = vmatmul.mubr.msk.f32.gmra.mrb[2].mxu1 %vm56_vm0, %v7847_v18  ;;  %7057 = vmatprep.subr.bf16.mxu0 %v7056_v33 }
  0x11   :  { %6250 = vmatprep.mubr.msk.f32.mxu1 %vm56_vm0, %v7852_v19 }
  0x12   :  { %6216 = vmatmul.mubr.msk.f32.gmra.mrb[2].mxu0 %vm56_vm0, %v7847_v18 }
  0x13   :  { %6218 = vmatprep.mubr.msk.f32.mxu0 %vm56_vm0, %v7852_v19  ;;  %7059 = vmatpush3.bf16.msra.mxu0 %v7056_v33 }
  0x14   :  { %6251 = vmatmul.mubr.msk.f32.gmra.mrb[4].mxu1 %vm56_vm0, %v7861_v20 }
  0x15   :  { %6253 = vmatprep.mubr.msk.f32.mxu1 %vm56_vm0, %v7868_v21 }
  0x16   :  { %6219 = vmatmul.mubr.msk.f32.gmra.mrb[4].mxu0 %vm56_vm0, %v7861_v20 }
  0x17   :  { %6221 = vmatprep.mubr.msk.f32.mxu0 %vm56_vm0, %v7868_v21 }
  0x18   :  { %6254 = vmatmul.mubr.msk.f32.gmra.mrb[6].mxu1 %vm56_vm0, %v7879_v22 }
  0x19   :  { %6256 = vmatprep.mubr.msk.f32.mxu1 %vm56_vm0, %v7886_v23 }
  0x1a   :  { %6222 = vmatmul.mubr.msk.f32.gmra.mrb[6].mxu0 %vm56_vm0, %v7879_v22 }
  0x1b   :  { %6224 = vmatprep.mubr.msk.f32.mxu0 %vm56_vm0, %v7886_v23 }
  0x1c   :  { %6257 = vmatmul.mubr.msk.f32.gmra.mrb[8].mxu1 %vm56_vm0, %v7897_v24 }
  0x1d   :  { %6259 = vmatprep.mubr.msk.f32.mxu1 %vm56_vm0, %v7904_v25 }
  0x1e   :  { %6225 = vmatmul.mubr.msk.f32.gmra.mrb[8].mxu0 %vm56_vm0, %v7897_v24 }
  0x1f   :  { %6227 = vmatprep.mubr.msk.f32.mxu0 %vm56_vm0, %v7904_v25 }
  0x20   :  { %6260 = vmatmul.mubr.msk.f32.gmra.mrb[10].mxu1 %vm56_vm0, %v7915_v26 }
  0x21   :  { %6262 = vmatprep.mubr.msk.f32.mxu1 %vm56_vm0, %v7922_v27 }
  0x22   :  { %6228 = vmatmul.mubr.msk.f32.gmra.mrb[10].mxu0 %vm56_vm0, %v7915_v26 }
  0x23   :  { %6230 = vmatprep.mubr.msk.f32.mxu0 %vm56_vm0, %v7922_v27 }
  0x24   :  { %6263 = vmatmul.mubr.msk.f32.gmra.mrb[12].mxu1 %vm56_vm0, %v7933_v28 }
  0x25   :  { %6265 = vmatprep.mubr.msk.f32.mxu1 %vm56_vm0, %v7940_v29 }
  0x26   :  { %6231 = vmatmul.mubr.msk.f32.gmra.mrb[12].mxu0 %vm56_vm0, %v7933_v28 }
  0x27   :  { %6233 = vmatprep.mubr.msk.f32.mxu0 %vm56_vm0, %v7940_v29 }
  0x28   :  { %6266 = vmatmul.mubr.msk.f32.gmra.mrb[14].mxu1 %vm56_vm0, %v7951_v30 }
  0x2a   :  { %6234 = vmatmul.mubr.msk.f32.gmra.mrb[14].mxu0 %vm56_vm0, %v7951_v30 }
  0x2b   :  { %6276 = vmatprep.mubr.msk.f32.mxu0 %vm56_vm0, %v7806_v5 }
  0x2e   :  { %6277 = vmatmul.mubr.msk.f32.vlgmr.msra.gmra.mrb[16].mxu0 %vm56_vm0, %v7827_v13 }
  0x2f   :  { %6279 = vmatprep.mubr.msk.f32.mxu0 %vm56_vm0, %v7838_v16 }
  0x32   :  { %6280 = vmatmul.mubr.msk.f32.gmra.mrb[18].mxu0 %vm56_vm0, %v7847_v18 }
  0x33   :  { %6282 = vmatprep.mubr.msk.f32.mxu0 %vm56_vm0, %v7852_v19 }
  0x36   :  { %6283 = vmatmul.mubr.msk.f32.gmra.mrb[20].mxu0 %vm56_vm0, %v7861_v20 }
  0x37   :  { %6285 = vmatprep.mubr.msk.f32.mxu0 %vm56_vm0, %v7868_v21 }
  0x3a   :  { %6286 = vmatmul.mubr.msk.f32.gmra.mrb[22].mxu0 %vm56_vm0, %v7879_v22 }
  0x3b   :  { %6288 = vmatprep.mubr.msk.f32.mxu0 %vm56_vm0, %v7886_v23 }
  0x3e   :  { %6289 = vmatmul.mubr.msk.f32.gmra.mrb[24].mxu0 %vm56_vm0, %v7897_v24 }
  0x3f   :  { %6291 = vmatprep.mubr.msk.f32.mxu0 %vm56_vm0, %v7904_v25 }
  0x42   :  { %6292 = vmatmul.mubr.msk.f32.gmra.mrb[26].mxu0 %vm56_vm0, %v7915_v26 }
  0x43   :  { %6294 = vmatprep.mubr.msk.f32.mxu0 %vm56_vm0, %v7922_v27 }
  0x46   :  { %6295 = vmatmul.mubr.msk.f32.gmra.mrb[28].mxu0 %vm56_vm0, %v7933_v28 }
  0x47   :  { %6297 = vmatprep.mubr.msk.f32.mxu0 %vm56_vm0, %v7940_v29 }
  0x4a   :  { %6298 = vmatmul.mubr.msk.f32.gmra.mrb[30].mxu0 %vm56_vm0, %v7951_v30 }
  0xdf   :  { %v6246_v35 = vpop.f32.mrb[0].mxu1 }
  0xe0   :  { %v333_v36 = vadd.f32 %v6246_v35, %v8006_v34  ;;  %v327_v37 = vpop.f32.mrb[1].mxu1 }
  0xe1   :  { %v328_v38 = vadd.f32 %v8006_v34, %v327_v37  ;;  %v8022_v45 = vpop.f32.mrb[0].mxu0 }
  0xe2   :  { %v171_v47 = vpop.f32.mrb[1].mxu0 }
  0xe3   :  { %v7060_v40 = vpack.c.bf16 %v333_v36, %v328_v38  ;;  %v6249_v41 = vpop.f32.mrb[2].mxu1  ;;  %v172_v48 = vadd.f32 %v8019_v42, %v171_v47 }
  0xe4   :  { %v343_v43 = vadd.f32 %v6249_v41, %v8006_v34  ;;  %v337_v44 = vpop.f32.mrb[3].mxu1 }
  0xe5   :  { %7062 = vmatprep.subr.msk.bf16.mxu1 %vm8012_vm2, %v7060_v40  ;;  %v338_v46 = vadd.f32 %v8006_v34, %v337_v44  ;;  %v6217_v53 = vpop.f32.mrb[2].mxu0  ;;  %6316 = vmatprep.mubr.msk.f32.mxu1 %vm570_vm1, %v172_v48 }
  0xe6   :  { %7065 = vmatpush3.bf16.xpose.msk.msra.mxu1 %vm8012_vm2, %v7060_v40  ;;  %v181_v55 = vpop.f32.mrb[3].mxu0 }
  0xe7   :  { %v7066_v49 = vpack.c.bf16 %v343_v43, %v338_v46  ;;  %v6252_v50 = vpop.f32.mrb[4].mxu1 }
  0xe8   :  { %v353_v51 = vadd.f32 %v6252_v50, %v8006_v34  ;;  %v347_v52 = vpop.f32.mrb[5].mxu1 }
  0xe9   :  { %v348_v54 = vadd.f32 %v8006_v34, %v347_v52  ;;  %7068 = vmatprep.subr.msk.bf16.mxu1 %vm8012_vm2, %v7066_v49  ;;  %v6220_v60 = vpop.f32.mrb[4].mxu0  ;;  %v177_v52 = vadd.f32 %v8022_v45, %v8019_v42 }
  0xea   :  { %v191_v62 = vpop.f32.mrb[5].mxu0 }
  0xeb   :  { %v7072_v56 = vpack.c.bf16 %v353_v51, %v348_v54  ;;  %v6255_v57 = vpop.f32.mrb[6].mxu1  ;;  %v182_v51 = vadd.f32 %v8019_v42, %v181_v55  ;;  %v187_v54 = vadd.f32 %v6217_v53, %v8019_v42 }
  0xec   :  { %v363_v58 = vadd.f32 %v6255_v57, %v8006_v34  ;;  %v357_v59 = vpop.f32.mrb[7].mxu1 }
  0xed   :  { %v358_v61 = vadd.f32 %v8006_v34, %v357_v59  ;;  %v6223_v3 = vpop.f32.mrb[6].mxu0 }
  0xee   :  { %7071 = vmatpush3.bf16.xpose.msk.msra.mxu1 %vm8012_vm2, %v7066_v49  ;;  %v201_v6 = vpop.f32.mrb[7].mxu0  ;;  %v207_v55 = vadd.f32 %v6223_v3, %v8019_v42 }
  0xef   :  { %v7078_v63 = vpack.c.bf16 %v363_v58, %v358_v61  ;;  %v6258_v0 = vpop.f32.mrb[8].mxu1  ;;  %7074 = vmatprep.subr.msk.bf16.mxu1 %vm8012_vm2, %v7072_v56  ;;  %v202_v45 = vadd.f32 %v8019_v42, %v201_v6 }
  0xf0   :  { %v373_v1 = vadd.f32 %v6258_v0, %v8006_v34  ;;  %v367_v2 = vpop.f32.mrb[9].mxu1 }
  0xf1   :  { %v368_v4 = vadd.f32 %v8006_v34, %v367_v2  ;;  %v6226_v11 = vpop.f32.mrb[8].mxu0 }
  0xf2   :  { %v211_v14 = vpop.f32.mrb[9].mxu0  ;;  %v217_v53 = vadd.f32 %v6226_v11, %v8019_v42 }
  0xf3   :  { %v7100_v7 = vpack.c.bf16 %v373_v1, %v368_v4  ;;  %v6261_v8 = vpop.f32.mrb[10].mxu1  ;;  %v212_v15 = vadd.f32 %v8019_v42, %v211_v14 }
  0xf4   :  { %v383_v9 = vadd.f32 %v6261_v8, %v8006_v34  ;;  %v377_v10 = vpop.f32.mrb[11].mxu1 }
  0xf5   :  { %7102 = vmatprep.subr.msk.bf16.mxu0 %vm8012_vm2, %v7100_v7  ;;  %v378_v12 = vadd.f32 %v8006_v34, %v377_v10  ;;  %v6229_v35 = vpop.f32.mrb[10].mxu0  ;;  %6372 = vmatprep.mubr.msk.f32.mxu0 %vm570_vm1, %v212_v15 }
  0xf6   :  { %7077 = vmatpush3.bf16.xpose.msk.msra.mxu1 %vm8012_vm2, %v7072_v56  ;;  %7105 = vmatpush3.bf16.xpose.msk.msra.mxu0 %vm8012_vm2, %v7100_v7  ;;  %v221_v37 = vpop.f32.mrb[11].mxu0  ;;  %v197_v56 = vadd.f32 %v6220_v60, %v8019_v42  ;;  %v227_v58 = vadd.f32 %v6229_v35, %v8019_v42 }
  0xf7   :  { %7080 = vmatprep.subr.msk.bf16.mxu1 %vm8012_vm2, %v7078_v63  ;;  %v7106_v17 = vpack.c.bf16 %v383_v9, %v378_v12  ;;  %v6264_v31 = vpop.f32.mrb[12].mxu1  ;;  %v222_v57 = vadd.f32 %v8019_v42, %v221_v37 }
  0xf8   :  { %v393_v32 = vadd.f32 %v6264_v31, %v8006_v34  ;;  %v387_v33 = vpop.f32.mrb[13].mxu1 }
  0xf9   :  { %7108 = vmatprep.subr.msk.bf16.mxu0 %vm8012_vm2, %v7106_v17  ;;  %v388_v36 = vadd.f32 %v8006_v34, %v387_v33  ;;  %v6232_v44 = vpop.f32.mrb[12].mxu0 }
  0xfa   :  { %v231_v47 = vpop.f32.mrb[13].mxu0  ;;  %v237_v60 = vadd.f32 %v6232_v44, %v8019_v42 }
  0xfb   :  { %v7112_v38 = vpack.c.bf16 %v393_v32, %v388_v36  ;;  %v6267_v40 = vpop.f32.mrb[14].mxu1  ;;  %v232_v59 = vadd.f32 %v8019_v42, %v231_v47 }
  0xfc   :  { %v403_v41 = vadd.f32 %v6267_v40, %v8006_v34  ;;  %v397_v43 = vpop.f32.mrb[15].mxu1 }
  0xfd   :  { %v398_v46 = vadd.f32 %v8006_v34, %v397_v43  ;;  %v6235_v49 = vpop.f32.mrb[14].mxu0  ;;  %v192_v34 = vadd.f32 %v8019_v42, %v191_v62 }
  0xfe   :  { %7083 = vmatpush3.bf16.xpose.msk.msra.mxu1 %vm8012_vm2, %v7078_v63  ;;  %7111 = vmatpush3.bf16.xpose.msk.msra.mxu0 %vm8012_vm2, %v7106_v17  ;;  %v241_v50 = vpop.f32.mrb[15].mxu0  ;;  %v247_v62 = vadd.f32 %v6235_v49, %v8019_v42  ;;  %v5277_v63 = vld [vmem:[%s10225_s6] ss:$0 sm:$0xff] }
  0xff   :  { %7114 = vmatprep.subr.msk.bf16.mxu0 %vm8012_vm2, %v7112_v38  ;;  %v7118_v48 = vpack.c.bf16 %v403_v41, %v398_v46  ;;  %v242_v61 = vadd.f32 %v8019_v42, %v241_v50 }
 0x101   :  { %v6278_v0 = vpop.f32.mrb[16].mxu0 }
 0x102   :  { %v489_v1 = vadd.f32 %v6278_v0, %v5277_v63  ;;  %v483_v2 = vpop.f32.mrb[17].mxu0 }
 0x103   :  { %v484_v3 = vadd.f32 %v5277_v63, %v483_v2  ;;  %v565_v2 = vld [vmem:[%s10226_s7 + $0x18] sm:$0xff] }
 0x105   :  { %6317 = vmatmul.mubr.msk.f32.vlgmr.msra.gmra.mrb[16].mxu1 %vm570_vm1, %v177_v52  ;;  %v7084_v4 = vpack.c.bf16 %v489_v1, %v484_v3  ;;  %v6281_v6 = vpop.f32.mrb[18].mxu0 }
 0x106   :  { %7117 = vmatpush3.bf16.xpose.msk.msra.mxu0 %vm8012_vm2, %v7112_v38  ;;  %6319 = vmatprep.mubr.msk.f32.mxu1 %vm570_vm1, %v182_v51  ;;  %v499_v42 = vadd.f32 %v6281_v6, %v5277_v63  ;;  %v493_v7 = vpop.f32.mrb[19].mxu0  ;;  %v566_v6 = vld [vmem:[%s10226_s7 + $0x20] sm:$0xff] }
 0x107   :  { %7120 = vmatprep.subr.msk.bf16.mxu0 %vm8012_vm2, %v7118_v48  ;;  %v494_v8 = vadd.f32 %v5277_v63, %v493_v7  ;;  %7085 = vmatprep.subr.bf16.mxu1 %v7084_v4 }
 0x108   :  { %7087 = vmatpush3.bf16.msra.mxu1 %v7084_v4 }
 0x109   :  { %6320 = vmatmul.mubr.msk.f32.gmra.mrb[18].mxu1 %vm570_vm1, %v187_v54  ;;  %v7088_v9 = vpack.c.bf16 %v499_v42, %v494_v8  ;;  %v6284_v10 = vpop.f32.mrb[20].mxu0 }
 0x10a   :  { %6322 = vmatprep.mubr.msk.f32.mxu1 %vm570_vm1, %v192_v34  ;;  %v509_v11 = vadd.f32 %v6284_v10, %v5277_v63  ;;  %v503_v12 = vpop.f32.mrb[21].mxu0  ;;  %v567_v10 = vld [vmem:[%s10226_s7 + $0x28] sm:$0xff] }
 0x10b   :  { %v504_v14 = vadd.f32 %v5277_v63, %v503_v12  ;;  %7089 = vmatprep.subr.bf16.mxu1 %v7088_v9 }
 0x10c   :  { %7091 = vmatpush3.bf16.msra.mxu1 %v7088_v9 }
 0x10d   :  { %6323 = vmatmul.mubr.msk.f32.gmra.mrb[20].mxu1 %vm570_vm1, %v197_v56  ;;  %v7092_v15 = vpack.c.bf16 %v509_v11, %v504_v14  ;;  %v6287_v17 = vpop.f32.mrb[22].mxu0  ;;  %v568_v14 = vld [vmem:[%s10226_s7 + $0x30] sm:$0xff] }
 0x10e   :  { %7123 = vmatpush3.bf16.xpose.msk.msra.mxu0 %vm8012_vm2, %v7118_v48  ;;  %6325 = vmatprep.mubr.msk.f32.mxu1 %vm570_vm1, %v202_v45  ;;  %v519_v31 = vadd.f32 %v6287_v17, %v5277_v63  ;;  %v513_v32 = vpop.f32.mrb[23].mxu0 }
 0x10f   :  { %v514_v33 = vadd.f32 %v5277_v63, %v513_v32  ;;  %7093 = vmatprep.subr.bf16.mxu1 %v7092_v15 }
 0x110   :  { %7095 = vmatpush3.bf16.msra.mxu1 %v7092_v15 }
 0x111   :  { %6326 = vmatmul.mubr.msk.f32.gmra.mrb[22].mxu1 %vm570_vm1, %v207_v55  ;;  %v7096_v35 = vpack.c.bf16 %v519_v31, %v514_v33  ;;  %v6290_v36 = vpop.f32.mrb[24].mxu0  ;;  %v569_v33 = vld [vmem:[%s10226_s7 + $0x38] sm:$0xff] }
 0x112   :  { %v529_v37 = vadd.f32 %v6290_v36, %v5277_v63  ;;  %v523_v38 = vpop.f32.mrb[25].mxu0 }
 0x113   :  { %7097 = vmatprep.subr.bf16.mxu1 %v7096_v35  ;;  %v524_v40 = vadd.f32 %v5277_v63, %v523_v38 }
 0x114   :  { %7099 = vmatpush3.bf16.msra.mxu1 %v7096_v35 }
 0x115   :  { %6373 = vmatmul.mubr.msk.f32.vlgmr.msra.gmra.mrb[32].mxu0 %vm570_vm1, %v217_v53  ;;  %v8107_v41 = vpack.c.bf16 %v529_v37, %v524_v40  ;;  %v6293_v43 = vpop.f32.mrb[26].mxu0 }
 0x116   :  { %6375 = vmatprep.mubr.msk.f32.mxu0 %vm570_vm1, %v222_v57  ;;  %v539_v44 = vadd.f32 %v6293_v43, %v5277_v63  ;;  %v533_v46 = vpop.f32.mrb[27].mxu0  ;;  %v562_v57 = vld [vmem:[%s10226_s7] sm:$0xff] }
 0x117   :  { %v534_v47 = vadd.f32 %v5277_v63, %v533_v46  ;;  %7125 = vmatprep.subr.bf16.mxu1 %v8107_v41 }
 0x119   :  { %6376 = vmatmul.mubr.msk.f32.gmra.mrb[34].mxu0 %vm570_vm1, %v227_v58  ;;  %v8110_v48 = vpack.c.bf16 %v539_v44, %v534_v47  ;;  %v6296_v49 = vpop.f32.mrb[28].mxu0 }
 0x11a   :  { %6378 = vmatprep.mubr.msk.f32.mxu0 %vm570_vm1, %v232_v59  ;;  %v549_v50 = vadd.f32 %v6296_v49, %v5277_v63  ;;  %v543_v51 = vpop.f32.mrb[29].mxu0  ;;  %v563_v59 = vld [vmem:[%s10226_s7 + $0x8] sm:$0xff] }
 0x11b   :  { %v544_v52 = vadd.f32 %v5277_v63, %v543_v51 }
 0x11d   :  { %6379 = vmatmul.mubr.msk.f32.gmra.mrb[36].mxu0 %vm570_vm1, %v237_v60  ;;  %v8112_v34 = vpack.c.bf16 %v549_v50, %v544_v52  ;;  %v6299_v54 = vpop.f32.mrb[30].mxu0 }
 0x11e   :  { %6381 = vmatprep.mubr.msk.f32.mxu0 %vm570_vm1, %v242_v61  ;;  %v559_v56 = vadd.f32 %v6299_v54, %v5277_v63  ;;  %v553_v45 = vpop.f32.mrb[31].mxu0 }
 0x11f   :  { %v554_v55 = vadd.f32 %v5277_v63, %v553_v45 }
 0x121   :  { %6382 = vmatmul.mubr.msk.f32.gmra.mrb[38].mxu0 %vm570_vm1, %v247_v62  ;;  %v8114_v53 = vpack.c.bf16 %v559_v56, %v554_v55  ;;  %v564_v62 = vld [vmem:[%s10226_s7 + $0x10] sm:$0xff] }
 0x122   :  { %6420 = vmatprep.mubr.msk.f32.mxu0 %vm56_vm0, %v7806_v5 }
 0x1d8   :  { %v6318_v58 = vpop.f32.mrb[16].mxu1 }
 0x1d9   :  { %v685_v60 = vpop.f32.mrb[17].mxu1  ;;  %v8127_v63 = vadd.f32 %v6318_v58, %v563_v59 }
 0x1da   :  { %v8122_v61 = vadd.f32 %v685_v60, %v562_v57 }
 0x1db   :  { %v728_v9 = vsel %vm724_vm3, %v8127_v63, -inf }
 0x1dc   :  { %v6321_v0 = vpop.f32.mrb[18].mxu1  ;;  %v725_v1 = vsel %vm724_vm3, %v8122_v61, -inf }
 0x1dd   :  { %v695_v3 = vpop.f32.mrb[19].mxu1  ;;  %726 = vmax.xlane.f32.xlu0 %v725_v1  ;;  %v8139_v42 = vadd.f32 %v6321_v0, %v565_v2 }
 0x1de   :  { %v8134_v4 = vadd.f32 %v695_v3, %v564_v62 }
 0x1df   :  { %v734_v31 = vsel %vm724_vm3, %v8139_v42, -inf }
 0x1e0   :  { %v6324_v7 = vpop.f32.mrb[20].mxu1  ;;  %v731_v8 = vsel %vm724_vm3, %v8134_v4, -inf }
 0x1e1   :  { %v705_v11 = vpop.f32.mrb[21].mxu1  ;;  %732 = vmax.xlane.f32.xlu1 %v731_v8  ;;  %729 = vmax.xlane.f32.xlu0 %v728_v9  ;;  %v8153_v15 = vadd.f32 %v6324_v7, %v567_v10 }
 0x1e2   :  { %v8148_v12 = vadd.f32 %v705_v11, %v566_v6  ;;  %v5343_v11 = vld [vmem:[%s10221_s1 + $0x28] sm:$0xff] }
 0x1e3   :  { %v740_v40 = vsel %vm724_vm3, %v8153_v15, -inf }
 0x1e4   :  { %v6327_v17 = vpop.f32.mrb[22].mxu1  ;;  %v737_v32 = vsel %vm724_vm3, %v8148_v12, -inf }
 0x1e5   :  { %v715_v35 = vpop.f32.mrb[23].mxu1  ;;  %735 = vmax.xlane.f32.xlu1 %v734_v31  ;;  %738 = vmax.xlane.f32.xlu0 %v737_v32  ;;  %v8164_v37 = vadd.f32 %v6327_v17, %v569_v33  ;;  %v5344_v17 = vld [vmem:[%s10221_s1 + $0x30] sm:$0xff]  ;;  %v5345_v31 = vld [vmem:[%s10221_s1 + $0x38] sm:$0xff] }
 0x1e6   :  { %v8162_v36 = vadd.f32 %v715_v35, %v568_v14  ;;  %v7144_v32 = vpack.c.bf16 %v5345_v31, %v5344_v17 }
 0x1e7   :  { %v746_v50 = vsel %vm724_vm3, %v8164_v37, -inf }
 0x1e8   :  { %v6374_v38 = vpop.f32.mrb[32].mxu0  ;;  %v743_v43 = vsel %vm724_vm3, %v8162_v36, -inf }
 0x1e9   :  { %v1056_v44 = vpop.f32.mrb[33].mxu0  ;;  %741 = vmax.xlane.f32.xlu1 %v740_v40  ;;  %744 = vmax.xlane.f32.xlu0 %v743_v43  ;;  %v8172_v47 = vadd.f32 %v6374_v38, %v563_v59 }
 0x1ea   :  { %v8170_v46 = vadd.f32 %v1056_v44, %v562_v57 }
 0x1eb   :  { %v1098_v55 = vsel %vm724_vm3, %v8172_v47, -inf }
 0x1ec   :  { %v6377_v49 = vpop.f32.mrb[34].mxu0  ;;  %v1095_v51 = vsel %vm724_vm3, %v8170_v46, -inf }
 0x1ed   :  { %v1066_v52 = vpop.f32.mrb[35].mxu0  ;;  %747 = vmax.xlane.f32.xlu1 %v746_v50  ;;  %1096 = vmax.xlane.f32.xlu0 %v1095_v51  ;;  %v8180_v56 = vadd.f32 %v6377_v49, %v565_v2 }
 0x1ee   :  { %v8178_v54 = vadd.f32 %v1066_v52, %v564_v62 }
 0x1ef   :  { %v1104_v62 = vsel %vm724_vm3, %v8180_v56, -inf }
 0x1f0   :  { %v6380_v45 = vpop.f32.mrb[36].mxu0  ;;  %v1101_v57 = vsel %vm724_vm3, %v8178_v54, -inf }
 0x1f1   :  { %v1076_v58 = vpop.f32.mrb[37].mxu0  ;;  %1099 = vmax.xlane.f32.xlu1 %v1098_v55  ;;  %1102 = vmax.xlane.f32.xlu0 %v1101_v57  ;;  %v8188_v60 = vadd.f32 %v6380_v45, %v567_v10  ;;  %v5342_v10 = vld [vmem:[%s10221_s1 + $0x20] sm:$0xff] }
 0x1f2   :  { %v8186_v59 = vadd.f32 %v1076_v58, %v566_v6 }
 0x1f3   :  { %v1110_v6 = vsel %vm724_vm3, %v8188_v60, -inf }
 0x1f4   :  { %v6383_v0 = vpop.f32.mrb[38].mxu0  ;;  %v1107_v1 = vsel %vm724_vm3, %v8186_v59, -inf }
 0x1f5   :  { %v1086_v2 = vpop.f32.mrb[39].mxu0  ;;  %1105 = vmax.xlane.f32.xlu1 %v1104_v62  ;;  %1108 = vmax.xlane.f32.xlu0 %v1107_v1  ;;  %v8196_v7 = vadd.f32 %v6383_v0, %v569_v33 }
 0x1f6   :  { %v8194_v3 = vadd.f32 %v1086_v2, %v568_v14  ;;  %v7140_v14 = vpack.c.bf16 %v5343_v11, %v5342_v10 }
 0x1f7   :  { %v1116_v9 = vsel %vm724_vm3, %v8196_v7, -inf }
 0x1f8   :  { %v1113_v8 = vsel %vm724_vm3, %v8194_v3, -inf  ;;  %7141 = vmatprep.subr.bf16.mxu0 %v7140_v14 }
 0x1f9   :  { %1111 = vmax.xlane.f32.xlu1 %v1110_v6  ;;  %1114 = vmax.xlane.f32.xlu0 %v1113_v8 }
 0x1fa   :  { %7143 = vmatpush3.bf16.msra.mxu0 %v7140_v14 }
 0x1fb   :  { %7145 = vmatprep.subr.bf16.mxu0 %v7144_v32 }
 0x1fd   :  { %1117 = vmax.xlane.f32.xlu1 %v1116_v9 }
 0x1fe   :  { %7147 = vmatpush3.bf16.msra.mxu0 %v7144_v32 }
 0x201   :  { %6421 = vmatmul.mubr.msk.f32.vlgmr.msra.gmra.mrb[40].mxu0 %vm56_vm0, %v7827_v13 }
 0x202   :  { %6423 = vmatprep.mubr.msk.f32.mxu0 %vm56_vm0, %v7838_v16 }
 0x205   :  { %6424 = vmatmul.mubr.msk.f32.gmra.mrb[42].mxu0 %vm56_vm0, %v7847_v18 }
 0x206   :  { %6426 = vmatprep.mubr.msk.f32.mxu0 %vm56_vm0, %v7852_v19 }
 0x209   :  { %6427 = vmatmul.mubr.msk.f32.gmra.mrb[44].mxu0 %vm56_vm0, %v7861_v20 }
 0x20a   :  { %6429 = vmatprep.mubr.msk.f32.mxu0 %vm56_vm0, %v7868_v21 }
 0x20d   :  { %6430 = vmatmul.mubr.msk.f32.gmra.mrb[46].mxu0 %vm56_vm0, %v7879_v22 }
 0x20e   :  { %6432 = vmatprep.mubr.msk.f32.mxu0 %vm56_vm0, %v7886_v23 }
 0x211   :  { %6433 = vmatmul.mubr.msk.f32.gmra.mrb[48].mxu0 %vm56_vm0, %v7897_v24 }
 0x212   :  { %6435 = vmatprep.mubr.msk.f32.mxu0 %vm56_vm0, %v7904_v25 }
 0x215   :  { %6436 = vmatmul.mubr.msk.f32.gmra.mrb[50].mxu0 %vm56_vm0, %v7915_v26 }
 0x216   :  { %6438 = vmatprep.mubr.msk.f32.mxu0 %vm56_vm0, %v7922_v27 }
 0x219   :  { %6439 = vmatmul.mubr.msk.f32.gmra.mrb[52].mxu0 %vm56_vm0, %v7933_v28 }
 0x21a   :  { %6441 = vmatprep.mubr.msk.f32.mxu0 %vm56_vm0, %v7940_v29 }
 0x21d   :  { %6442 = vmatmul.mubr.msk.f32.gmra.mrb[54].mxu0 %vm56_vm0, %v7951_v30 }
 0x21e   :  { %6484 = vmatprep.mubr.msk.f32.mxu0 %vm56_vm0, %v7806_v5 }
 0x26a   :  { %v727_v33 = vpop.xlane.xlu0 %726 }
 0x26b   :  { %v749_v35 = vsub.f32 %v8122_v61, %v727_v33 }
 0x26d   :  { %v757_v38 = vmul.f32 1.442695, %v749_v35 }
 0x26e   :  { %v733_v40 = vpop.xlane.xlu1 %732  ;;  %v730_v43 = vpop.xlane.xlu0 %729 }
 0x26f   :  { %7455 = vpow2.f32 %v757_v38  ;;  %v751_v44 = vsub.f32 %v8134_v4, %v733_v40  ;;  %v750_v49 = vsub.f32 %v8127_v63, %v730_v43 }
 0x271   :  { %v761_v50 = vmul.f32 1.442695, %v751_v44  ;;  %v759_v51 = vmul.f32 1.442695, %v750_v49 }
 0x272   :  { %v736_v52 = vpop.xlane.xlu1 %735  ;;  %v739_v45 = vpop.xlane.xlu0 %738 }
 0x273   :  { %7457 = vpow2.f32 %v761_v50  ;;  %v752_v55 = vsub.f32 %v8139_v42, %v736_v52  ;;  %v753_v57 = vsub.f32 %v8148_v12, %v739_v45 }
 0x274   :  { %7459 = vpow2.f32 %v759_v51 }
 0x275   :  { %v763_v58 = vmul.f32 1.442695, %v752_v55  ;;  %v765_v61 = vmul.f32 1.442695, %v753_v57 }
 0x276   :  { %v742_v0 = vpop.xlane.xlu1 %741  ;;  %v745_v62 = vpop.xlane.xlu0 %744 }
 0x277   :  { %7461 = vpow2.f32 %v763_v58  ;;  %v754_v1 = vsub.f32 %v8153_v15, %v742_v0  ;;  %v755_v4 = vsub.f32 %v8162_v36, %v745_v62 }
 0x278   :  { %7463 = vpow2.f32 %v765_v61 }
 0x279   :  { %v8255_v63 = vpop.eup %7455  ;;  %v767_v2 = vmul.f32 1.442695, %v754_v1  ;;  %v769_v6 = vmul.f32 1.442695, %v755_v4 }
 0x27a   :  { %v748_v8 = vpop.xlane.xlu1 %747  ;;  %6344 = vmatprep.mubr.msk.f32.mxu1 %vm724_vm3, %v8255_v63  ;;  %v1097_v42 = vpop.xlane.xlu0 %1096 }
 0x27b   :  { %7465 = vpow2.f32 %v767_v2  ;;  %v756_v12 = vsub.f32 %v8164_v37, %v748_v8  ;;  %v1119_v9 = vsub.f32 %v8170_v46, %v1097_v42 }
 0x27c   :  { %7467 = vpow2.f32 %v769_v6 }
 0x27d   :  { %v8261_v10 = vpop.eup %7457  ;;  %v771_v15 = vmul.f32 1.442695, %v756_v12  ;;  %v1127_v36 = vmul.f32 1.442695, %v1119_v9  ;;  %v5387_v12 = vld [vmem:[%s10222_s5 + $0x28] sm:$0xff] }
 0x27e   :  { %v8263_v11 = vpop.eup %7459  ;;  %v1100_v14 = vpop.xlane.xlu1 %1099 }
 0x27f   :  { %v1103_v17 = vpop.xlane.xlu0 %1102  ;;  %7469 = vpow2.f32 %v771_v15  ;;  %v1120_v31 = vsub.f32 %v8172_v47, %v1100_v14  ;;  %6345 = vmatmul.mubr.msk.f32.vlgmr.msra.gmra.mrb[24].mxu1 %vm724_vm3, %v8263_v11  ;;  %v5388_v15 = vld [vmem:[%s10222_s5 + $0x30] sm:$0xff] }
 0x280   :  { %v1121_v32 = vsub.f32 %v8178_v54, %v1103_v17  ;;  %7471 = vpow2.f32 %v1127_v36  ;;  %7127 = vmatpush3.bf16.msra.mxu1 %v8107_v41  ;;  %6347 = vmatprep.mubr.msk.f32.mxu1 %vm724_vm3, %v8261_v10  ;;  %v5389_v36 = vld [vmem:[%s10222_s5 + $0x38] sm:$0xff] }
 0x281   :  { %v8272_v37 = vpop.eup %7461  ;;  %v1129_v46 = vmul.f32 1.442695, %v1120_v31  ;;  %7129 = vmatprep.subr.bf16.mxu1 %v8110_v48  ;;  %v7160_v14 = vpack.c.bf16 %v5389_v36, %v5388_v15 }
 0x282   :  { %v1131_v33 = vmul.f32 1.442695, %v1121_v32  ;;  %v8275_v35 = vpop.eup %7463  ;;  %v1106_v47 = vpop.xlane.xlu1 %1105 }
 0x283   :  { %v1109_v38 = vpop.xlane.xlu0 %1108  ;;  %7473 = vpow2.f32 %v1129_v46  ;;  %v1122_v40 = vsub.f32 %v8180_v56, %v1106_v47  ;;  %6348 = vmatmul.mubr.msk.f32.gmra.mrb[26].mxu1 %vm724_vm3, %v8272_v37 }
 0x284   :  { %v1123_v41 = vsub.f32 %v8186_v59, %v1109_v38  ;;  %7475 = vpow2.f32 %v1131_v33  ;;  %7131 = vmatpush3.bf16.msra.mxu1 %v8110_v48  ;;  %6350 = vmatprep.mubr.msk.f32.mxu1 %vm724_vm3, %v8275_v35  ;;  %v5364_v59 = vld [vmem:[%s10219_s3 + $0x20] sm:$0xff]  ;;  %v5365_v48 = vld [vmem:[%s10219_s3 + $0x28] sm:$0xff] }
 0x285   :  { %v8284_v54 = vpop.eup %7465  ;;  %v1133_v43 = vmul.f32 1.442695, %v1122_v40  ;;  %7133 = vmatprep.subr.bf16.mxu1 %v8112_v34  ;;  %v7148_v58 = vpack.c.bf16 %v5365_v48, %v5364_v59 }
 0x286   :  { %v1135_v44 = vmul.f32 1.442695, %v1123_v41  ;;  %v8287_v49 = vpop.eup %7467  ;;  %v1112_v56 = vpop.xlane.xlu1 %1111 }
 0x287   :  { %v1115_v50 = vpop.xlane.xlu0 %1114  ;;  %7477 = vpow2.f32 %v1133_v43  ;;  %v1124_v51 = vsub.f32 %v8188_v60, %v1112_v56  ;;  %6351 = vmatmul.mubr.msk.f32.gmra.mrb[28].mxu1 %vm724_vm3, %v8284_v54 }
 0x288   :  { %v1125_v52 = vsub.f32 %v8194_v3, %v1115_v50  ;;  %7479 = vpow2.f32 %v1135_v44  ;;  %7135 = vmatpush3.bf16.msra.mxu1 %v8112_v34  ;;  %6353 = vmatprep.mubr.msk.f32.mxu1 %vm724_vm3, %v8287_v49  ;;  %v5366_v3 = vld [vmem:[%s10219_s3 + $0x30] sm:$0xff]  ;;  %v5367_v34 = vld [vmem:[%s10219_s3 + $0x38] sm:$0xff] }
 0x289   :  { %v8302_v45 = vpop.eup %7469  ;;  %v1137_v55 = vmul.f32 1.442695, %v1124_v51  ;;  %7137 = vmatprep.subr.bf16.mxu1 %v8114_v53  ;;  %v7152_v4 = vpack.c.bf16 %v5367_v34, %v5366_v3 }
 0x28a   :  { %v1139_v57 = vmul.f32 1.442695, %v1125_v52  ;;  %v8305_v61 = vpop.eup %7471  ;;  %v1118_v60 = vpop.xlane.xlu1 %1117 }
 0x28b   :  { %7481 = vpow2.f32 %v1137_v55  ;;  %v1126_v0 = vsub.f32 %v8196_v7, %v1118_v60  ;;  %6354 = vmatmul.mubr.msk.f32.gmra.mrb[30].mxu1 %vm724_vm3, %v8302_v45 }
 0x28c   :  { %7483 = vpow2.f32 %v1139_v57  ;;  %7139 = vmatpush3.bf16.msra.mxu1 %v8114_v53  ;;  %6400 = vmatprep.mubr.msk.f32.mxu1 %vm724_vm3, %v8305_v61 }
 0x28d   :  { %v8319_v62 = vpop.eup %7473  ;;  %v1141_v1 = vmul.f32 1.442695, %v1126_v0  ;;  %7149 = vmatprep.subr.bf16.mxu1 %v7148_v58 }
 0x28e   :  { %v8321_v2 = vpop.eup %7475 }
 0x28f   :  { %7485 = vpow2.f32 %v1141_v1  ;;  %6401 = vmatmul.mubr.msk.f32.vlgmr.msra.gmra.mrb[32].mxu1 %vm724_vm3, %v8319_v62 }
 0x290   :  { %6403 = vmatprep.mubr.msk.f32.mxu1 %vm724_vm3, %v8321_v2  ;;  %7151 = vmatpush3.bf16.msra.mxu1 %v7148_v58 }
 0x291   :  { %v8327_v7 = vpop.eup %7477  ;;  %7153 = vmatprep.subr.bf16.mxu1 %v7152_v4 }
 0x292   :  { %v8329_v53 = vpop.eup %7479 }
 0x293   :  { %10247 = vst [vmem:[#allocation2_spill] sm:$0xff] %v8329_v53  ;;  %6404 = vmatmul.mubr.msk.f32.gmra.mrb[34].mxu1 %vm724_vm3, %v8327_v7 }
 0x294   :  { %6406 = vmatprep.mubr.msk.f32.mxu1 %vm724_vm3, %v8329_v53  ;;  %7155 = vmatpush3.bf16.msra.mxu1 %v7152_v4 }
 0x295   :  { %v8335_v6 = vpop.eup %7481 }
 0x296   :  { %10248 = vst [vmem:[#allocation3_spill] sm:$0xff] %v8335_v6  ;;  %v8337_v8 = vpop.eup %7483 }
 0x297   :  { %10249 = vst [vmem:[#allocation4_spill] sm:$0xff] %v8337_v8  ;;  %6407 = vmatmul.mubr.msk.f32.gmra.mrb[36].mxu1 %vm724_vm3, %v8335_v6 }
 0x298   :  { %6409 = vmatprep.mubr.msk.f32.mxu1 %vm724_vm3, %v8337_v8 }
 0x299   :  { %v8343_v42 = vpop.eup %7485 }
 0x29a   :  { %10250 = vst [vmem:[#allocation5_spill] sm:$0xff] %v8343_v42 }
 0x29b   :  { %6410 = vmatmul.mubr.msk.f32.gmra.mrb[38].mxu1 %vm724_vm3, %v8343_v42 }
 0x29c   :  { %6452 = vmatprep.mubr.msk.f32.mxu1 %vm56_vm0, %v7806_v5  ;;  %v5386_v5 = vld [vmem:[%s10222_s5 + $0x20] sm:$0xff] }
 0x29d   :  { %v7156_v9 = vpack.c.bf16 %v5387_v12, %v5386_v5 }
 0x29f   :  { %6453 = vmatmul.mubr.msk.f32.vlgmr.msra.gmra.mrb[40].mxu1 %vm56_vm0, %v7827_v13  ;;  %7157 = vmatprep.subr.bf16.mxu0 %v7156_v9 }
 0x2a0   :  { %6455 = vmatprep.mubr.msk.f32.mxu1 %vm56_vm0, %v7838_v16  ;;  %7159 = vmatpush3.bf16.msra.mxu0 %v7156_v9 }
 0x2a1   :  { %7161 = vmatprep.subr.bf16.mxu0 %v7160_v14 }
 0x2a3   :  { %6456 = vmatmul.mubr.msk.f32.gmra.mrb[42].mxu1 %vm56_vm0, %v7847_v18 }
 0x2a4   :  { %6458 = vmatprep.mubr.msk.f32.mxu1 %vm56_vm0, %v7852_v19  ;;  %7163 = vmatpush3.bf16.msra.mxu0 %v7160_v14 }
 0x2a7   :  { %6459 = vmatmul.mubr.msk.f32.gmra.mrb[44].mxu1 %vm56_vm0, %v7861_v20  ;;  %6485 = vmatmul.mubr.msk.f32.vlgmr.msra.gmra.mrb[56].mxu0 %vm56_vm0, %v7827_v13 }
 0x2a8   :  { %6461 = vmatprep.mubr.msk.f32.mxu1 %vm56_vm0, %v7868_v21  ;;  %6487 = vmatprep.mubr.msk.f32.mxu0 %vm56_vm0, %v7838_v16  ;;  %v5347_v16 = vld [vmem:[%s10224_s2 + $0x1] ss:$0 sm:$0xff] }
 0x2ab   :  { %6462 = vmatmul.mubr.msk.f32.gmra.mrb[46].mxu1 %vm56_vm0, %v7879_v22  ;;  %6488 = vmatmul.mubr.msk.f32.gmra.mrb[58].mxu0 %vm56_vm0, %v7847_v18 }
 0x2ac   :  { %6464 = vmatprep.mubr.msk.f32.mxu1 %vm56_vm0, %v7886_v23  ;;  %6490 = vmatprep.mubr.msk.f32.mxu0 %vm56_vm0, %v7852_v19 }
 0x2af   :  { %6465 = vmatmul.mubr.msk.f32.gmra.mrb[48].mxu1 %vm56_vm0, %v7897_v24  ;;  %6491 = vmatmul.mubr.msk.f32.gmra.mrb[60].mxu0 %vm56_vm0, %v7861_v20 }
 0x2b0   :  { %6467 = vmatprep.mubr.msk.f32.mxu1 %vm56_vm0, %v7904_v25  ;;  %6493 = vmatprep.mubr.msk.f32.mxu0 %vm56_vm0, %v7868_v21 }
 0x2b3   :  { %6468 = vmatmul.mubr.msk.f32.gmra.mrb[50].mxu1 %vm56_vm0, %v7915_v26  ;;  %6494 = vmatmul.mubr.msk.f32.gmra.mrb[62].mxu0 %vm56_vm0, %v7879_v22 }
 0x2b4   :  { %6470 = vmatprep.mubr.msk.f32.mxu1 %vm56_vm0, %v7922_v27  ;;  %6496 = vmatprep.mubr.msk.f32.mxu0 %vm56_vm0, %v7886_v23 }
 0x2b7   :  { %6471 = vmatmul.mubr.msk.f32.gmra.mrb[52].mxu1 %vm56_vm0, %v7933_v28  ;;  %6497 = vmatmul.mubr.msk.f32.gmra.mrb[64].mxu0 %vm56_vm0, %v7897_v24 }
 0x2b8   :  { %6473 = vmatprep.mubr.msk.f32.mxu1 %vm56_vm0, %v7940_v29  ;;  %6499 = vmatprep.mubr.msk.f32.mxu0 %vm56_vm0, %v7904_v25 }
 0x2bb   :  { %6474 = vmatmul.mubr.msk.f32.gmra.mrb[54].mxu1 %vm56_vm0, %v7951_v30  ;;  %6500 = vmatmul.mubr.msk.f32.gmra.mrb[66].mxu0 %vm56_vm0, %v7915_v26 }
 0x2bc   :  { %6502 = vmatprep.mubr.msk.f32.mxu0 %vm56_vm0, %v7922_v27 }
 0x2bf   :  { %6503 = vmatmul.mubr.msk.f32.gmra.mrb[68].mxu0 %vm56_vm0, %v7933_v28 }
 0x2c0   :  { %6505 = vmatprep.mubr.msk.f32.mxu0 %vm56_vm0, %v7940_v29 }
 0x2c3   :  { %6506 = vmatmul.mubr.msk.f32.gmra.mrb[70].mxu0 %vm56_vm0, %v7951_v30 }
 0x2d4   :  { %v6422_v13 = vpop.f32.mrb[40].mxu0 }
 0x2d5   :  { %v8412_v18 = vadd.f32 %v6422_v13, %v5347_v16  ;;  %v1391_v19 = vpop.f32.mrb[41].mxu0 }
 0x2d6   :  { %v1392_v20 = vadd.f32 %v5347_v16, %v1391_v19  ;;  %v5369_v19 = vld [vmem:[%s10223_s4 + $0x1] ss:$0 sm:$0xff] }
 0x2d8   :  { %v6425_v21 = vpop.f32.mrb[42].mxu0  ;;  %6524 = vmatprep.mubr.msk.f32.mxu1 %vm570_vm1, %v1392_v20 }
 0x2d9   :  { %v8416_v22 = vadd.f32 %v6425_v21, %v5347_v16  ;;  %v1401_v17 = vpop.f32.mrb[43].mxu0 }
 0x2da   :  { %v8419_v23 = vadd.f32 %v5347_v16, %v1401_v17 }
 0x2dc   :  { %v6428_v24 = vpop.f32.mrb[44].mxu0 }
 0x2dd   :  { %v8427_v25 = vadd.f32 %v6428_v24, %v5347_v16  ;;  %v1411_v31 = vpop.f32.mrb[45].mxu0 }
 0x2de   :  { %v8431_v32 = vadd.f32 %v5347_v16, %v1411_v31 }
 0x2e0   :  { %v6431_v46 = vpop.f32.mrb[46].mxu0 }
 0x2e1   :  { %v8433_v33 = vadd.f32 %v6431_v46, %v5347_v16  ;;  %v1421_v47 = vpop.f32.mrb[47].mxu0 }
 0x2e2   :  { %v8437_v26 = vadd.f32 %v5347_v16, %v1421_v47 }
 0x2e4   :  { %v6434_v27 = vpop.f32.mrb[48].mxu0 }
 0x2e5   :  { %v8439_v38 = vadd.f32 %v6434_v27, %v5347_v16  ;;  %v1431_v28 = vpop.f32.mrb[49].mxu0 }
 0x2e6   :  { %v1432_v40 = vadd.f32 %v5347_v16, %v1431_v28 }
 0x2e8   :  { %v6437_v41 = vpop.f32.mrb[50].mxu0  ;;  %6580 = vmatprep.mubr.msk.f32.mxu0 %vm570_vm1, %v1432_v40 }
 0x2e9   :  { %v8441_v43 = vadd.f32 %v6437_v41, %v5347_v16  ;;  %v1441_v29 = vpop.f32.mrb[51].mxu0 }
 0x2ea   :  { %v8444_v44 = vadd.f32 %v5347_v16, %v1441_v29 }
 0x2ec   :  { %v6440_v56 = vpop.f32.mrb[52].mxu0 }
 0x2ed   :  { %v8446_v50 = vadd.f32 %v6440_v56, %v5347_v16  ;;  %v1451_v59 = vpop.f32.mrb[53].mxu0 }
 0x2ee   :  { %v8448_v30 = vadd.f32 %v5347_v16, %v1451_v59 }
 0x2f0   :  { %v6443_v48 = vpop.f32.mrb[54].mxu0 }
 0x2f1   :  { %v8450_v51 = vadd.f32 %v6443_v48, %v5347_v16  ;;  %v1461_v52 = vpop.f32.mrb[55].mxu0 }
 0x2f2   :  { %v8452_v55 = vadd.f32 %v5347_v16, %v1461_v52 }
 0x352   :  { %v8454_v57 = vpop.f32.mrb[24].mxu1 }
 0x353   :  { %10251 = vst [vmem:[#allocation6_spill] sm:$0xff] %v8454_v57  ;;  %v8456_v58 = vpop.f32.mrb[25].mxu1 }
 0x354   :  { %10252 = vst [vmem:[#allocation7_spill] sm:$0xff] %v8456_v58 }
 0x356   :  { %v8458_v60 = vpop.f32.mrb[26].mxu1 }
 0x357   :  { %10253 = vst [vmem:[#allocation8_spill] sm:$0xff] %v8458_v60  ;;  %v8460_v3 = vpop.f32.mrb[27].mxu1 }
 0x358   :  { %10254 = vst [vmem:[#allocation9_spill] sm:$0xff] %v8460_v3 }
 0x35a   :  { %v8462_v34 = vpop.f32.mrb[28].mxu1 }
 0x35b   :  { %10255 = vst [vmem:[#allocation10_spill] sm:$0xff] %v8462_v34  ;;  %v8464_v0 = vpop.f32.mrb[29].mxu1 }
 0x35c   :  { %10256 = vst [vmem:[#allocation11_spill] sm:$0xff] %v8464_v0 }
 0x35e   :  { %v8466_v1 = vpop.f32.mrb[30].mxu1 }
 0x35f   :  { %10257 = vst [vmem:[#allocation12_spill] sm:$0xff] %v8466_v1  ;;  %v8468_v4 = vpop.f32.mrb[31].mxu1 }
 0x360   :  { %10258 = vst [vmem:[#allocation13_spill] sm:$0xff] %v8468_v4 }
 0x362   :  { %v8470_v5 = vpop.f32.mrb[32].mxu1 }
 0x363   :  { %10259 = vst [vmem:[#allocation14_spill] sm:$0xff] %v8470_v5  ;;  %v8472_v12 = vpop.f32.mrb[33].mxu1 }
 0x364   :  { %10260 = vst [vmem:[#allocation15_spill] sm:$0xff] %v8472_v12  ;;  %v8769_v12 = vld [vmem:[%s10220_s0 + $0x78] sm:$0xff] }
 0x366   :  { %v8474_v9 = vpop.f32.mrb[34].mxu1 }
 0x367   :  { %10261 = vst [vmem:[#allocation16_spill] sm:$0xff] %v8474_v9  ;;  %v8476_v15 = vpop.f32.mrb[35].mxu1  ;;  %v8755_v9 = vld [vmem:[%s10220_s0 + $0x68] sm:$0xff] }
 0x368   :  { %10262 = vst [vmem:[#allocation17_spill] sm:$0xff] %v8476_v15  ;;  %v8762_v15 = vld [vmem:[%s10220_s0 + $0x70] sm:$0xff] }
 0x36a   :  { %v8478_v36 = vpop.f32.mrb[36].mxu1 }
 0x36b   :  { %10263 = vst [vmem:[#allocation18_spill] sm:$0xff] %v8478_v36  ;;  %v8480_v14 = vpop.f32.mrb[37].mxu1  ;;  %v8748_v36 = vld [vmem:[%s10220_s0 + $0x60] sm:$0xff] }
 0x36c   :  { %10264 = vst [vmem:[#allocation19_spill] sm:$0xff] %v8480_v14 }
 0x36e   :  { %v8482_v13 = vpop.f32.mrb[38].mxu1 }
 0x36f   :  { %10265 = vst [vmem:[#allocation20_spill] sm:$0xff] %v8482_v13  ;;  %v8484_v16 = vpop.f32.mrb[39].mxu1 }
 0x370   :  { %10266 = vst [vmem:[#allocation21_spill] sm:$0xff] %v8484_v16 }
 0x372   :  { %v6454_v20 = vpop.f32.mrb[40].mxu1 }
 0x373   :  { %v1555_v21 = vadd.f32 %v6454_v20, %v5369_v19  ;;  %v1549_v17 = vpop.f32.mrb[41].mxu1 }
 0x374   :  { %v1550_v24 = vadd.f32 %v5369_v19, %v1549_v17 }
 0x376   :  { %v7164_v31 = vpack.c.bf16 %v1555_v21, %v1550_v24  ;;  %v6457_v46 = vpop.f32.mrb[42].mxu1 }
 0x377   :  { %v1565_v47 = vadd.f32 %v6457_v46, %v5369_v19  ;;  %v1559_v27 = vpop.f32.mrb[43].mxu1 }
 0x378   :  { %v1560_v28 = vadd.f32 %v5369_v19, %v1559_v27  ;;  %7166 = vmatprep.subr.msk.bf16.mxu1 %vm8012_vm2, %v7164_v31 }
 0x379   :  { %7169 = vmatpush3.bf16.xpose.msk.msra.mxu1 %vm8012_vm2, %v7164_v31 }
 0x37a   :  { %v7170_v40 = vpack.c.bf16 %v1565_v47, %v1560_v28  ;;  %v6460_v41 = vpop.f32.mrb[44].mxu1 }
 0x37b   :  { %v1575_v29 = vadd.f32 %v6460_v41, %v5369_v19  ;;  %v1569_v56 = vpop.f32.mrb[45].mxu1 }
 0x37c   :  { %v1570_v59 = vadd.f32 %v5369_v19, %v1569_v56  ;;  %7172 = vmatprep.subr.msk.bf16.mxu1 %vm8012_vm2, %v7170_v40 }
 0x37e   :  { %v7176_v48 = vpack.c.bf16 %v1575_v29, %v1570_v59  ;;  %v6463_v52 = vpop.f32.mrb[46].mxu1 }
 0x37f   :  { %v1585_v20 = vadd.f32 %v6463_v52, %v5369_v19  ;;  %v1579_v21 = vpop.f32.mrb[47].mxu1 }
 0x380   :  { %v1580_v17 = vadd.f32 %v5369_v19, %v1579_v21 }
 0x381   :  { %7175 = vmatpush3.bf16.xpose.msk.msra.mxu1 %vm8012_vm2, %v7170_v40 }
 0x382   :  { %v7182_v24 = vpack.c.bf16 %v1585_v20, %v1580_v17  ;;  %v6466_v46 = vpop.f32.mrb[48].mxu1  ;;  %7178 = vmatprep.subr.msk.bf16.mxu1 %vm8012_vm2, %v7176_v48 }
 0x383   :  { %v1595_v31 = vadd.f32 %v6466_v46, %v5369_v19  ;;  %v1589_v47 = vpop.f32.mrb[49].mxu1 }
 0x384   :  { %v1590_v27 = vadd.f32 %v5369_v19, %v1589_v47 }
 0x386   :  { %v7204_v28 = vpack.c.bf16 %v1595_v31, %v1590_v27  ;;  %v6469_v41 = vpop.f32.mrb[50].mxu1 }
 0x387   :  { %v1605_v56 = vadd.f32 %v6469_v41, %v5369_v19  ;;  %v1599_v13 = vpop.f32.mrb[51].mxu1 }
 0x388   :  { %7206 = vmatprep.subr.msk.bf16.mxu0 %vm8012_vm2, %v7204_v28  ;;  %v1600_v29 = vadd.f32 %v5369_v19, %v1599_v13 }
 0x389   :  { %7181 = vmatpush3.bf16.xpose.msk.msra.mxu1 %vm8012_vm2, %v7176_v48  ;;  %7209 = vmatpush3.bf16.xpose.msk.msra.mxu0 %vm8012_vm2, %v7204_v28 }
 0x38a   :  { %v7210_v40 = vpack.c.bf16 %v1605_v56, %v1600_v29  ;;  %7184 = vmatprep.subr.msk.bf16.mxu1 %vm8012_vm2, %v7182_v24  ;;  %v6472_v59 = vpop.f32.mrb[52].mxu1 }
 0x38b   :  { %v1615_v52 = vadd.f32 %v6472_v59, %v5369_v19  ;;  %v1609_v20 = vpop.f32.mrb[53].mxu1 }
 0x38c   :  { %7212 = vmatprep.subr.msk.bf16.mxu0 %vm8012_vm2, %v7210_v40  ;;  %v1610_v21 = vadd.f32 %v5369_v19, %v1609_v20 }
 0x38e   :  { %v7216_v17 = vpack.c.bf16 %v1615_v52, %v1610_v21  ;;  %v6475_v46 = vpop.f32.mrb[54].mxu1 }
 0x38f   :  { %v1625_v13 = vadd.f32 %v6475_v46, %v5369_v19  ;;  %v1619_v31 = vpop.f32.mrb[55].mxu1 }
 0x390   :  { %v1620_v47 = vadd.f32 %v5369_v19, %v1619_v31 }
 0x391   :  { %7187 = vmatpush3.bf16.xpose.msk.msra.mxu1 %vm8012_vm2, %v7182_v24  ;;  %7215 = vmatpush3.bf16.xpose.msk.msra.mxu0 %vm8012_vm2, %v7210_v40 }
 0x392   :  { %7218 = vmatprep.subr.msk.bf16.mxu0 %vm8012_vm2, %v7216_v17  ;;  %v7222_v48 = vpack.c.bf16 %v1625_v13, %v1620_v47 }
 0x398   :  { %6525 = vmatmul.mubr.msk.f32.vlgmr.msra.gmra.mrb[56].mxu1 %vm570_vm1, %v8412_v18  ;;  %v8552_v18 = vld [vmem:[%s10220_s0] sm:$0xff] }
 0x399   :  { %7221 = vmatpush3.bf16.xpose.msk.msra.mxu0 %vm8012_vm2, %v7216_v17  ;;  %6527 = vmatprep.mubr.msk.f32.mxu1 %vm570_vm1, %v8419_v23  ;;  %v6486_v23 = vpop.f32.mrb[56].mxu0 }
 0x39a   :  { %7224 = vmatprep.subr.msk.bf16.mxu0 %vm8012_vm2, %v7222_v48 }
 0x39c   :  { %6528 = vmatmul.mubr.msk.f32.gmra.mrb[58].mxu1 %vm570_vm1, %v8416_v22  ;;  %v5391_v22 = vld [vmem:[%s10225_s6 + $0x1] ss:$0 sm:$0xff] }
 0x39d   :  { %6530 = vmatprep.mubr.msk.f32.mxu1 %vm570_vm1, %v8431_v32  ;;  %v1707_v32 = vpop.f32.mrb[57].mxu0 }
 0x3a0   :  { %6531 = vmatmul.mubr.msk.f32.gmra.mrb[60].mxu1 %vm570_vm1, %v8427_v25  ;;  %v1713_v25 = vadd.f32 %v6486_v23, %v5391_v22 }
 0x3a1   :  { %7227 = vmatpush3.bf16.xpose.msk.msra.mxu0 %vm8012_vm2, %v7222_v48  ;;  %6533 = vmatprep.mubr.msk.f32.mxu1 %vm570_vm1, %v8437_v26 }
 0x3a4   :  { %6534 = vmatmul.mubr.msk.f32.gmra.mrb[62].mxu1 %vm570_vm1, %v8433_v33  ;;  %v1708_v33 = vadd.f32 %v5391_v22, %v1707_v32 }
 0x3a6   :  { %v7188_v26 = vpack.c.bf16 %v1713_v25, %v1708_v33 }
 0x3a8   :  { %6581 = vmatmul.mubr.msk.f32.vlgmr.msra.gmra.mrb[72].mxu0 %vm570_vm1, %v8439_v38  ;;  %v6489_v38 = vpop.f32.mrb[58].mxu0  ;;  %7189 = vmatprep.subr.bf16.mxu1 %v7188_v26 }
 0x3a9   :  { %6583 = vmatprep.mubr.msk.f32.mxu0 %vm570_vm1, %v8444_v44  ;;  %v1717_v44 = vpop.f32.mrb[59].mxu0  ;;  %7191 = vmatpush3.bf16.msra.mxu1 %v7188_v26 }
 0x3ac   :  { %6584 = vmatmul.mubr.msk.f32.gmra.mrb[74].mxu0 %vm570_vm1, %v8441_v43  ;;  %v1723_v43 = vadd.f32 %v6489_v38, %v5391_v22 }
 0x3ad   :  { %6586 = vmatprep.mubr.msk.f32.mxu0 %vm570_vm1, %v8448_v30 }
 0x3b0   :  { %6587 = vmatmul.mubr.msk.f32.gmra.mrb[76].mxu0 %vm570_vm1, %v8446_v50  ;;  %v1718_v50 = vadd.f32 %v5391_v22, %v1717_v44 }
 0x3b1   :  { %6589 = vmatprep.mubr.msk.f32.mxu0 %vm570_vm1, %v8452_v55 }
 0x3b2   :  { %v7192_v30 = vpack.c.bf16 %v1723_v43, %v1718_v50 }
 0x3b4   :  { %6590 = vmatmul.mubr.msk.f32.gmra.mrb[78].mxu0 %vm570_vm1, %v8450_v51  ;;  %v6492_v51 = vpop.f32.mrb[60].mxu0  ;;  %7193 = vmatprep.subr.bf16.mxu1 %v7192_v30 }
 0x3b5   :  { %6628 = vmatprep.mubr.msk.f32.mxu0 %vm56_vm0, %v8552_v18  ;;  %v1733_v55 = vadd.f32 %v6492_v51, %v5391_v22  ;;  %v1727_v19 = vpop.f32.mrb[61].mxu0  ;;  %7195 = vmatpush3.bf16.msra.mxu1 %v7192_v30  ;;  %v5409_v51 = vld [vmem:[%s10226_s7 + $0x48] sm:$0xff] }
 0x3b6   :  { %v1728_v24 = vadd.f32 %v5391_v22, %v1727_v19  ;;  %v6495_v28 = vpop.f32.mrb[62].mxu0 }
 0x3b7   :  { %v1743_v41 = vadd.f32 %v6495_v28, %v5391_v22  ;;  %v1737_v56 = vpop.f32.mrb[63].mxu0 }
 0x3b8   :  { %v7196_v27 = vpack.c.bf16 %v1733_v55, %v1728_v24  ;;  %v1738_v29 = vadd.f32 %v5391_v22, %v1737_v56  ;;  %v6498_v59 = vpop.f32.mrb[64].mxu0  ;;  %v5408_v55 = vld [vmem:[%s10226_s7 + $0x40] sm:$0xff]  ;;  %v5410_v56 = vld [vmem:[%s10226_s7 + $0x50] sm:$0xff] }
 0x3b9   :  { %v1753_v52 = vadd.f32 %v6498_v59, %v5391_v22  ;;  %v1747_v20 = vpop.f32.mrb[65].mxu0 }
 0x3ba   :  { %7197 = vmatprep.subr.bf16.mxu1 %v7196_v27  ;;  %v7200_v40 = vpack.c.bf16 %v1743_v41, %v1738_v29  ;;  %v1748_v21 = vadd.f32 %v5391_v22, %v1747_v20  ;;  %v6501_v46 = vpop.f32.mrb[66].mxu0 }
 0x3bb   :  { %7199 = vmatpush3.bf16.msra.mxu1 %v7196_v27  ;;  %v1763_v13 = vadd.f32 %v6501_v46, %v5391_v22  ;;  %v1757_v31 = vpop.f32.mrb[67].mxu0 }
 0x3bc   :  { %7201 = vmatprep.subr.bf16.mxu1 %v7200_v40  ;;  %v8559_v17 = vpack.c.bf16 %v1753_v52, %v1748_v21  ;;  %v1758_v47 = vadd.f32 %v5391_v22, %v1757_v31  ;;  %v6504_v23 = vpop.f32.mrb[68].mxu0  ;;  %v5413_v21 = vld [vmem:[%s10226_s7 + $0x68] sm:$0xff] }
 0x3bd   :  { %v1773_v25 = vadd.f32 %v6504_v23, %v5391_v22  ;;  %v1767_v32 = vpop.f32.mrb[69].mxu0 }
 0x3be   :  { %v8562_v48 = vpack.c.bf16 %v1763_v13, %v1758_v47  ;;  %v1768_v33 = vadd.f32 %v5391_v22, %v1767_v32  ;;  %v6507_v38 = vpop.f32.mrb[70].mxu0  ;;  %v5412_v13 = vld [vmem:[%s10226_s7 + $0x60] sm:$0xff] }
 0x3bf   :  { %7203 = vmatpush3.bf16.msra.mxu1 %v7200_v40  ;;  %v1783_v43 = vadd.f32 %v6507_v38, %v5391_v22  ;;  %v1777_v44 = vpop.f32.mrb[71].mxu0 }
 0x3c0   :  { %7229 = vmatprep.subr.bf16.mxu1 %v8559_v17  ;;  %v8564_v26 = vpack.c.bf16 %v1773_v25, %v1768_v33  ;;  %v1778_v50 = vadd.f32 %v5391_v22, %v1777_v44  ;;  %v5411_v22 = vld [vmem:[%s10226_s7 + $0x58] sm:$0xff] }
 0x3c1   :  { %v5415_v33 = vld [vmem:[%s10226_s7 + $0x78] sm:$0xff] }
 0x3c2   :  { %v8566_v30 = vpack.c.bf16 %v1783_v43, %v1778_v50  ;;  %v5414_v43 = vld [vmem:[%s10226_s7 + $0x70] sm:$0xff] }
 0x46b   :  { %v6526_v19 = vpop.f32.mrb[56].mxu1 }
 0x46c   :  { %v8574_v24 = vadd.f32 %v6526_v19, %v5409_v51  ;;  %v1909_v27 = vpop.f32.mrb[57].mxu1 }
 0x46d   :  { %v8576_v28 = vadd.f32 %v5408_v55, %v1909_v27 }
 0x46e   :  { %v1951_v41 = vsel %vm724_vm3, %v8574_v24, -inf }
 0x46f   :  { %1952 = vmax.xlane.f32.xlu1 %v1951_v41  ;;  %v6529_v29 = vpop.f32.mrb[58].mxu1  ;;  %v1948_v40 = vsel %vm724_vm3, %v8576_v28, -inf }
 0x470   :  { %v8588_v59 = vadd.f32 %v6529_v29, %v5411_v22  ;;  %v1919_v52 = vpop.f32.mrb[59].mxu1  ;;  %1949 = vmax.xlane.f32.xlu0 %v1948_v40 }
 0x471   :  { %v8590_v20 = vadd.f32 %v5410_v56, %v1919_v52 }
 0x472   :  { %v1957_v46 = vsel %vm724_vm3, %v8588_v59, -inf }
 0x473   :  { %1958 = vmax.xlane.f32.xlu1 %v1957_v46  ;;  %v6532_v31 = vpop.f32.mrb[60].mxu1  ;;  %v1954_v47 = vsel %vm724_vm3, %v8590_v20, -inf }
 0x474   :  { %v8602_v23 = vadd.f32 %v6532_v31, %v5413_v21  ;;  %v1929_v25 = vpop.f32.mrb[61].mxu1  ;;  %1955 = vmax.xlane.f32.xlu0 %v1954_v47 }
 0x475   :  { %v8604_v32 = vadd.f32 %v5412_v13, %v1929_v25 }
 0x476   :  { %v1963_v38 = vsel %vm724_vm3, %v8602_v23, -inf }
 0x477   :  { %1964 = vmax.xlane.f32.xlu1 %v1963_v38  ;;  %v6535_v44 = vpop.f32.mrb[62].mxu1  ;;  %v1960_v50 = vsel %vm724_vm3, %v8604_v32, -inf }
 0x478   :  { %v8616_v19 = vadd.f32 %v6535_v44, %v5415_v33  ;;  %v1939_v27 = vpop.f32.mrb[63].mxu1  ;;  %1961 = vmax.xlane.f32.xlu0 %v1960_v50 }
 0x479   :  { %v8618_v41 = vadd.f32 %v5414_v43, %v1939_v27 }
 0x47a   :  { %v1969_v29 = vsel %vm724_vm3, %v8616_v19, -inf }
 0x47b   :  { %v6582_v40 = vpop.f32.mrb[72].mxu0  ;;  %1970 = vmax.xlane.f32.xlu1 %v1969_v29  ;;  %v1966_v52 = vsel %vm724_vm3, %v8618_v41, -inf }
 0x47c   :  { %v8624_v46 = vadd.f32 %v6582_v40, %v5409_v51  ;;  %v2279_v31 = vpop.f32.mrb[73].mxu0  ;;  %1967 = vmax.xlane.f32.xlu0 %v1966_v52 }
 0x47d   :  { %v8626_v47 = vadd.f32 %v5408_v55, %v2279_v31 }
 0x47e   :  { %v2321_v25 = vsel %vm724_vm3, %v8624_v46, -inf }
 0x47f   :  { %v6585_v38 = vpop.f32.mrb[74].mxu0  ;;  %2322 = vmax.xlane.f32.xlu1 %v2321_v25  ;;  %v2318_v44 = vsel %vm724_vm3, %v8626_v47, -inf }
 0x480   :  { %v8632_v50 = vadd.f32 %v6585_v38, %v5411_v22  ;;  %v2289_v27 = vpop.f32.mrb[75].mxu0  ;;  %2319 = vmax.xlane.f32.xlu0 %v2318_v44 }
 0x481   :  { %v8634_v29 = vadd.f32 %v5410_v56, %v2289_v27 }
 0x482   :  { %v2327_v51 = vsel %vm724_vm3, %v8632_v50, -inf }
 0x483   :  { %v6588_v40 = vpop.f32.mrb[76].mxu0  ;;  %2328 = vmax.xlane.f32.xlu1 %v2327_v51  ;;  %v2324_v55 = vsel %vm724_vm3, %v8634_v29, -inf }
 0x484   :  { %v8640_v52 = vadd.f32 %v6588_v40, %v5413_v21  ;;  %v2299_v31 = vpop.f32.mrb[77].mxu0  ;;  %2325 = vmax.xlane.f32.xlu0 %v2324_v55  ;;  %v5464_v40 = vld [vmem:[%s10221_s1 + $0x40] sm:$0xff] }
 0x485   :  { %v8642_v25 = vadd.f32 %v5412_v13, %v2299_v31  ;;  %v5467_v31 = vld [vmem:[%s10221_s1 + $0x58] sm:$0xff] }
 0x486   :  { %v2333_v22 = vsel %vm724_vm3, %v8640_v52, -inf }
 0x487   :  { %v6591_v38 = vpop.f32.mrb[78].mxu0  ;;  %2334 = vmax.xlane.f32.xlu1 %v2333_v22  ;;  %v2330_v56 = vsel %vm724_vm3, %v8642_v25, -inf }
 0x488   :  { %v8648_v44 = vadd.f32 %v6591_v38, %v5415_v33  ;;  %v2309_v27 = vpop.f32.mrb[79].mxu0  ;;  %2331 = vmax.xlane.f32.xlu0 %v2330_v56  ;;  %v5465_v33 = vld [vmem:[%s10221_s1 + $0x48] sm:$0xff]  ;;  %v8678_v56 = vld [vmem:[%s10220_s0 + $0x10] sm:$0xff] }
 0x489   :  { %v8650_v51 = vadd.f32 %v5414_v43, %v2309_v27  ;;  %v7244_v55 = vpack.c.bf16 %v5465_v33, %v5464_v40  ;;  %v5466_v43 = vld [vmem:[%s10221_s1 + $0x50] sm:$0xff]  ;;  %v8671_v38 = vld [vmem:[%s10220_s0 + $0x8] sm:$0xff]  ;;  %v8685_v27 = vld [vmem:[%s10220_s0 + $0x18] sm:$0xff] }
 0x48a   :  { %v2339_v21 = vsel %vm724_vm3, %v8648_v44, -inf  ;;  %v7248_v22 = vpack.c.bf16 %v5467_v31, %v5466_v43  ;;  %v8706_v40 = vld [vmem:[%s10220_s0 + $0x30] sm:$0xff]  ;;  %v8713_v33 = vld [vmem:[%s10220_s0 + $0x38] sm:$0xff]  ;;  %v8727_v43 = vld [vmem:[%s10220_s0 + $0x48] sm:$0xff] }
 0x48b   :  { %2340 = vmax.xlane.f32.xlu1 %v2339_v21  ;;  %v2336_v13 = vsel %vm724_vm3, %v8650_v51, -inf  ;;  %7245 = vmatprep.subr.bf16.mxu0 %v7244_v55  ;;  %v8692_v21 = vld [vmem:[%s10220_s0 + $0x20] sm:$0xff]  ;;  %v8734_v31 = vld [vmem:[%s10220_s0 + $0x50] sm:$0xff] }
 0x48c   :  { %2337 = vmax.xlane.f32.xlu0 %v2336_v13  ;;  %7247 = vmatpush3.bf16.msra.mxu0 %v7244_v55  ;;  %v8699_v13 = vld [vmem:[%s10220_s0 + $0x28] sm:$0xff]  ;;  %v8720_v55 = vld [vmem:[%s10220_s0 + $0x40] sm:$0xff] }
 0x48d   :  { %7249 = vmatprep.subr.bf16.mxu0 %v7248_v22 }
 0x490   :  { %7251 = vmatpush3.bf16.msra.mxu0 %v7248_v22  ;;  %v8741_v22 = vld [vmem:[%s10220_s0 + $0x58] sm:$0xff] }
 0x493   :  { %6629 = vmatmul.mubr.msk.f32.vlgmr.msra.gmra.mrb[80].mxu0 %vm56_vm0, %v8671_v38 }
 0x494   :  { %6631 = vmatprep.mubr.msk.f32.mxu0 %vm56_vm0, %v8678_v56 }
 0x497   :  { %6632 = vmatmul.mubr.msk.f32.gmra.mrb[82].mxu0 %vm56_vm0, %v8685_v27 }
 0x498   :  { %6634 = vmatprep.mubr.msk.f32.mxu0 %vm56_vm0, %v8692_v21 }
 0x49b   :  { %6635 = vmatmul.mubr.msk.f32.gmra.mrb[84].mxu0 %vm56_vm0, %v8699_v13 }
 0x49c   :  { %6637 = vmatprep.mubr.msk.f32.mxu0 %vm56_vm0, %v8706_v40 }
 0x49f   :  { %6638 = vmatmul.mubr.msk.f32.gmra.mrb[86].mxu0 %vm56_vm0, %v8713_v33 }
 0x4a0   :  { %6640 = vmatprep.mubr.msk.f32.mxu0 %vm56_vm0, %v8720_v55 }
 0x4a3   :  { %6641 = vmatmul.mubr.msk.f32.gmra.mrb[88].mxu0 %vm56_vm0, %v8727_v43 }
 0x4a4   :  { %6643 = vmatprep.mubr.msk.f32.mxu0 %vm56_vm0, %v8734_v31 }
 0x4a7   :  { %6644 = vmatmul.mubr.msk.f32.gmra.mrb[90].mxu0 %vm56_vm0, %v8741_v22 }
 0x4a8   :  { %6646 = vmatprep.mubr.msk.f32.mxu0 %vm56_vm0, %v8748_v36 }
 0x4ab   :  { %6647 = vmatmul.mubr.msk.f32.gmra.mrb[92].mxu0 %vm56_vm0, %v8755_v9 }
 0x4ac   :  { %6649 = vmatprep.mubr.msk.f32.mxu0 %vm56_vm0, %v8762_v15 }
 0x4af   :  { %6650 = vmatmul.mubr.msk.f32.gmra.mrb[94].mxu0 %vm56_vm0, %v8769_v12 }
 0x4b0   :  { %6692 = vmatprep.mubr.msk.f32.mxu0 %vm56_vm0, %v8552_v18 }
 0x4fc   :  { %v1953_v5 = vpop.xlane.xlu1 %1952 }
 0x4fd   :  { %v1973_v1 = vsub.f32 %v8574_v24, %v1953_v5  ;;  %v1950_v4 = vpop.xlane.xlu0 %1949 }
 0x4fe   :  { %v1972_v34 = vsub.f32 %v8576_v28, %v1950_v4 }
 0x4ff   :  { %v1982_v0 = vmul.f32 1.442695, %v1973_v1 }
 0x500   :  { %v1980_v60 = vmul.f32 1.442695, %v1972_v34  ;;  %v1959_v3 = vpop.xlane.xlu1 %1958 }
 0x501   :  { %v1975_v58 = vsub.f32 %v8588_v59, %v1959_v3  ;;  %v1956_v57 = vpop.xlane.xlu0 %1955 }
 0x502   :  { %7487 = vpow2.f32 %v1980_v60  ;;  %v1974_v16 = vsub.f32 %v8590_v20, %v1956_v57 }
 0x503   :  { %7489 = vpow2.f32 %v1982_v0  ;;  %v1986_v14 = vmul.f32 1.442695, %v1975_v58 }
 0x504   :  { %v1984_v8 = vmul.f32 1.442695, %v1974_v16  ;;  %v1965_v42 = vpop.xlane.xlu1 %1964 }
 0x505   :  { %v1977_v53 = vsub.f32 %v8602_v23, %v1965_v42  ;;  %v1962_v6 = vpop.xlane.xlu0 %1961 }
 0x506   :  { %7491 = vpow2.f32 %v1984_v8  ;;  %v1976_v5 = vsub.f32 %v8604_v32, %v1962_v6 }
 0x507   :  { %7493 = vpow2.f32 %v1986_v14  ;;  %v1990_v1 = vmul.f32 1.442695, %v1977_v53 }
 0x508   :  { %v1988_v34 = vmul.f32 1.442695, %v1976_v5  ;;  %v1971_v4 = vpop.xlane.xlu1 %1970 }
 0x509   :  { %v1979_v3 = vsub.f32 %v8616_v19, %v1971_v4  ;;  %v1968_v24 = vpop.xlane.xlu0 %1967 }
 0x50a   :  { %7495 = vpow2.f32 %v1988_v34  ;;  %v1978_v57 = vsub.f32 %v8618_v41, %v1968_v24  ;;  %v5486_v34 = vld [vmem:[%s10219_s3 + $0x40] sm:$0xff] }
 0x50b   :  { %7497 = vpow2.f32 %v1990_v1  ;;  %v1994_v58 = vmul.f32 1.442695, %v1979_v3 }
 0x50c   :  { %v8783_v60 = vpop.eup %7487  ;;  %v1992_v0 = vmul.f32 1.442695, %v1978_v57  ;;  %v2323_v42 = vpop.xlane.xlu1 %2322 }
 0x50d   :  { %v8785_v16 = vpop.eup %7489  ;;  %v2343_v6 = vsub.f32 %v8624_v46, %v2323_v42  ;;  %6552 = vmatprep.mubr.msk.f32.mxu1 %vm724_vm3, %v8783_v60  ;;  %v2320_v53 = vpop.xlane.xlu0 %2319 }
 0x50e   :  { %7499 = vpow2.f32 %v1992_v0  ;;  %v2342_v8 = vsub.f32 %v8626_v47, %v2320_v53  ;;  %6553 = vmatmul.mubr.msk.f32.vlgmr.msra.gmra.mrb[64].mxu1 %vm724_vm3, %v8785_v16 }
 0x50f   :  { %7501 = vpow2.f32 %v1994_v58  ;;  %v2352_v14 = vmul.f32 1.442695, %v2343_v6  ;;  %7231 = vmatpush3.bf16.msra.mxu1 %v8559_v17  ;;  %v5488_v6 = vld [vmem:[%s10219_s3 + $0x50] sm:$0xff] }
 0x510   :  { %v8794_v28 = vpop.eup %7491  ;;  %v2350_v59 = vmul.f32 1.442695, %v2342_v8  ;;  %7233 = vmatprep.subr.bf16.mxu1 %v8562_v48  ;;  %v2329_v20 = vpop.xlane.xlu1 %2328 }
 0x511   :  { %10267 = vst [vmem:[#allocation22_spill] sm:$0xff] %v8794_v28  ;;  %v8797_v23 = vpop.eup %7493  ;;  %v2345_v32 = vsub.f32 %v8632_v50, %v2329_v20  ;;  %6555 = vmatprep.mubr.msk.f32.mxu1 %vm724_vm3, %v8794_v28  ;;  %v2326_v19 = vpop.xlane.xlu0 %2325 }
 0x512   :  { %7503 = vpow2.f32 %v2350_v59  ;;  %v2344_v41 = vsub.f32 %v8634_v29, %v2326_v19  ;;  %6556 = vmatmul.mubr.msk.f32.gmra.mrb[66].mxu1 %vm724_vm3, %v8797_v23 }
 0x513   :  { %7505 = vpow2.f32 %v2352_v14  ;;  %v2356_v17 = vmul.f32 1.442695, %v2345_v32  ;;  %7235 = vmatpush3.bf16.msra.mxu1 %v8562_v48  ;;  %v5487_v48 = vld [vmem:[%s10219_s3 + $0x48] sm:$0xff] }
 0x514   :  { %v8806_v46 = vpop.eup %7495  ;;  %v2354_v47 = vmul.f32 1.442695, %v2344_v41  ;;  %7237 = vmatprep.subr.bf16.mxu1 %v8564_v26  ;;  %v2335_v50 = vpop.xlane.xlu1 %2334  ;;  %v7252_v58 = vpack.c.bf16 %v5487_v48, %v5486_v34  ;;  %v5511_v34 = vld [vmem:[%s10222_s5 + $0x58] sm:$0xff] }
 0x515   :  { %10268 = vst [vmem:[#allocation23_spill] sm:$0xff] %v8806_v46  ;;  %v8809_v5 = vpop.eup %7497  ;;  %v2347_v1 = vsub.f32 %v8640_v52, %v2335_v50  ;;  %6558 = vmatprep.mubr.msk.f32.mxu1 %vm724_vm3, %v8806_v46  ;;  %v2332_v29 = vpop.xlane.xlu0 %2331  ;;  %v5509_v50 = vld [vmem:[%s10222_s5 + $0x48] sm:$0xff] }
 0x516   :  { %10269 = vst [vmem:[#allocation24_spill] sm:$0xff] %v8809_v5  ;;  %7507 = vpow2.f32 %v2354_v47  ;;  %v2346_v4 = vsub.f32 %v8642_v25, %v2332_v29  ;;  %6559 = vmatmul.mubr.msk.f32.gmra.mrb[68].mxu1 %vm724_vm3, %v8809_v5  ;;  %v5508_v47 = vld [vmem:[%s10222_s5 + $0x40] sm:$0xff]  ;;  %v5510_v29 = vld [vmem:[%s10222_s5 + $0x50] sm:$0xff] }
 0x517   :  { %7509 = vpow2.f32 %v2356_v17  ;;  %v2360_v52 = vmul.f32 1.442695, %v2347_v1  ;;  %7239 = vmatpush3.bf16.msra.mxu1 %v8564_v26  ;;  %v5489_v26 = vld [vmem:[%s10219_s3 + $0x58] sm:$0xff]  ;;  %v7260_v1 = vpack.c.bf16 %v5509_v50, %v5508_v47  ;;  %v7264_v48 = vpack.c.bf16 %v5511_v34, %v5510_v29 }
 0x518   :  { %v8824_v3 = vpop.eup %7499  ;;  %v2358_v24 = vmul.f32 1.442695, %v2346_v4  ;;  %7241 = vmatprep.subr.bf16.mxu1 %v8566_v30  ;;  %v2341_v57 = vpop.xlane.xlu1 %2340  ;;  %v7256_v59 = vpack.c.bf16 %v5489_v26, %v5488_v6 }
 0x519   :  { %10270 = vst [vmem:[#allocation25_spill] sm:$0xff] %v8824_v3  ;;  %v8827_v0 = vpop.eup %7501  ;;  %v2349_v42 = vsub.f32 %v8648_v44, %v2341_v57  ;;  %6561 = vmatprep.mubr.msk.f32.mxu1 %vm724_vm3, %v8824_v3  ;;  %v2338_v25 = vpop.xlane.xlu0 %2337  ;;  %7261 = vmatprep.subr.bf16.mxu0 %v7260_v1 }
 0x51a   :  { %10271 = vst [vmem:[#allocation26_spill] sm:$0xff] %v8827_v0  ;;  %7511 = vpow2.f32 %v2358_v24  ;;  %v2348_v53 = vsub.f32 %v8650_v51, %v2338_v25  ;;  %6562 = vmatmul.mubr.msk.f32.gmra.mrb[70].mxu1 %vm724_vm3, %v8827_v0  ;;  %7263 = vmatpush3.bf16.msra.mxu0 %v7260_v1 }
 0x51b   :  { %7513 = vpow2.f32 %v2360_v52  ;;  %v2364_v44 = vmul.f32 1.442695, %v2349_v42  ;;  %7243 = vmatpush3.bf16.msra.mxu1 %v8566_v30  ;;  %7265 = vmatprep.subr.bf16.mxu0 %v7264_v48  ;;  %v5469_v52 = vld [vmem:[%s10224_s2 + $0x2] ss:$0 sm:$0xff] }
 0x51c   :  { %v8842_v8 = vpop.eup %7503  ;;  %v2362_v14 = vmul.f32 1.442695, %v2348_v53  ;;  %7253 = vmatprep.subr.bf16.mxu1 %v7252_v58 }
 0x51d   :  { %10272 = vst [vmem:[#allocation27_spill] sm:$0xff] %v8842_v8  ;;  %v8844_v20 = vpop.eup %7505  ;;  %6608 = vmatprep.mubr.msk.f32.mxu1 %vm724_vm3, %v8842_v8 }
 0x51e   :  { %10273 = vst [vmem:[#allocation28_spill] sm:$0xff] %v8844_v20  ;;  %7515 = vpow2.f32 %v2362_v14  ;;  %6609 = vmatmul.mubr.msk.f32.vlgmr.msra.gmra.mrb[72].mxu1 %vm724_vm3, %v8844_v20  ;;  %7267 = vmatpush3.bf16.msra.mxu0 %v7264_v48 }
 0x51f   :  { %7517 = vpow2.f32 %v2364_v44  ;;  %7255 = vmatpush3.bf16.msra.mxu1 %v7252_v58 }
 0x520   :  { %v8850_v51 = vpop.eup %7507  ;;  %7257 = vmatprep.subr.bf16.mxu1 %v7256_v59 }
 0x521   :  { %10274 = vst [vmem:[#allocation29_spill] sm:$0xff] %v8850_v51  ;;  %v8852_v30 = vpop.eup %7509  ;;  %6611 = vmatprep.mubr.msk.f32.mxu1 %vm724_vm3, %v8850_v51  ;;  %6693 = vmatmul.mubr.msk.f32.vlgmr.msra.gmra.mrb[96].mxu0 %vm56_vm0, %v8671_v38 }
 0x522   :  { %10275 = vst [vmem:[#allocation30_spill] sm:$0xff] %v8852_v30  ;;  %6612 = vmatmul.mubr.msk.f32.gmra.mrb[74].mxu1 %vm724_vm3, %v8852_v30  ;;  %6695 = vmatprep.mubr.msk.f32.mxu0 %vm56_vm0, %v8678_v56 }
 0x523   :  { %7259 = vmatpush3.bf16.msra.mxu1 %v7256_v59 }
 0x524   :  { %v8858_v32 = vpop.eup %7511 }
 0x525   :  { %10276 = vst [vmem:[#allocation31_spill] sm:$0xff] %v8858_v32  ;;  %v8860_v19 = vpop.eup %7513  ;;  %6614 = vmatprep.mubr.msk.f32.mxu1 %vm724_vm3, %v8858_v32  ;;  %6696 = vmatmul.mubr.msk.f32.gmra.mrb[98].mxu0 %vm56_vm0, %v8685_v27 }
 0x526   :  { %10277 = vst [vmem:[#allocation32_spill] sm:$0xff] %v8860_v19  ;;  %6615 = vmatmul.mubr.msk.f32.gmra.mrb[76].mxu1 %vm724_vm3, %v8860_v19  ;;  %6698 = vmatprep.mubr.msk.f32.mxu0 %vm56_vm0, %v8692_v21 }
 0x528   :  { %v8866_v41 = vpop.eup %7515 }
 0x529   :  { %10278 = vst [vmem:[#allocation33_spill] sm:$0xff] %v8866_v41  ;;  %v8868_v17 = vpop.eup %7517  ;;  %6617 = vmatprep.mubr.msk.f32.mxu1 %vm724_vm3, %v8866_v41  ;;  %6699 = vmatmul.mubr.msk.f32.gmra.mrb[100].mxu0 %vm56_vm0, %v8699_v13 }
 0x52a   :  { %10279 = vst [vmem:[#allocation34_spill] sm:$0xff] %v8868_v17  ;;  %6618 = vmatmul.mubr.msk.f32.gmra.mrb[78].mxu1 %vm724_vm3, %v8868_v17  ;;  %6701 = vmatprep.mubr.msk.f32.mxu0 %vm56_vm0, %v8706_v40 }
 0x52b   :  { %6660 = vmatprep.mubr.msk.f32.mxu1 %vm56_vm0, %v8552_v18 }
 0x52d   :  { %6702 = vmatmul.mubr.msk.f32.gmra.mrb[102].mxu0 %vm56_vm0, %v8713_v33 }
 0x52e   :  { %6661 = vmatmul.mubr.msk.f32.vlgmr.msra.gmra.mrb[80].mxu1 %vm56_vm0, %v8671_v38  ;;  %6704 = vmatprep.mubr.msk.f32.mxu0 %vm56_vm0, %v8720_v55 }
 0x52f   :  { %6663 = vmatprep.mubr.msk.f32.mxu1 %vm56_vm0, %v8678_v56 }
 0x531   :  { %6705 = vmatmul.mubr.msk.f32.gmra.mrb[104].mxu0 %vm56_vm0, %v8727_v43 }
 0x532   :  { %6664 = vmatmul.mubr.msk.f32.gmra.mrb[82].mxu1 %vm56_vm0, %v8685_v27  ;;  %6707 = vmatprep.mubr.msk.f32.mxu0 %vm56_vm0, %v8734_v31 }
 0x533   :  { %6666 = vmatprep.mubr.msk.f32.mxu1 %vm56_vm0, %v8692_v21 }
 0x535   :  { %6708 = vmatmul.mubr.msk.f32.gmra.mrb[106].mxu0 %vm56_vm0, %v8741_v22 }
 0x536   :  { %6667 = vmatmul.mubr.msk.f32.gmra.mrb[84].mxu1 %vm56_vm0, %v8699_v13  ;;  %6710 = vmatprep.mubr.msk.f32.mxu0 %vm56_vm0, %v8748_v36 }
 0x537   :  { %6669 = vmatprep.mubr.msk.f32.mxu1 %vm56_vm0, %v8706_v40 }
 0x539   :  { %6711 = vmatmul.mubr.msk.f32.gmra.mrb[108].mxu0 %vm56_vm0, %v8755_v9 }
 0x53a   :  { %6670 = vmatmul.mubr.msk.f32.gmra.mrb[86].mxu1 %vm56_vm0, %v8713_v33  ;;  %6713 = vmatprep.mubr.msk.f32.mxu0 %vm56_vm0, %v8762_v15 }
 0x53b   :  { %6672 = vmatprep.mubr.msk.f32.mxu1 %vm56_vm0, %v8720_v55 }
 0x53d   :  { %6714 = vmatmul.mubr.msk.f32.gmra.mrb[110].mxu0 %vm56_vm0, %v8769_v12 }
 0x53e   :  { %6673 = vmatmul.mubr.msk.f32.gmra.mrb[88].mxu1 %vm56_vm0, %v8727_v43 }
 0x53f   :  { %6675 = vmatprep.mubr.msk.f32.mxu1 %vm56_vm0, %v8734_v31 }
 0x542   :  { %6676 = vmatmul.mubr.msk.f32.gmra.mrb[90].mxu1 %vm56_vm0, %v8741_v22 }
 0x543   :  { %6678 = vmatprep.mubr.msk.f32.mxu1 %vm56_vm0, %v8748_v36 }
 0x546   :  { %6679 = vmatmul.mubr.msk.f32.gmra.mrb[92].mxu1 %vm56_vm0, %v8755_v9 }
 0x547   :  { %6681 = vmatprep.mubr.msk.f32.mxu1 %vm56_vm0, %v8762_v15 }
 0x54a   :  { %6682 = vmatmul.mubr.msk.f32.gmra.mrb[94].mxu1 %vm56_vm0, %v8769_v12 }
 0x566   :  { %v6630_v4 = vpop.f32.mrb[80].mxu0 }
 0x567   :  { %v8939_v24 = vadd.f32 %v6630_v4, %v5469_v52  ;;  %v2614_v57 = vpop.f32.mrb[81].mxu0 }
 0x568   :  { %v2615_v58 = vadd.f32 %v5469_v52, %v2614_v57 }
 0x56a   :  { %v6633_v42 = vpop.f32.mrb[82].mxu0  ;;  %6732 = vmatprep.mubr.msk.f32.mxu1 %vm570_vm1, %v2615_v58 }
 0x56b   :  { %v8943_v25 = vadd.f32 %v6633_v42, %v5469_v52  ;;  %v2624_v6 = vpop.f32.mrb[83].mxu0 }
 0x56c   :  { %v8946_v26 = vadd.f32 %v5469_v52, %v2624_v6 }
 0x56e   :  { %v6636_v53 = vpop.f32.mrb[84].mxu0 }
 0x56f   :  { %v8954_v44 = vadd.f32 %v6636_v53, %v5469_v52  ;;  %v2634_v14 = vpop.f32.mrb[85].mxu0 }
 0x570   :  { %v8958_v59 = vadd.f32 %v5469_v52, %v2634_v14 }
 0x572   :  { %v6639_v47 = vpop.f32.mrb[86].mxu0 }
 0x573   :  { %v8960_v50 = vadd.f32 %v6639_v47, %v5469_v52  ;;  %v2644_v1 = vpop.f32.mrb[87].mxu0 }
 0x574   :  { %v8964_v29 = vadd.f32 %v5469_v52, %v2644_v1 }
 0x576   :  { %v6642_v34 = vpop.f32.mrb[88].mxu0 }
 0x577   :  { %v8966_v48 = vadd.f32 %v6642_v34, %v5469_v52  ;;  %v2654_v4 = vpop.f32.mrb[89].mxu0 }
 0x578   :  { %v2655_v57 = vadd.f32 %v5469_v52, %v2654_v4 }
 0x57a   :  { %v6645_v58 = vpop.f32.mrb[90].mxu0  ;;  %6788 = vmatprep.mubr.msk.f32.mxu0 %vm570_vm1, %v2655_v57 }
 0x57b   :  { %v8968_v42 = vadd.f32 %v6645_v58, %v5469_v52  ;;  %v2664_v6 = vpop.f32.mrb[91].mxu0 }
 0x57c   :  { %v8971_v53 = vadd.f32 %v5469_v52, %v2664_v6 }
 0x57e   :  { %v6648_v14 = vpop.f32.mrb[92].mxu0 }
 0x57f   :  { %v8973_v47 = vadd.f32 %v6648_v14, %v5469_v52  ;;  %v2674_v41 = vpop.f32.mrb[93].mxu0 }
 0x580   :  { %v8975_v17 = vadd.f32 %v5469_v52, %v2674_v41 }
 0x582   :  { %v6651_v1 = vpop.f32.mrb[94].mxu0 }
 0x583   :  { %v8977_v32 = vadd.f32 %v6651_v1, %v5469_v52  ;;  %v2684_v34 = vpop.f32.mrb[95].mxu0 }
 0x584   :  { %v8979_v19 = vadd.f32 %v5469_v52, %v2684_v34 }
 0x5e1   :  { %v8981_v4 = vpop.f32.mrb[64].mxu1 }
 0x5e2   :  { %10280 = vst [vmem:[#allocation35_spill] sm:$0xff] %v8981_v4  ;;  %v8983_v58 = vpop.f32.mrb[65].mxu1 }
 0x5e3   :  { %10281 = vst [vmem:[#allocation36_spill] sm:$0xff] %v8983_v58 }
 0x5e5   :  { %v8985_v57 = vpop.f32.mrb[66].mxu1 }
 0x5e6   :  { %10282 = vst [vmem:[#allocation37_spill] sm:$0xff] %v8985_v57  ;;  %v8987_v6 = vpop.f32.mrb[67].mxu1 }
 0x5e7   :  { %10283 = vst [vmem:[#allocation38_spill] sm:$0xff] %v8987_v6 }
 0x5e9   :  { %v8989_v51 = vpop.f32.mrb[68].mxu1 }
 0x5ea   :  { %10284 = vst [vmem:[#allocation39_spill] sm:$0xff] %v8989_v51  ;;  %v8991_v14 = vpop.f32.mrb[69].mxu1 }
 0x5eb   :  { %10285 = vst [vmem:[#allocation40_spill] sm:$0xff] %v8991_v14 }
 0x5ed   :  { %v8993_v41 = vpop.f32.mrb[70].mxu1 }
 0x5ee   :  { %10286 = vst [vmem:[#allocation41_spill] sm:$0xff] %v8993_v41  ;;  %v8995_v30 = vpop.f32.mrb[71].mxu1  ;;  %v5491_v41 = vld [vmem:[%s10223_s4 + $0x2] ss:$0 sm:$0xff] }
 0x5ef   :  { %10287 = vst [vmem:[#allocation42_spill] sm:$0xff] %v8995_v30 }
 0x5f1   :  { %v8997_v1 = vpop.f32.mrb[72].mxu1 }
 0x5f2   :  { %10288 = vst [vmem:[#allocation43_spill] sm:$0xff] %v8997_v1  ;;  %v8999_v52 = vpop.f32.mrb[73].mxu1 }
 0x5f3   :  { %10289 = vst [vmem:[#allocation44_spill] sm:$0xff] %v8999_v52 }
 0x5f5   :  { %v9001_v34 = vpop.f32.mrb[74].mxu1 }
 0x5f6   :  { %10290 = vst [vmem:[#allocation45_spill] sm:$0xff] %v9001_v34  ;;  %v9003_v4 = vpop.f32.mrb[75].mxu1 }
 0x5f7   :  { %10291 = vst [vmem:[#allocation46_spill] sm:$0xff] %v9003_v4 }
 0x5f9   :  { %v9005_v58 = vpop.f32.mrb[76].mxu1 }
 0x5fa   :  { %10292 = vst [vmem:[#allocation47_spill] sm:$0xff] %v9005_v58  ;;  %v9007_v57 = vpop.f32.mrb[77].mxu1 }
 0x5fb   :  { %10293 = vst [vmem:[#allocation48_spill] sm:$0xff] %v9007_v57 }
 0x5fd   :  { %v9009_v6 = vpop.f32.mrb[78].mxu1 }
 0x5fe   :  { %10294 = vst [vmem:[#allocation49_spill] sm:$0xff] %v9009_v6  ;;  %v9011_v51 = vpop.f32.mrb[79].mxu1 }
 0x5ff   :  { %10295 = vst [vmem:[#allocation50_spill] sm:$0xff] %v9011_v51 }
 0x601   :  { %v6662_v30 = vpop.f32.mrb[80].mxu1 }
 0x602   :  { %v2778_v1 = vadd.f32 %v6662_v30, %v5491_v41  ;;  %v2772_v14 = vpop.f32.mrb[81].mxu1 }
 0x603   :  { %v2773_v52 = vadd.f32 %v5491_v41, %v2772_v14 }
 0x605   :  { %v7268_v8 = vpack.c.bf16 %v2778_v1, %v2773_v52  ;;  %v6665_v34 = vpop.f32.mrb[82].mxu1 }
 0x606   :  { %v2788_v20 = vadd.f32 %v6665_v34, %v5491_v41  ;;  %v2782_v4 = vpop.f32.mrb[83].mxu1 }
 0x607   :  { %v2783_v3 = vadd.f32 %v5491_v41, %v2782_v4  ;;  %7270 = vmatprep.subr.msk.bf16.mxu1 %vm8012_vm2, %v7268_v8 }
 0x608   :  { %7273 = vmatpush3.bf16.xpose.msk.msra.mxu1 %vm8012_vm2, %v7268_v8 }
 0x609   :  { %v7274_v51 = vpack.c.bf16 %v2788_v20, %v2783_v3  ;;  %v6668_v6 = vpop.f32.mrb[84].mxu1 }
 0x60a   :  { %v2798_v57 = vadd.f32 %v6668_v6, %v5491_v41  ;;  %v2792_v58 = vpop.f32.mrb[85].mxu1 }
 0x60b   :  { %v2793_v0 = vadd.f32 %v5491_v41, %v2792_v58  ;;  %7276 = vmatprep.subr.msk.bf16.mxu1 %vm8012_vm2, %v7274_v51 }
 0x60d   :  { %v7280_v30 = vpack.c.bf16 %v2798_v57, %v2793_v0  ;;  %v6671_v14 = vpop.f32.mrb[86].mxu1 }
 0x60e   :  { %v2808_v1 = vadd.f32 %v6671_v14, %v5491_v41  ;;  %v2802_v52 = vpop.f32.mrb[87].mxu1 }
 0x60f   :  { %v2803_v34 = vadd.f32 %v5491_v41, %v2802_v52 }
 0x610   :  { %7279 = vmatpush3.bf16.xpose.msk.msra.mxu1 %vm8012_vm2, %v7274_v51 }
 0x611   :  { %v7286_v4 = vpack.c.bf16 %v2808_v1, %v2803_v34  ;;  %v6674_v46 = vpop.f32.mrb[88].mxu1  ;;  %7282 = vmatprep.subr.msk.bf16.mxu1 %vm8012_vm2, %v7280_v30 }
 0x612   :  { %v2818_v3 = vadd.f32 %v6674_v46, %v5491_v41  ;;  %v2812_v8 = vpop.f32.mrb[89].mxu1 }
 0x613   :  { %v2813_v20 = vadd.f32 %v5491_v41, %v2812_v8 }
 0x615   :  { %v7308_v58 = vpack.c.bf16 %v2818_v3, %v2813_v20  ;;  %v6677_v6 = vpop.f32.mrb[90].mxu1 }
 0x616   :  { %v2828_v5 = vadd.f32 %v6677_v6, %v5491_v41  ;;  %v2822_v28 = vpop.f32.mrb[91].mxu1 }
 0x617   :  { %7310 = vmatprep.subr.msk.bf16.mxu0 %vm8012_vm2, %v7308_v58  ;;  %v2823_v0 = vadd.f32 %v5491_v41, %v2822_v28 }
 0x618   :  { %7285 = vmatpush3.bf16.xpose.msk.msra.mxu1 %vm8012_vm2, %v7280_v30  ;;  %7313 = vmatpush3.bf16.xpose.msk.msra.mxu0 %vm8012_vm2, %v7308_v58 }
 0x619   :  { %v7314_v51 = vpack.c.bf16 %v2828_v5, %v2823_v0  ;;  %7288 = vmatprep.subr.msk.bf16.mxu1 %vm8012_vm2, %v7286_v4  ;;  %v6680_v46 = vpop.f32.mrb[92].mxu1 }
 0x61a   :  { %v2838_v57 = vadd.f32 %v6680_v46, %v5491_v41  ;;  %v2832_v14 = vpop.f32.mrb[93].mxu1 }
 0x61b   :  { %7316 = vmatprep.subr.msk.bf16.mxu0 %vm8012_vm2, %v7314_v51  ;;  %v2833_v1 = vadd.f32 %v5491_v41, %v2832_v14 }
 0x61d   :  { %v7320_v52 = vpack.c.bf16 %v2838_v57, %v2833_v1  ;;  %v6683_v34 = vpop.f32.mrb[94].mxu1 }
 0x61e   :  { %v2848_v28 = vadd.f32 %v6683_v34, %v5491_v41  ;;  %v2842_v3 = vpop.f32.mrb[95].mxu1 }
 0x61f   :  { %v2843_v8 = vadd.f32 %v5491_v41, %v2842_v3 }
 0x620   :  { %7291 = vmatpush3.bf16.xpose.msk.msra.mxu1 %vm8012_vm2, %v7286_v4  ;;  %7319 = vmatpush3.bf16.xpose.msk.msra.mxu0 %vm8012_vm2, %v7314_v51 }
 0x621   :  { %7322 = vmatprep.subr.msk.bf16.mxu0 %vm8012_vm2, %v7320_v52  ;;  %v7326_v5 = vpack.c.bf16 %v2848_v28, %v2843_v8 }
 0x627   :  { %6733 = vmatmul.mubr.msk.f32.vlgmr.msra.gmra.mrb[96].mxu1 %vm570_vm1, %v8939_v24  ;;  %v5513_v24 = vld [vmem:[%s10225_s6 + $0x2] ss:$0 sm:$0xff] }
 0x628   :  { %7325 = vmatpush3.bf16.xpose.msk.msra.mxu0 %vm8012_vm2, %v7320_v52  ;;  %6735 = vmatprep.mubr.msk.f32.mxu1 %vm570_vm1, %v8946_v26 }
 0x629   :  { %7328 = vmatprep.subr.msk.bf16.mxu0 %vm8012_vm2, %v7326_v5 }
 0x62b   :  { %6736 = vmatmul.mubr.msk.f32.gmra.mrb[98].mxu1 %vm570_vm1, %v8943_v25  ;;  %v6694_v25 = vpop.f32.mrb[96].mxu0 }
 0x62c   :  { %6738 = vmatprep.mubr.msk.f32.mxu1 %vm570_vm1, %v8958_v59  ;;  %v2936_v26 = vadd.f32 %v6694_v25, %v5513_v24 }
 0x62f   :  { %6739 = vmatmul.mubr.msk.f32.gmra.mrb[100].mxu1 %vm570_vm1, %v8954_v44  ;;  %v2930_v44 = vpop.f32.mrb[97].mxu0 }
 0x630   :  { %7331 = vmatpush3.bf16.xpose.msk.msra.mxu0 %vm8012_vm2, %v7326_v5  ;;  %6741 = vmatprep.mubr.msk.f32.mxu1 %vm570_vm1, %v8964_v29 }
 0x633   :  { %6742 = vmatmul.mubr.msk.f32.gmra.mrb[102].mxu1 %vm570_vm1, %v8960_v50  ;;  %v6697_v50 = vpop.f32.mrb[98].mxu0 }
 0x634   :  { %v2946_v29 = vadd.f32 %v6697_v50, %v5513_v24 }
 0x637   :  { %6789 = vmatmul.mubr.msk.f32.vlgmr.msra.gmra.mrb[112].mxu0 %vm570_vm1, %v8966_v48  ;;  %v2940_v48 = vpop.f32.mrb[99].mxu0 }
 0x638   :  { %6791 = vmatprep.mubr.msk.f32.mxu0 %vm570_vm1, %v8971_v53 }
 0x63b   :  { %6792 = vmatmul.mubr.msk.f32.gmra.mrb[114].mxu0 %vm570_vm1, %v8968_v42  ;;  %v2941_v42 = vadd.f32 %v5513_v24, %v2940_v48 }
 0x63c   :  { %6794 = vmatprep.mubr.msk.f32.mxu0 %vm570_vm1, %v8975_v17  ;;  %v2931_v17 = vadd.f32 %v5513_v24, %v2930_v44 }
 0x63e   :  { %v7292_v59 = vpack.c.bf16 %v2936_v26, %v2931_v17 }
 0x63f   :  { %6795 = vmatmul.mubr.msk.f32.gmra.mrb[116].mxu0 %vm570_vm1, %v8973_v47 }
 0x640   :  { %6797 = vmatprep.mubr.msk.f32.mxu0 %vm570_vm1, %v8979_v19  ;;  %7293 = vmatprep.subr.bf16.mxu1 %v7292_v59  ;;  %v7296_v19 = vpack.c.bf16 %v2946_v29, %v2941_v42  ;;  %v5531_v42 = vld [vmem:[%s10226_s7 + $0x88] sm:$0xff] }
 0x641   :  { %7295 = vmatpush3.bf16.msra.mxu1 %v7292_v59 }
 0x642   :  { %7297 = vmatprep.subr.bf16.mxu1 %v7296_v19 }
 0x643   :  { %6798 = vmatmul.mubr.msk.f32.gmra.mrb[118].mxu0 %vm570_vm1, %v8977_v32  ;;  %v6700_v32 = vpop.f32.mrb[100].mxu0 }
 0x644   :  { %6836 = vmatprep.mubr.msk.f32.mxu0 %vm56_vm0, %v8552_v18  ;;  %v2956_v53 = vadd.f32 %v6700_v32, %v5513_v24  ;;  %v2950_v47 = vpop.f32.mrb[101].mxu0 }
 0x645   :  { %v2951_v18 = vadd.f32 %v5513_v24, %v2950_v47  ;;  %7299 = vmatpush3.bf16.msra.mxu1 %v7296_v19  ;;  %v6703_v30 = vpop.f32.mrb[102].mxu0  ;;  %v5530_v19 = vld [vmem:[%s10226_s7 + $0x80] sm:$0xff] }
 0x646   :  { %v2966_v4 = vadd.f32 %v6703_v30, %v5513_v24  ;;  %v2960_v20 = vpop.f32.mrb[103].mxu0  ;;  %v5532_v30 = vld [vmem:[%s10226_s7 + $0x90] sm:$0xff] }
 0x647   :  { %v7300_v41 = vpack.c.bf16 %v2956_v53, %v2951_v18  ;;  %v2961_v58 = vadd.f32 %v5513_v24, %v2960_v20  ;;  %v6706_v0 = vpop.f32.mrb[104].mxu0 }
 0x648   :  { %v2976_v51 = vadd.f32 %v6706_v0, %v5513_v24  ;;  %v2970_v46 = vpop.f32.mrb[105].mxu0 }
 0x649   :  { %7301 = vmatprep.subr.bf16.mxu1 %v7300_v41  ;;  %v7304_v6 = vpack.c.bf16 %v2966_v4, %v2961_v58  ;;  %v2971_v57 = vadd.f32 %v5513_v24, %v2970_v46  ;;  %v6709_v1 = vpop.f32.mrb[106].mxu0 }
 0x64a   :  { %7303 = vmatpush3.bf16.msra.mxu1 %v7300_v41  ;;  %v2986_v52 = vadd.f32 %v6709_v1, %v5513_v24  ;;  %v2980_v34 = vpop.f32.mrb[107].mxu0 }
 0x64b   :  { %7305 = vmatprep.subr.bf16.mxu1 %v7304_v6  ;;  %v9081_v14 = vpack.c.bf16 %v2976_v51, %v2971_v57  ;;  %v2981_v28 = vadd.f32 %v5513_v24, %v2980_v34  ;;  %v6712_v8 = vpop.f32.mrb[108].mxu0  ;;  %v5535_v51 = vld [vmem:[%s10226_s7 + $0xa8] sm:$0xff]  ;;  %v5534_v57 = vld [vmem:[%s10226_s7 + $0xa0] sm:$0xff] }
 0x64c   :  { %v2996_v5 = vadd.f32 %v6712_v8, %v5513_v24  ;;  %v2990_v25 = vpop.f32.mrb[109].mxu0 }
 0x64d   :  { %v9084_v3 = vpack.c.bf16 %v2986_v52, %v2981_v28  ;;  %v2991_v26 = vadd.f32 %v5513_v24, %v2990_v25  ;;  %v6715_v17 = vpop.f32.mrb[110].mxu0 }
 0x64e   :  { %7307 = vmatpush3.bf16.msra.mxu1 %v7304_v6  ;;  %v3006_v59 = vadd.f32 %v6715_v17, %v5513_v24  ;;  %v3000_v50 = vpop.f32.mrb[111].mxu0 }
 0x64f   :  { %7333 = vmatprep.subr.bf16.mxu1 %v9081_v14  ;;  %v9086_v44 = vpack.c.bf16 %v2996_v5, %v2991_v26  ;;  %v3001_v29 = vadd.f32 %v5513_v24, %v3000_v50  ;;  %v5533_v24 = vld [vmem:[%s10226_s7 + $0x98] sm:$0xff]  ;;  %v5536_v26 = vld [vmem:[%s10226_s7 + $0xb0] sm:$0xff] }
 0x650   :  { %v5537_v5 = vld [vmem:[%s10226_s7 + $0xb8] sm:$0xff] }
 0x651   :  { %v9088_v48 = vpack.c.bf16 %v3006_v59, %v3001_v29 }
 0x6fa   :  { %v6734_v32 = vpop.f32.mrb[96].mxu1 }
 0x6fb   :  { %v9096_v53 = vadd.f32 %v6734_v32, %v5531_v42  ;;  %v3132_v47 = vpop.f32.mrb[97].mxu1 }
 0x6fc   :  { %v9098_v18 = vadd.f32 %v5530_v19, %v3132_v47 }
 0x6fd   :  { %v3174_v41 = vsel %vm724_vm3, %v9096_v53, -inf }
 0x6fe   :  { %3175 = vmax.xlane.f32.xlu1 %v3174_v41  ;;  %v6737_v4 = vpop.f32.mrb[98].mxu1  ;;  %v3171_v20 = vsel %vm724_vm3, %v9098_v18, -inf }
 0x6ff   :  { %v9110_v58 = vadd.f32 %v6737_v4, %v5533_v24  ;;  %v3142_v6 = vpop.f32.mrb[99].mxu1  ;;  %3172 = vmax.xlane.f32.xlu0 %v3171_v20 }
 0x700   :  { %v9112_v0 = vadd.f32 %v5532_v30, %v3142_v6 }
 0x701   :  { %v3180_v46 = vsel %vm724_vm3, %v9110_v58, -inf }
 0x702   :  { %3181 = vmax.xlane.f32.xlu1 %v3180_v46  ;;  %v6740_v1 = vpop.f32.mrb[100].mxu1  ;;  %v3177_v52 = vsel %vm724_vm3, %v9112_v0, -inf }
 0x703   :  { %v9124_v34 = vadd.f32 %v6740_v1, %v5535_v51  ;;  %v3152_v28 = vpop.f32.mrb[101].mxu1  ;;  %3178 = vmax.xlane.f32.xlu0 %v3177_v52 }
 0x704   :  { %v9126_v8 = vadd.f32 %v5534_v57, %v3152_v28 }
 0x705   :  { %v3186_v25 = vsel %vm724_vm3, %v9124_v34, -inf }
 0x706   :  { %3187 = vmax.xlane.f32.xlu1 %v3186_v25  ;;  %v6743_v17 = vpop.f32.mrb[102].mxu1  ;;  %v3183_v59 = vsel %vm724_vm3, %v9126_v8, -inf }
 0x707   :  { %v9138_v50 = vadd.f32 %v6743_v17, %v5537_v5  ;;  %v3162_v29 = vpop.f32.mrb[103].mxu1  ;;  %3184 = vmax.xlane.f32.xlu0 %v3183_v59 }
 0x708   :  { %v9140_v32 = vadd.f32 %v5536_v26, %v3162_v29 }
 0x709   :  { %v3192_v47 = vsel %vm724_vm3, %v9138_v50, -inf }
 0x70a   :  { %v6790_v41 = vpop.f32.mrb[112].mxu0  ;;  %3193 = vmax.xlane.f32.xlu1 %v3192_v47  ;;  %v3189_v4 = vsel %vm724_vm3, %v9140_v32, -inf }
 0x70b   :  { %v9146_v20 = vadd.f32 %v6790_v41, %v5531_v42  ;;  %v3502_v6 = vpop.f32.mrb[113].mxu0  ;;  %3190 = vmax.xlane.f32.xlu0 %v3189_v4 }
 0x70c   :  { %v9148_v46 = vadd.f32 %v5530_v19, %v3502_v6 }
 0x70d   :  { %v3544_v1 = vsel %vm724_vm3, %v9146_v20, -inf }
 0x70e   :  { %v6793_v52 = vpop.f32.mrb[114].mxu0  ;;  %3545 = vmax.xlane.f32.xlu1 %v3544_v1  ;;  %v3541_v28 = vsel %vm724_vm3, %v9148_v46, -inf }
 0x70f   :  { %v9154_v25 = vadd.f32 %v6793_v52, %v5533_v24  ;;  %v3512_v17 = vpop.f32.mrb[115].mxu0  ;;  %3542 = vmax.xlane.f32.xlu0 %v3541_v28 }
 0x710   :  { %v9156_v59 = vadd.f32 %v5532_v30, %v3512_v17  ;;  %v5586_v17 = vld [vmem:[%s10221_s1 + $0x60] sm:$0xff] }
 0x711   :  { %v3550_v42 = vsel %vm724_vm3, %v9154_v25, -inf }
 0x712   :  { %v6796_v29 = vpop.f32.mrb[116].mxu0  ;;  %3551 = vmax.xlane.f32.xlu1 %v3550_v42  ;;  %v3547_v19 = vsel %vm724_vm3, %v9156_v59, -inf }
 0x713   :  { %v9162_v47 = vadd.f32 %v6796_v29, %v5535_v51  ;;  %v3522_v41 = vpop.f32.mrb[117].mxu0  ;;  %3548 = vmax.xlane.f32.xlu0 %v3547_v19  ;;  %v5589_v29 = vld [vmem:[%s10221_s1 + $0x78] sm:$0xff] }
 0x714   :  { %v9164_v4 = vadd.f32 %v5534_v57, %v3522_v41 }
 0x715   :  { %v3556_v24 = vsel %vm724_vm3, %v9162_v47, -inf }
 0x716   :  { %v6799_v6 = vpop.f32.mrb[118].mxu0  ;;  %3557 = vmax.xlane.f32.xlu1 %v3556_v24  ;;  %v3553_v30 = vsel %vm724_vm3, %v9164_v4, -inf }
 0x717   :  { %v9170_v1 = vadd.f32 %v6799_v6, %v5537_v5  ;;  %v3532_v52 = vpop.f32.mrb[119].mxu0  ;;  %3554 = vmax.xlane.f32.xlu0 %v3553_v30  ;;  %v5587_v5 = vld [vmem:[%s10221_s1 + $0x68] sm:$0xff] }
 0x718   :  { %v9172_v28 = vadd.f32 %v5536_v26, %v3532_v52  ;;  %v7348_v42 = vpack.c.bf16 %v5587_v5, %v5586_v17  ;;  %v5588_v26 = vld [vmem:[%s10221_s1 + $0x70] sm:$0xff] }
 0x719   :  { %v3562_v51 = vsel %vm724_vm3, %v9170_v1, -inf  ;;  %v7352_v19 = vpack.c.bf16 %v5589_v29, %v5588_v26 }
 0x71a   :  { %3563 = vmax.xlane.f32.xlu1 %v3562_v51  ;;  %v3559_v57 = vsel %vm724_vm3, %v9172_v28, -inf  ;;  %7349 = vmatprep.subr.bf16.mxu0 %v7348_v42 }
 0x71b   :  { %3560 = vmax.xlane.f32.xlu0 %v3559_v57  ;;  %7351 = vmatpush3.bf16.msra.mxu0 %v7348_v42 }
 0x71c   :  { %7353 = vmatprep.subr.bf16.mxu0 %v7352_v19 }
 0x71f   :  { %7355 = vmatpush3.bf16.msra.mxu0 %v7352_v19 }
 0x722   :  { %6837 = vmatmul.mubr.msk.f32.vlgmr.msra.gmra.mrb[120].mxu0 %vm56_vm0, %v8671_v38  ;;  %v9223_v38 = vld [vmem:[%s10220_s0] sm:$0xff] }
 0x723   :  { %6839 = vmatprep.mubr.msk.f32.mxu0 %vm56_vm0, %v8678_v56 }
 0x726   :  { %6840 = vmatmul.mubr.msk.f32.gmra.mrb[122].mxu0 %vm56_vm0, %v8685_v27 }
 0x727   :  { %6842 = vmatprep.mubr.msk.f32.mxu0 %vm56_vm0, %v8692_v21 }
 0x72a   :  { %6843 = vmatmul.mubr.msk.f32.gmra.mrb[124].mxu0 %vm56_vm0, %v8699_v13 }
 0x72b   :  { %6845 = vmatprep.mubr.msk.f32.mxu0 %vm56_vm0, %v8706_v40 }
 0x72e   :  { %6846 = vmatmul.mubr.msk.f32.gmra.mrb[126].mxu0 %vm56_vm0, %v8713_v33 }
 0x72f   :  { %6848 = vmatprep.mubr.msk.f32.mxu0 %vm56_vm0, %v8720_v55 }
 0x732   :  { %6849 = vmatmul.mubr.msk.f32.gmra.mrb[128].mxu0 %vm56_vm0, %v8727_v43 }
 0x733   :  { %6851 = vmatprep.mubr.msk.f32.mxu0 %vm56_vm0, %v8734_v31 }
 0x736   :  { %6852 = vmatmul.mubr.msk.f32.gmra.mrb[130].mxu0 %vm56_vm0, %v8741_v22 }
 0x737   :  { %6854 = vmatprep.mubr.msk.f32.mxu0 %vm56_vm0, %v8748_v36 }
 0x73a   :  { %6855 = vmatmul.mubr.msk.f32.gmra.mrb[132].mxu0 %vm56_vm0, %v8755_v9 }
 0x73b   :  { %6857 = vmatprep.mubr.msk.f32.mxu0 %vm56_vm0, %v8762_v15 }
 0x73e   :  { %6858 = vmatmul.mubr.msk.f32.gmra.mrb[134].mxu0 %vm56_vm0, %v8769_v12 }
 0x73f   :  { %6900 = vmatprep.mubr.msk.f32.mxu0 %vm56_vm0, %v9223_v38 }
 0x78b   :  { %v3176_v56 = vpop.xlane.xlu1 %3175 }
 0x78c   :  { %v3196_v36 = vsub.f32 %v9096_v53, %v3176_v56  ;;  %v3173_v27 = vpop.xlane.xlu0 %3172 }
 0x78d   :  { %v3195_v9 = vsub.f32 %v9098_v18, %v3173_v27 }
 0x78e   :  { %v3205_v21 = vmul.f32 1.442695, %v3196_v36 }
 0x78f   :  { %v3203_v13 = vmul.f32 1.442695, %v3195_v9  ;;  %v3182_v15 = vpop.xlane.xlu1 %3181 }
 0x790   :  { %v3198_v40 = vsub.f32 %v9110_v58, %v3182_v15  ;;  %v3179_v12 = vpop.xlane.xlu0 %3178 }
 0x791   :  { %7519 = vpow2.f32 %v3203_v13  ;;  %v3197_v33 = vsub.f32 %v9112_v0, %v3179_v12  ;;  %v5608_v13 = vld [vmem:[%s10219_s3 + $0x60] sm:$0xff] }
 0x792   :  { %7521 = vpow2.f32 %v3205_v21  ;;  %v3209_v55 = vmul.f32 1.442695, %v3198_v40 }
 0x793   :  { %v3207_v43 = vmul.f32 1.442695, %v3197_v33  ;;  %v3188_v31 = vpop.xlane.xlu1 %3187 }
 0x794   :  { %v3200_v22 = vsub.f32 %v9124_v34, %v3188_v31  ;;  %v3185_v41 = vpop.xlane.xlu0 %3184 }
 0x795   :  { %7523 = vpow2.f32 %v3207_v43  ;;  %v3199_v53 = vsub.f32 %v9126_v8, %v3185_v41 }
 0x796   :  { %7525 = vpow2.f32 %v3209_v55  ;;  %v3213_v18 = vmul.f32 1.442695, %v3200_v22  ;;  %v5610_v22 = vld [vmem:[%s10219_s3 + $0x70] sm:$0xff] }
 0x797   :  { %v3211_v24 = vmul.f32 1.442695, %v3199_v53  ;;  %v3194_v6 = vpop.xlane.xlu1 %3193 }
 0x798   :  { %v3202_v58 = vsub.f32 %v9138_v50, %v3194_v6  ;;  %v3191_v30 = vpop.xlane.xlu0 %3190 }
 0x799   :  { %7527 = vpow2.f32 %v3211_v24  ;;  %v3201_v0 = vsub.f32 %v9140_v32, %v3191_v30 }
 0x79a   :  { %7529 = vpow2.f32 %v3213_v18  ;;  %v3217_v52 = vmul.f32 1.442695, %v3202_v58 }
 0x79b   :  { %v9235_v51 = vpop.eup %7519  ;;  %v3215_v57 = vmul.f32 1.442695, %v3201_v0  ;;  %v3546_v34 = vpop.xlane.xlu1 %3545 }
 0x79c   :  { %v9237_v17 = vpop.eup %7521  ;;  %v3566_v8 = vsub.f32 %v9146_v20, %v3546_v34  ;;  %6760 = vmatprep.mubr.msk.f32.mxu1 %vm724_vm3, %v9235_v51  ;;  %v3543_v5 = vpop.xlane.xlu0 %3542  ;;  %v7729_v34 = vld [vmem:[%s10220_s0 + $0x10] sm:$0xff] }
 0x79d   :  { %7531 = vpow2.f32 %v3215_v57  ;;  %v3565_v50 = vsub.f32 %v9148_v46, %v3543_v5  ;;  %6761 = vmatmul.mubr.msk.f32.vlgmr.msra.gmra.mrb[104].mxu1 %vm724_vm3, %v9237_v17  ;;  %v7728_v57 = vld [vmem:[%s10220_s0 + $0x8] sm:$0xff] }
 0x79e   :  { %7533 = vpow2.f32 %v3217_v52  ;;  %v3575_v32 = vmul.f32 1.442695, %v3566_v8  ;;  %7335 = vmatpush3.bf16.msra.mxu1 %v9081_v14  ;;  %v7730_v8 = vld [vmem:[%s10220_s0 + $0x18] sm:$0xff]  ;;  %v7732_v5 = vld [vmem:[%s10220_s0 + $0x28] sm:$0xff] }
 0x79f   :  { %v9246_v42 = vpop.eup %7523  ;;  %v3573_v26 = vmul.f32 1.442695, %v3565_v50  ;;  %7337 = vmatprep.subr.bf16.mxu1 %v9084_v3  ;;  %v3552_v20 = vpop.xlane.xlu1 %3551  ;;  %v7733_v50 = vld [vmem:[%s10220_s0 + $0x30] sm:$0xff] }
 0x7a0   :  { %v9249_v29 = vpop.eup %7525  ;;  %v3568_v19 = vsub.f32 %v9154_v25, %v3552_v20  ;;  %6763 = vmatprep.mubr.msk.f32.mxu1 %vm724_vm3, %v9246_v42  ;;  %v3549_v46 = vpop.xlane.xlu0 %3548  ;;  %v7736_v20 = vld [vmem:[%s10220_s0 + $0x48] sm:$0xff] }
 0x7a1   :  { %7535 = vpow2.f32 %v3573_v26  ;;  %v3567_v56 = vsub.f32 %v9156_v59, %v3549_v46  ;;  %6764 = vmatmul.mubr.msk.f32.gmra.mrb[106].mxu1 %vm724_vm3, %v9249_v29  ;;  %v7735_v26 = vld [vmem:[%s10220_s0 + $0x40] sm:$0xff]  ;;  %v7738_v46 = vld [vmem:[%s10220_s0 + $0x58] sm:$0xff] }
 0x7a2   :  { %7537 = vpow2.f32 %v3575_v32  ;;  %v3579_v14 = vmul.f32 1.442695, %v3568_v19  ;;  %7339 = vmatpush3.bf16.msra.mxu1 %v9084_v3  ;;  %v5609_v3 = vld [vmem:[%s10219_s3 + $0x68] sm:$0xff]  ;;  %v7734_v32 = vld [vmem:[%s10220_s0 + $0x38] sm:$0xff]  ;;  %v7737_v19 = vld [vmem:[%s10220_s0 + $0x50] sm:$0xff] }
 0x7a3   :  { %v9258_v36 = vpop.eup %7527  ;;  %v3577_v27 = vmul.f32 1.442695, %v3567_v56  ;;  %7341 = vmatprep.subr.bf16.mxu1 %v9086_v44  ;;  %v3558_v25 = vpop.xlane.xlu1 %3557  ;;  %v7356_v55 = vpack.c.bf16 %v5609_v3, %v5608_v13  ;;  %v7739_v56 = vld [vmem:[%s10220_s0 + $0x60] sm:$0xff]  ;;  %v5632_v3 = vld [vmem:[%s10222_s5 + $0x70] sm:$0xff] }
 0x7a4   :  { %v9261_v9 = vpop.eup %7529  ;;  %v3570_v21 = vsub.f32 %v9162_v47, %v3558_v25  ;;  %6766 = vmatprep.mubr.msk.f32.mxu1 %vm724_vm3, %v9258_v36  ;;  %v3555_v59 = vpop.xlane.xlu0 %3554  ;;  %v7742_v25 = vld [vmem:[%s10220_s0 + $0x78] sm:$0xff] }
 0x7a5   :  { %7539 = vpow2.f32 %v3577_v27  ;;  %v3569_v15 = vsub.f32 %v9164_v4, %v3555_v59  ;;  %6767 = vmatmul.mubr.msk.f32.gmra.mrb[108].mxu1 %vm724_vm3, %v9261_v9  ;;  %v7741_v27 = vld [vmem:[%s10220_s0 + $0x70] sm:$0xff]  ;;  %v5631_v59 = vld [vmem:[%s10222_s5 + $0x68] sm:$0xff] }
 0x7a6   :  { %7541 = vpow2.f32 %v3579_v14  ;;  %v3583_v47 = vmul.f32 1.442695, %v3570_v21  ;;  %7343 = vmatpush3.bf16.msra.mxu1 %v9086_v44  ;;  %v5611_v44 = vld [vmem:[%s10219_s3 + $0x78] sm:$0xff]  ;;  %v7740_v14 = vld [vmem:[%s10220_s0 + $0x68] sm:$0xff]  ;;  %v5630_v21 = vld [vmem:[%s10222_s5 + $0x60] sm:$0xff] }
 0x7a7   :  { %v9276_v40 = vpop.eup %7531  ;;  %v3581_v12 = vmul.f32 1.442695, %v3569_v15  ;;  %7345 = vmatprep.subr.bf16.mxu1 %v9088_v48  ;;  %v3564_v33 = vpop.xlane.xlu1 %3563  ;;  %v7360_v24 = vpack.c.bf16 %v5611_v44, %v5610_v22  ;;  %v7364_v13 = vpack.c.bf16 %v5631_v59, %v5630_v21  ;;  %v5633_v15 = vld [vmem:[%s10222_s5 + $0x78] sm:$0xff] }
 0x7a8   :  { %v9279_v43 = vpop.eup %7533  ;;  %v3572_v31 = vsub.f32 %v9170_v1, %v3564_v33  ;;  %6769 = vmatprep.mubr.msk.f32.mxu1 %vm724_vm3, %v9276_v40  ;;  %v3561_v4 = vpop.xlane.xlu0 %3560  ;;  %v5591_v33 = vld [vmem:[%s10224_s2 + $0x3] ss:$0 sm:$0xff] }
 0x7a9   :  { %7543 = vpow2.f32 %v3581_v12  ;;  %v3571_v41 = vsub.f32 %v9172_v28, %v3561_v4  ;;  %6770 = vmatmul.mubr.msk.f32.gmra.mrb[110].mxu1 %vm724_vm3, %v9279_v43  ;;  %7365 = vmatprep.subr.bf16.mxu0 %v7364_v13 }
 0x7aa   :  { %7545 = vpow2.f32 %v3583_v47  ;;  %v3587_v1 = vmul.f32 1.442695, %v3572_v31  ;;  %7347 = vmatpush3.bf16.msra.mxu1 %v9088_v48  ;;  %7367 = vmatpush3.bf16.msra.mxu0 %v7364_v13  ;;  %v7368_v47 = vpack.c.bf16 %v5633_v15, %v5632_v3 }
 0x7ab   :  { %v9294_v53 = vpop.eup %7535  ;;  %v3585_v18 = vmul.f32 1.442695, %v3571_v41  ;;  %7357 = vmatprep.subr.bf16.mxu1 %v7356_v55 }
 0x7ac   :  { %v9296_v6 = vpop.eup %7537  ;;  %6816 = vmatprep.mubr.msk.f32.mxu1 %vm724_vm3, %v9294_v53  ;;  %7369 = vmatprep.subr.bf16.mxu0 %v7368_v47 }
 0x7ad   :  { %7547 = vpow2.f32 %v3585_v18  ;;  %6817 = vmatmul.mubr.msk.f32.vlgmr.msra.gmra.mrb[112].mxu1 %vm724_vm3, %v9296_v6 }
 0x7ae   :  { %7549 = vpow2.f32 %v3587_v1  ;;  %7359 = vmatpush3.bf16.msra.mxu1 %v7356_v55  ;;  %7371 = vmatpush3.bf16.msra.mxu0 %v7368_v47 }
 0x7af   :  { %v9302_v28 = vpop.eup %7539  ;;  %7361 = vmatprep.subr.bf16.mxu1 %v7360_v24 }
 0x7b0   :  { %v9304_v48 = vpop.eup %7541  ;;  %6819 = vmatprep.mubr.msk.f32.mxu1 %vm724_vm3, %v9302_v28 }
 0x7b1   :  { %6820 = vmatmul.mubr.msk.f32.gmra.mrb[114].mxu1 %vm724_vm3, %v9304_v48  ;;  %6901 = vmatmul.mubr.msk.f32.vlgmr.msra.gmra.mrb[136].mxu0 %vm56_vm0, %v7728_v57 }
 0x7b2   :  { %7363 = vmatpush3.bf16.msra.mxu1 %v7360_v24  ;;  %6903 = vmatprep.mubr.msk.f32.mxu0 %vm56_vm0, %v7729_v34 }
 0x7b3   :  { %v9310_v58 = vpop.eup %7543 }
 0x7b4   :  { %v9312_v30 = vpop.eup %7545  ;;  %6822 = vmatprep.mubr.msk.f32.mxu1 %vm724_vm3, %v9310_v58 }
 0x7b5   :  { %6823 = vmatmul.mubr.msk.f32.gmra.mrb[116].mxu1 %vm724_vm3, %v9312_v30  ;;  %6904 = vmatmul.mubr.msk.f32.gmra.mrb[138].mxu0 %vm56_vm0, %v7730_v8 }
 0x7b7   :  { %v9318_v0 = vpop.eup %7547 }
 0x7b8   :  { %v9320_v52 = vpop.eup %7549  ;;  %6825 = vmatprep.mubr.msk.f32.mxu1 %vm724_vm3, %v9318_v0 }
 0x7b9   :  { %6826 = vmatmul.mubr.msk.f32.gmra.mrb[118].mxu1 %vm724_vm3, %v9320_v52 }
 0x7ba   :  { %6868 = vmatprep.mubr.msk.f32.mxu1 %vm56_vm0, %v9223_v38  ;;  %v7731_v38 = vld [vmem:[%s10220_s0 + $0x20] sm:$0xff] }
 0x7bb   :  { %6906 = vmatprep.mubr.msk.f32.mxu0 %vm56_vm0, %v7731_v38 }
 0x7bc   :  { %6907 = vmatmul.mubr.msk.f32.gmra.mrb[140].mxu0 %vm56_vm0, %v7732_v5 }
 0x7bd   :  { %6869 = vmatmul.mubr.msk.f32.vlgmr.msra.gmra.mrb[120].mxu1 %vm56_vm0, %v7728_v57  ;;  %6909 = vmatprep.mubr.msk.f32.mxu0 %vm56_vm0, %v7733_v50 }
 0x7be   :  { %6871 = vmatprep.mubr.msk.f32.mxu1 %vm56_vm0, %v7729_v34 }
 0x7c0   :  { %6910 = vmatmul.mubr.msk.f32.gmra.mrb[142].mxu0 %vm56_vm0, %v7734_v32 }
 0x7c1   :  { %6872 = vmatmul.mubr.msk.f32.gmra.mrb[122].mxu1 %vm56_vm0, %v7730_v8  ;;  %6912 = vmatprep.mubr.msk.f32.mxu0 %vm56_vm0, %v7735_v26 }
 0x7c2   :  { %6874 = vmatprep.mubr.msk.f32.mxu1 %vm56_vm0, %v7731_v38 }
 0x7c4   :  { %6913 = vmatmul.mubr.msk.f32.gmra.mrb[144].mxu0 %vm56_vm0, %v7736_v20 }
 0x7c5   :  { %6875 = vmatmul.mubr.msk.f32.gmra.mrb[124].mxu1 %vm56_vm0, %v7732_v5  ;;  %6915 = vmatprep.mubr.msk.f32.mxu0 %vm56_vm0, %v7737_v19 }
 0x7c6   :  { %6877 = vmatprep.mubr.msk.f32.mxu1 %vm56_vm0, %v7733_v50 }
 0x7c8   :  { %6916 = vmatmul.mubr.msk.f32.gmra.mrb[146].mxu0 %vm56_vm0, %v7738_v46 }
 0x7c9   :  { %6878 = vmatmul.mubr.msk.f32.gmra.mrb[126].mxu1 %vm56_vm0, %v7734_v32  ;;  %6918 = vmatprep.mubr.msk.f32.mxu0 %vm56_vm0, %v7739_v56 }
 0x7ca   :  { %6880 = vmatprep.mubr.msk.f32.mxu1 %vm56_vm0, %v7735_v26 }
 0x7cc   :  { %6919 = vmatmul.mubr.msk.f32.gmra.mrb[148].mxu0 %vm56_vm0, %v7740_v14 }
 0x7cd   :  { %6881 = vmatmul.mubr.msk.f32.gmra.mrb[128].mxu1 %vm56_vm0, %v7736_v20  ;;  %6921 = vmatprep.mubr.msk.f32.mxu0 %vm56_vm0, %v7741_v27 }
 0x7ce   :  { %6883 = vmatprep.mubr.msk.f32.mxu1 %vm56_vm0, %v7737_v19 }
 0x7d0   :  { %6922 = vmatmul.mubr.msk.f32.gmra.mrb[150].mxu0 %vm56_vm0, %v7742_v25 }
 0x7d1   :  { %6884 = vmatmul.mubr.msk.f32.gmra.mrb[130].mxu1 %vm56_vm0, %v7738_v46 }
 0x7d2   :  { %6886 = vmatprep.mubr.msk.f32.mxu1 %vm56_vm0, %v7739_v56 }
 0x7d5   :  { %6887 = vmatmul.mubr.msk.f32.gmra.mrb[132].mxu1 %vm56_vm0, %v7740_v14 }
 0x7d6   :  { %6889 = vmatprep.mubr.msk.f32.mxu1 %vm56_vm0, %v7741_v27 }
 0x7d9   :  { %6890 = vmatmul.mubr.msk.f32.gmra.mrb[134].mxu1 %vm56_vm0, %v7742_v25 }
 0x7f5   :  { %v6838_v12 = vpop.f32.mrb[120].mxu0 }
 0x7f6   :  { %v9412_v55 = vadd.f32 %v6838_v12, %v5591_v33  ;;  %v3837_v31 = vpop.f32.mrb[121].mxu0 }
 0x7f7   :  { %v3838_v4 = vadd.f32 %v5591_v33, %v3837_v31 }
 0x7f9   :  { %v6841_v22 = vpop.f32.mrb[122].mxu0  ;;  %6940 = vmatprep.mubr.msk.f32.mxu1 %vm570_vm1, %v3838_v4 }
 0x7fa   :  { %v9415_v44 = vadd.f32 %v6841_v22, %v5591_v33  ;;  %v3847_v41 = vpop.f32.mrb[123].mxu0 }
 0x7fb   :  { %v9418_v1 = vadd.f32 %v5591_v33, %v3847_v41 }
 0x7fd   :  { %v6844_v18 = vpop.f32.mrb[124].mxu0 }
 0x7fe   :  { %v9423_v24 = vadd.f32 %v6844_v18, %v5591_v33  ;;  %v3857_v57 = vpop.f32.mrb[125].mxu0 }
 0x7ff   :  { %v9426_v34 = vadd.f32 %v5591_v33, %v3857_v57 }
 0x801   :  { %v6847_v8 = vpop.f32.mrb[126].mxu0 }
 0x802   :  { %v9428_v38 = vadd.f32 %v6847_v8, %v5591_v33  ;;  %v3867_v5 = vpop.f32.mrb[127].mxu0 }
 0x803   :  { %v9431_v50 = vadd.f32 %v5591_v33, %v3867_v5 }
 0x805   :  { %v6850_v32 = vpop.f32.mrb[128].mxu0 }
 0x806   :  { %v9433_v26 = vadd.f32 %v6850_v32, %v5591_v33  ;;  %v3877_v20 = vpop.f32.mrb[129].mxu0 }
 0x807   :  { %v3878_v19 = vadd.f32 %v5591_v33, %v3877_v20 }
 0x809   :  { %v6853_v46 = vpop.f32.mrb[130].mxu0  ;;  %6996 = vmatprep.mubr.msk.f32.mxu0 %vm570_vm1, %v3878_v19 }
 0x80a   :  { %v9435_v56 = vadd.f32 %v6853_v46, %v5591_v33  ;;  %v3887_v14 = vpop.f32.mrb[131].mxu0 }
 0x80b   :  { %v9438_v27 = vadd.f32 %v5591_v33, %v3887_v14 }
 0x80d   :  { %v6856_v21 = vpop.f32.mrb[132].mxu0 }
 0x80e   :  { %v9440_v59 = vadd.f32 %v6856_v21, %v5591_v33  ;;  %v3897_v13 = vpop.f32.mrb[133].mxu0 }
 0x80f   :  { %v9442_v25 = vadd.f32 %v5591_v33, %v3897_v13 }
 0x811   :  { %v6859_v3 = vpop.f32.mrb[134].mxu0 }
 0x812   :  { %v9444_v15 = vadd.f32 %v6859_v3, %v5591_v33  ;;  %v3907_v47 = vpop.f32.mrb[135].mxu0  ;;  %v5613_v3 = vld [vmem:[%s10223_s4 + $0x3] ss:$0 sm:$0xff] }
 0x813   :  { %v9446_v12 = vadd.f32 %v5591_v33, %v3907_v47 }
 0x870   :  { %v9448_v31 = vpop.f32.mrb[104].mxu1 }
 0x871   :  { %10296 = vst [vmem:[#allocation51_spill] sm:$0xff] %v9448_v31  ;;  %v9450_v4 = vpop.f32.mrb[105].mxu1 }
 0x872   :  { %10297 = vst [vmem:[#allocation52_spill] sm:$0xff] %v9450_v4 }
 0x874   :  { %v9452_v22 = vpop.f32.mrb[106].mxu1 }
 0x875   :  { %10298 = vst [vmem:[#allocation53_spill] sm:$0xff] %v9452_v22  ;;  %v9454_v41 = vpop.f32.mrb[107].mxu1 }
 0x876   :  { %10299 = vst [vmem:[#allocation54_spill] sm:$0xff] %v9454_v41 }
 0x878   :  { %v9456_v18 = vpop.f32.mrb[108].mxu1 }
 0x879   :  { %10300 = vst [vmem:[#allocation55_spill] sm:$0xff] %v9456_v18  ;;  %v9458_v57 = vpop.f32.mrb[109].mxu1 }
 0x87a   :  { %10301 = vst [vmem:[#allocation56_spill] sm:$0xff] %v9458_v57 }
 0x87c   :  { %v9460_v8 = vpop.f32.mrb[110].mxu1 }
 0x87d   :  { %10302 = vst [vmem:[#allocation57_spill] sm:$0xff] %v9460_v8  ;;  %v9462_v5 = vpop.f32.mrb[111].mxu1 }
 0x87e   :  { %10303 = vst [vmem:[#allocation58_spill] sm:$0xff] %v9462_v5 }
 0x880   :  { %v9464_v32 = vpop.f32.mrb[112].mxu1 }
 0x881   :  { %10304 = vst [vmem:[#allocation59_spill] sm:$0xff] %v9464_v32  ;;  %v9466_v33 = vpop.f32.mrb[113].mxu1 }
 0x882   :  { %10305 = vst [vmem:[#allocation60_spill] sm:$0xff] %v9466_v33 }
 0x884   :  { %v9468_v20 = vpop.f32.mrb[114].mxu1 }
 0x885   :  { %10306 = vst [vmem:[#allocation61_spill] sm:$0xff] %v9468_v20  ;;  %v9470_v19 = vpop.f32.mrb[115].mxu1 }
 0x886   :  { %10307 = vst [vmem:[#allocation62_spill] sm:$0xff] %v9470_v19 }
 0x888   :  { %v9472_v46 = vpop.f32.mrb[116].mxu1 }
 0x889   :  { %10308 = vst [vmem:[#allocation63_spill] sm:$0xff] %v9472_v46  ;;  %v9474_v14 = vpop.f32.mrb[117].mxu1 }
 0x88a   :  { %10309 = vst [vmem:[#allocation64_spill] sm:$0xff] %v9474_v14 }
 0x88c   :  { %v9476_v21 = vpop.f32.mrb[118].mxu1 }
 0x88d   :  { %10310 = vst [vmem:[#allocation65_spill] sm:$0xff] %v9476_v21  ;;  %v9478_v13 = vpop.f32.mrb[119].mxu1 }
 0x88e   :  { %10311 = vst [vmem:[#allocation66_spill] sm:$0xff] %v9478_v13 }
 0x890   :  { %v6870_v47 = vpop.f32.mrb[120].mxu1 }
 0x891   :  { %v4001_v32 = vadd.f32 %v6870_v47, %v5613_v3  ;;  %v3995_v5 = vpop.f32.mrb[121].mxu1 }
 0x892   :  { %v3996_v33 = vadd.f32 %v5613_v3, %v3995_v5 }
 0x894   :  { %v7372_v8 = vpack.c.bf16 %v4001_v32, %v3996_v33  ;;  %v6873_v20 = vpop.f32.mrb[122].mxu1 }
 0x895   :  { %v4011_v57 = vadd.f32 %v6873_v20, %v5613_v3  ;;  %v4005_v19 = vpop.f32.mrb[123].mxu1 }
 0x896   :  { %v4006_v18 = vadd.f32 %v5613_v3, %v4005_v19  ;;  %7374 = vmatprep.subr.msk.bf16.mxu1 %vm8012_vm2, %v7372_v8 }
 0x897   :  { %7377 = vmatpush3.bf16.xpose.msk.msra.mxu1 %vm8012_vm2, %v7372_v8 }
 0x898   :  { %v7378_v13 = vpack.c.bf16 %v4011_v57, %v4006_v18  ;;  %v6876_v21 = vpop.f32.mrb[124].mxu1 }
 0x899   :  { %v4021_v14 = vadd.f32 %v6876_v21, %v5613_v3  ;;  %v4015_v46 = vpop.f32.mrb[125].mxu1 }
 0x89a   :  { %v4016_v41 = vadd.f32 %v5613_v3, %v4015_v46  ;;  %7380 = vmatprep.subr.msk.bf16.mxu1 %vm8012_vm2, %v7378_v13 }
 0x89c   :  { %v7384_v5 = vpack.c.bf16 %v4021_v14, %v4016_v41  ;;  %v6879_v32 = vpop.f32.mrb[126].mxu1 }
 0x89d   :  { %v4031_v33 = vadd.f32 %v6879_v32, %v5613_v3  ;;  %v4025_v20 = vpop.f32.mrb[127].mxu1 }
 0x89e   :  { %v4026_v47 = vadd.f32 %v5613_v3, %v4025_v20 }
 0x89f   :  { %7383 = vmatpush3.bf16.xpose.msk.msra.mxu1 %vm8012_vm2, %v7378_v13 }
 0x8a0   :  { %v7390_v19 = vpack.c.bf16 %v4031_v33, %v4026_v47  ;;  %v6882_v22 = vpop.f32.mrb[128].mxu1  ;;  %7386 = vmatprep.subr.msk.bf16.mxu1 %vm8012_vm2, %v7384_v5 }
 0x8a1   :  { %v4041_v18 = vadd.f32 %v6882_v22, %v5613_v3  ;;  %v4035_v57 = vpop.f32.mrb[129].mxu1 }
 0x8a2   :  { %v4036_v8 = vadd.f32 %v5613_v3, %v4035_v57 }
 0x8a4   :  { %v7412_v46 = vpack.c.bf16 %v4041_v18, %v4036_v8  ;;  %v6885_v21 = vpop.f32.mrb[130].mxu1 }
 0x8a5   :  { %v4051_v4 = vadd.f32 %v6885_v21, %v5613_v3  ;;  %v4045_v31 = vpop.f32.mrb[131].mxu1 }
 0x8a6   :  { %7414 = vmatprep.subr.msk.bf16.mxu0 %vm8012_vm2, %v7412_v46  ;;  %v4046_v41 = vadd.f32 %v5613_v3, %v4045_v31 }
 0x8a7   :  { %7389 = vmatpush3.bf16.xpose.msk.msra.mxu1 %vm8012_vm2, %v7384_v5  ;;  %7417 = vmatpush3.bf16.xpose.msk.msra.mxu0 %vm8012_vm2, %v7412_v46 }
 0x8a8   :  { %v7418_v14 = vpack.c.bf16 %v4051_v4, %v4046_v41  ;;  %7392 = vmatprep.subr.msk.bf16.mxu1 %vm8012_vm2, %v7390_v19  ;;  %v6888_v22 = vpop.f32.mrb[132].mxu1 }
 0x8a9   :  { %v4061_v13 = vadd.f32 %v6888_v22, %v5613_v3  ;;  %v4055_v32 = vpop.f32.mrb[133].mxu1 }
 0x8aa   :  { %7420 = vmatprep.subr.msk.bf16.mxu0 %vm8012_vm2, %v7418_v14  ;;  %v4056_v33 = vadd.f32 %v5613_v3, %v4055_v32 }
 0x8ac   :  { %v7424_v20 = vpack.c.bf16 %v4061_v13, %v4056_v33  ;;  %v6891_v47 = vpop.f32.mrb[134].mxu1 }
 0x8ad   :  { %v4071_v31 = vadd.f32 %v6891_v47, %v5613_v3  ;;  %v4065_v18 = vpop.f32.mrb[135].mxu1 }
 0x8ae   :  { %v4066_v57 = vadd.f32 %v5613_v3, %v4065_v18 }
 0x8af   :  { %7395 = vmatpush3.bf16.xpose.msk.msra.mxu1 %vm8012_vm2, %v7390_v19  ;;  %7423 = vmatpush3.bf16.xpose.msk.msra.mxu0 %vm8012_vm2, %v7418_v14 }
 0x8b0   :  { %7426 = vmatprep.subr.msk.bf16.mxu0 %vm8012_vm2, %v7424_v20  ;;  %v7430_v4 = vpack.c.bf16 %v4071_v31, %v4066_v57 }
 0x8b6   :  { %6941 = vmatmul.mubr.msk.f32.vlgmr.msra.gmra.mrb[136].mxu1 %vm570_vm1, %v9412_v55  ;;  %v6902_v55 = vpop.f32.mrb[136].mxu0 }
 0x8b7   :  { %7429 = vmatpush3.bf16.xpose.msk.msra.mxu0 %vm8012_vm2, %v7424_v20  ;;  %6943 = vmatprep.mubr.msk.f32.mxu1 %vm570_vm1, %v9418_v1  ;;  %v4153_v1 = vpop.f32.mrb[137].mxu0 }
 0x8b8   :  { %7432 = vmatprep.subr.msk.bf16.mxu0 %vm8012_vm2, %v7430_v4 }
 0x8ba   :  { %6944 = vmatmul.mubr.msk.f32.gmra.mrb[138].mxu1 %vm570_vm1, %v9415_v44  ;;  %v4159_v44 = vadd.f32 %v6902_v55, %v5635_v39 }
 0x8bb   :  { %6946 = vmatprep.mubr.msk.f32.mxu1 %vm570_vm1, %v9426_v34 }
 0x8be   :  { %6947 = vmatmul.mubr.msk.f32.gmra.mrb[140].mxu1 %vm570_vm1, %v9423_v24  ;;  %v4154_v24 = vadd.f32 %v5635_v39, %v4153_v1 }
 0x8bf   :  { %7435 = vmatpush3.bf16.xpose.msk.msra.mxu0 %vm8012_vm2, %v7430_v4  ;;  %6949 = vmatprep.mubr.msk.f32.mxu1 %vm570_vm1, %v9431_v50 }
 0x8c0   :  { %v7396_v34 = vpack.c.bf16 %v4159_v44, %v4154_v24 }
 0x8c2   :  { %6950 = vmatmul.mubr.msk.f32.gmra.mrb[142].mxu1 %vm570_vm1, %v9428_v38  ;;  %v6905_v38 = vpop.f32.mrb[138].mxu0  ;;  %7397 = vmatprep.subr.bf16.mxu1 %v7396_v34 }
 0x8c3   :  { %v4169_v50 = vadd.f32 %v6905_v38, %v5635_v39  ;;  %7399 = vmatpush3.bf16.msra.mxu1 %v7396_v34 }
 0x8c6   :  { %6997 = vmatmul.mubr.msk.f32.vlgmr.msra.gmra.mrb[152].mxu0 %vm570_vm1, %v9433_v26  ;;  %v4163_v26 = vpop.f32.mrb[139].mxu0 }
 0x8c7   :  { %6999 = vmatprep.mubr.msk.f32.mxu0 %vm570_vm1, %v9438_v27 }
 0x8ca   :  { %7000 = vmatmul.mubr.msk.f32.gmra.mrb[154].mxu0 %vm570_vm1, %v9435_v56  ;;  %v4164_v56 = vadd.f32 %v5635_v39, %v4163_v26 }
 0x8cb   :  { %7002 = vmatprep.mubr.msk.f32.mxu0 %vm570_vm1, %v9442_v25 }
 0x8cc   :  { %v7400_v27 = vpack.c.bf16 %v4169_v50, %v4164_v56  ;;  %v5653_v56 = vld [vmem:[%s10226_s7 + $0xc8] sm:$0xff] }
 0x8ce   :  { %7003 = vmatmul.mubr.msk.f32.gmra.mrb[156].mxu0 %vm570_vm1, %v9440_v59  ;;  %v6908_v59 = vpop.f32.mrb[140].mxu0  ;;  %7401 = vmatprep.subr.bf16.mxu1 %v7400_v27 }
 0x8cf   :  { %7005 = vmatprep.mubr.msk.f32.mxu0 %vm570_vm1, %v9446_v12  ;;  %v4179_v25 = vadd.f32 %v6908_v59, %v5635_v39  ;;  %v4173_v12 = vpop.f32.mrb[141].mxu0  ;;  %7403 = vmatpush3.bf16.msra.mxu1 %v7400_v27  ;;  %v5652_v27 = vld [vmem:[%s10226_s7 + $0xc0] sm:$0xff] }
 0x8d0   :  { %v6911_v5 = vpop.f32.mrb[142].mxu0 }
 0x8d1   :  { %v4189_v19 = vadd.f32 %v6911_v5, %v5635_v39  ;;  %v4183_v8 = vpop.f32.mrb[143].mxu0  ;;  %v5654_v5 = vld [vmem:[%s10226_s7 + $0xd0] sm:$0xff] }
 0x8d2   :  { %7006 = vmatmul.mubr.msk.f32.gmra.mrb[158].mxu0 %vm570_vm1, %v9444_v15  ;;  %v4174_v15 = vadd.f32 %v5635_v39, %v4173_v12  ;;  %v4184_v46 = vadd.f32 %v5635_v39, %v4183_v8  ;;  %v6914_v41 = vpop.f32.mrb[144].mxu0 }
 0x8d3   :  { %v4199_v14 = vadd.f32 %v6914_v41, %v5635_v39  ;;  %v4193_v22 = vpop.f32.mrb[145].mxu0 }
 0x8d4   :  { %v7404_v3 = vpack.c.bf16 %v4179_v25, %v4174_v15  ;;  %v7408_v21 = vpack.c.bf16 %v4189_v19, %v4184_v46  ;;  %v4194_v13 = vadd.f32 %v5635_v39, %v4193_v22  ;;  %v6917_v32 = vpop.f32.mrb[146].mxu0 }
 0x8d5   :  { %v4209_v33 = vadd.f32 %v6917_v32, %v5635_v39  ;;  %v4203_v47 = vpop.f32.mrb[147].mxu0 }
 0x8d6   :  { %7405 = vmatprep.subr.bf16.mxu1 %v7404_v3  ;;  %v9546_v20 = vpack.c.bf16 %v4199_v14, %v4194_v13  ;;  %v4204_v31 = vadd.f32 %v5635_v39, %v4203_v47  ;;  %v6920_v18 = vpop.f32.mrb[148].mxu0  ;;  %v5657_v14 = vld [vmem:[%s10226_s7 + $0xe8] sm:$0xff]  ;;  %v5656_v13 = vld [vmem:[%s10226_s7 + $0xe0] sm:$0xff] }
 0x8d7   :  { %7407 = vmatpush3.bf16.msra.mxu1 %v7404_v3  ;;  %v4219_v57 = vadd.f32 %v6920_v18, %v5635_v39  ;;  %v4213_v55 = vpop.f32.mrb[149].mxu0 }
 0x8d8   :  { %7409 = vmatprep.subr.bf16.mxu1 %v7408_v21  ;;  %v9549_v4 = vpack.c.bf16 %v4209_v33, %v4204_v31  ;;  %v4214_v44 = vadd.f32 %v5635_v39, %v4213_v55  ;;  %v6923_v1 = vpop.f32.mrb[150].mxu0 }
 0x8d9   :  { %v4229_v24 = vadd.f32 %v6923_v1, %v5635_v39  ;;  %v4223_v38 = vpop.f32.mrb[151].mxu0 }
 0x8da   :  { %v9551_v34 = vpack.c.bf16 %v4219_v57, %v4214_v44  ;;  %v4224_v50 = vadd.f32 %v5635_v39, %v4223_v38  ;;  %v5655_v39 = vld [vmem:[%s10226_s7 + $0xd8] sm:$0xff]  ;;  %v5658_v44 = vld [vmem:[%s10226_s7 + $0xf0] sm:$0xff] }
 0x8db   :  { %7411 = vmatpush3.bf16.msra.mxu1 %v7408_v21  ;;  %v5659_v57 = vld [vmem:[%s10226_s7 + $0xf8] sm:$0xff]  ;;  %s7743_s7 = smov 8  }
 0x8dc   :  { %7437 = vmatprep.subr.bf16.mxu1 %v9546_v20  ;;  %v9553_v26 = vpack.c.bf16 %v4229_v24, %v4224_v50 }
 0x989   :  { %v6942_v59 = vpop.f32.mrb[136].mxu1 }
 0x98a   :  { %v9561_v25 = vadd.f32 %v6942_v59, %v5653_v56  ;;  %v4355_v12 = vpop.f32.mrb[137].mxu1 }
 0x98b   :  { %v9563_v15 = vadd.f32 %v5652_v27, %v4355_v12 }
 0x98c   :  { %v4397_v3 = vsel %vm724_vm3, %v9561_v25, -inf }
 0x98d   :  { %4398 = vmax.xlane.f32.xlu1 %v4397_v3  ;;  %v6945_v19 = vpop.f32.mrb[138].mxu1  ;;  %v4394_v8 = vsel %vm724_vm3, %v9563_v15, -inf }
 0x98e   :  { %v9575_v46 = vadd.f32 %v6945_v19, %v5655_v39  ;;  %v4365_v21 = vpop.f32.mrb[139].mxu1  ;;  %4395 = vmax.xlane.f32.xlu0 %v4394_v8 }
 0x98f   :  { %v9577_v41 = vadd.f32 %v5654_v5, %v4365_v21 }
 0x990   :  { %v4403_v22 = vsel %vm724_vm3, %v9575_v46, -inf }
 0x991   :  { %4404 = vmax.xlane.f32.xlu1 %v4403_v22  ;;  %v6948_v32 = vpop.f32.mrb[140].mxu1  ;;  %v4400_v33 = vsel %vm724_vm3, %v9577_v41, -inf }
 0x992   :  { %v9589_v47 = vadd.f32 %v6948_v32, %v5657_v14  ;;  %v4375_v31 = vpop.f32.mrb[141].mxu1  ;;  %4401 = vmax.xlane.f32.xlu0 %v4400_v33 }
 0x993   :  { %v9591_v18 = vadd.f32 %v5656_v13, %v4375_v31 }
 0x994   :  { %v4409_v55 = vsel %vm724_vm3, %v9589_v47, -inf }
 0x995   :  { %4410 = vmax.xlane.f32.xlu1 %v4409_v55  ;;  %v6951_v1 = vpop.f32.mrb[142].mxu1  ;;  %v4406_v24 = vsel %vm724_vm3, %v9591_v18, -inf }
 0x996   :  { %v9603_v38 = vadd.f32 %v6951_v1, %v5659_v57  ;;  %v4385_v50 = vpop.f32.mrb[143].mxu1  ;;  %4407 = vmax.xlane.f32.xlu0 %v4406_v24 }
 0x997   :  { %v9605_v59 = vadd.f32 %v5658_v44, %v4385_v50 }
 0x998   :  { %v4415_v12 = vsel %vm724_vm3, %v9603_v38, -inf }
 0x999   :  { %v6998_v3 = vpop.f32.mrb[152].mxu0  ;;  %4416 = vmax.xlane.f32.xlu1 %v4415_v12  ;;  %v4412_v19 = vsel %vm724_vm3, %v9605_v59, -inf }
 0x99a   :  { %v9611_v8 = vadd.f32 %v6998_v3, %v5653_v56  ;;  %v4725_v21 = vpop.f32.mrb[153].mxu0  ;;  %4413 = vmax.xlane.f32.xlu0 %v4412_v19 }
 0x99b   :  { %v9613_v22 = vadd.f32 %v5652_v27, %v4725_v21 }
 0x99c   :  { %v4767_v32 = vsel %vm724_vm3, %v9611_v8, -inf }
 0x99d   :  { %v7001_v33 = vpop.f32.mrb[154].mxu0  ;;  %4768 = vmax.xlane.f32.xlu1 %v4767_v32  ;;  %v4764_v31 = vsel %vm724_vm3, %v9613_v22, -inf }
 0x99e   :  { %v9619_v55 = vadd.f32 %v7001_v33, %v5655_v39  ;;  %v4735_v1 = vpop.f32.mrb[155].mxu0  ;;  %4765 = vmax.xlane.f32.xlu0 %v4764_v31 }
 0x99f   :  { %v9621_v24 = vadd.f32 %v5654_v5, %v4735_v1  ;;  %v776_v1 = vsel %vm724_vm3, %v8263_v11, 0.0  ;;  %v785_v11 = vsel %vm724_vm3, %v8275_v35, 0.0  ;;  %v1152_v35 = vsel %vm724_vm3, %v8327_v7, 0.0 }
 0x9a0   :  { %v4773_v56 = vsel %vm724_vm3, %v9619_v55, -inf }
 0x9a1   :  { %v7004_v50 = vpop.f32.mrb[156].mxu0  ;;  %4774 = vmax.xlane.f32.xlu1 %v4773_v56  ;;  %v4770_v27 = vsel %vm724_vm3, %v9621_v24, -inf  ;;  %v779_v56 = vsel %vm724_vm3, %v8261_v10, 0.0  ;;  %v1146_v10 = vsel %vm724_vm3, %v8319_v62, 0.0 }
 0x9a2   :  { %v9627_v12 = vadd.f32 %v7004_v50, %v5657_v14  ;;  %v4745_v3 = vpop.f32.mrb[157].mxu0  ;;  %4771 = vmax.xlane.f32.xlu0 %v4770_v27  ;;  %v788_v50 = vsel %vm724_vm3, %v8284_v54, 0.0  ;;  %v1143_v54 = vsel %vm724_vm3, %v8305_v61, 0.0  ;;  %v10312_v27 = vld [vmem:[#allocation3_spill] sm:$0xff] }
 0x9a3   :  { %v9629_v19 = vadd.f32 %v5656_v13, %v4745_v3  ;;  %v10313_v3 = vld [vmem:[#allocation2_spill] sm:$0xff] }
 0x9a4   :  { %v4779_v39 = vsel %vm724_vm3, %v9627_v12, -inf  ;;  %v1155_v62 = vsel %vm724_vm3, %v10313_v3, 0.0 }
 0x9a5   :  { %v7007_v21 = vpop.f32.mrb[158].mxu0  ;;  %4780 = vmax.xlane.f32.xlu1 %v4779_v39  ;;  %v4776_v5 = vsel %vm724_vm3, %v9629_v19, -inf  ;;  %v10314_v39 = vld [vmem:[#allocation5_spill] sm:$0xff] }
 0x9a6   :  { %v9635_v32 = vadd.f32 %v7007_v21, %v5659_v57  ;;  %v4755_v33 = vpop.f32.mrb[159].mxu0  ;;  %4777 = vmax.xlane.f32.xlu0 %v4776_v5  ;;  %v773_v57 = vsel %vm724_vm3, %v8255_v63, 0.0  ;;  %v794_v63 = vsel %vm724_vm3, %v8302_v45, 0.0  ;;  %v1149_v45 = vsel %vm724_vm3, %v8321_v2, 0.0  ;;  %v10315_v21 = vld [vmem:[#allocation4_spill] sm:$0xff] }
 0x9a7   :  { %v9637_v31 = vadd.f32 %v5658_v44, %v4755_v33  ;;  %v782_v44 = vsel %vm724_vm3, %v8272_v37, 0.0  ;;  %v791_v37 = vsel %vm724_vm3, %v8287_v49, 0.0  ;;  %v1158_v49 = vsel %vm724_vm3, %v10312_v27, 0.0 }
 0x9a8   :  { %v4785_v14 = vsel %vm724_vm3, %v9635_v32, -inf  ;;  %v1164_v61 = vsel %vm724_vm3, %v10314_v39, 0.0  ;;  %v1161_v7 = vsel %vm724_vm3, %v10315_v21, 0.0  ;;  %v1999_v2 = vsel %vm724_vm3, %v8785_v16, 0.0 }
 0x9a9   :  { %4786 = vmax.xlane.f32.xlu1 %v4785_v14  ;;  %v4782_v13 = vsel %vm724_vm3, %v9637_v31, -inf  ;;  %v1996_v5 = vsel %vm724_vm3, %v8783_v60, 0.0  ;;  %v2005_v33 = vsel %vm724_vm3, %v8797_v23, 0.0  ;;  %v10316_v14 = vld [vmem:[#allocation22_spill] sm:$0xff] }
 0x9aa   :  { %4783 = vmax.xlane.f32.xlu0 %v4782_v13  ;;  %v2002_v13 = vsel %vm724_vm3, %v10316_v14, 0.0  ;;  %v3228_v14 = vsel %vm724_vm3, %v9249_v29, 0.0  ;;  %v3237_v29 = vsel %vm724_vm3, %v9276_v40, 0.0  ;;  %v3604_v40 = vsel %vm724_vm3, %v9312_v30, 0.0 }
 0x9ad   :  { %777 = vadd.xlane.f32.xlu1 %v776_v1  ;;  %v10317_v1 = vld [vmem:[#allocation24_spill] sm:$0xff] }
 0x9ae   :  { %774 = vadd.xlane.f32.xlu0 %v773_v57  ;;  %v2011_v57 = vsel %vm724_vm3, %v10317_v1, 0.0  ;;  %v3234_v1 = vsel %vm724_vm3, %v9261_v9, 0.0  ;;  %v3589_v9 = vsel %vm724_vm3, %v9294_v53, 0.0  ;;  %v3610_v53 = vsel %vm724_vm3, %v9320_v52, 0.0 }
 0x9b1   :  { %783 = vadd.xlane.f32.xlu1 %v782_v44  ;;  %v10318_v44 = vld [vmem:[#allocation23_spill] sm:$0xff] }
 0x9b2   :  { %780 = vadd.xlane.f32.xlu0 %v779_v56  ;;  %v2008_v16 = vsel %vm724_vm3, %v10318_v44, 0.0  ;;  %v10319_v56 = vld [vmem:[#allocation26_spill] sm:$0xff] }
 0x9b3   :  { %v2017_v60 = vsel %vm724_vm3, %v10319_v56, 0.0 }
 0x9b5   :  { %789 = vadd.xlane.f32.xlu1 %v788_v50  ;;  %v10320_v50 = vld [vmem:[#allocation25_spill] sm:$0xff] }
 0x9b6   :  { %786 = vadd.xlane.f32.xlu0 %v785_v11  ;;  %v2014_v23 = vsel %vm724_vm3, %v10320_v50, 0.0  ;;  %v10321_v11 = vld [vmem:[#allocation28_spill] sm:$0xff] }
 0x9b9   :  { %795 = vadd.xlane.f32.xlu1 %v794_v63  ;;  %v2369_v63 = vsel %vm724_vm3, %v10321_v11, 0.0 }
 0x9ba   :  { %792 = vadd.xlane.f32.xlu0 %v791_v37  ;;  %v10322_v37 = vld [vmem:[#allocation27_spill] sm:$0xff] }
 0x9bd   :  { %1147 = vadd.xlane.f32.xlu1 %v1146_v10  ;;  %v2366_v10 = vsel %vm724_vm3, %v10322_v37, 0.0 }
 0x9be   :  { %1144 = vadd.xlane.f32.xlu0 %v1143_v54  ;;  %v10323_v54 = vld [vmem:[#allocation30_spill] sm:$0xff] }
 0x9c1   :  { %1153 = vadd.xlane.f32.xlu1 %v1152_v35  ;;  %v2375_v35 = vsel %vm724_vm3, %v10323_v54, 0.0 }
 0x9c2   :  { %1150 = vadd.xlane.f32.xlu0 %v1149_v45  ;;  %v10324_v45 = vld [vmem:[#allocation29_spill] sm:$0xff] }
 0x9c3   :  { %v2372_v27 = vsel %vm724_vm3, %v10324_v45, 0.0 }
 0x9c5   :  { %1159 = vadd.xlane.f32.xlu1 %v1158_v49  ;;  %v10325_v49 = vld [vmem:[#allocation32_spill] sm:$0xff] }
 0x9c6   :  { %1156 = vadd.xlane.f32.xlu0 %v1155_v62  ;;  %v2381_v3 = vsel %vm724_vm3, %v10325_v49, 0.0  ;;  %v10326_v62 = vld [vmem:[#allocation31_spill] sm:$0xff] }
 0x9c7   :  { %v2378_v39 = vsel %vm724_vm3, %v10326_v62, 0.0 }
 0x9c9   :  { %1165 = vadd.xlane.f32.xlu1 %v1164_v61  ;;  %v10327_v61 = vld [vmem:[#allocation34_spill] sm:$0xff] }
 0x9ca   :  { %1162 = vadd.xlane.f32.xlu0 %v1161_v7  ;;  %v2387_v21 = vsel %vm724_vm3, %v10327_v61, 0.0  ;;  %v10328_v7 = vld [vmem:[#allocation33_spill] sm:$0xff] }
 0x9cd   :  { %2000 = vadd.xlane.f32.xlu1 %v1999_v2  ;;  %v2384_v2 = vsel %vm724_vm3, %v10328_v7, 0.0 }
 0x9ce   :  { %1997 = vadd.xlane.f32.xlu0 %v1996_v5  ;;  %v3222_v5 = vsel %vm724_vm3, %v9237_v17, 0.0  ;;  %v3231_v17 = vsel %vm724_vm3, %v9258_v36, 0.0  ;;  %v3598_v36 = vsel %vm724_vm3, %v9304_v48, 0.0  ;;  %v3607_v48 = vsel %vm724_vm3, %v9318_v0, 0.0 }
 0x9d1   :  { %2006 = vadd.xlane.f32.xlu1 %v2005_v33  ;;  %v3219_v33 = vsel %vm724_vm3, %v9235_v51, 0.0  ;;  %v3240_v51 = vsel %vm724_vm3, %v9279_v43, 0.0  ;;  %v3595_v43 = vsel %vm724_vm3, %v9302_v28, 0.0 }
 0x9d2   :  { %2003 = vadd.xlane.f32.xlu0 %v2002_v13  ;;  %v3225_v13 = vsel %vm724_vm3, %v9246_v42, 0.0  ;;  %v3592_v42 = vsel %vm724_vm3, %v9296_v6, 0.0  ;;  %v3601_v6 = vsel %vm724_vm3, %v9310_v58, 0.0 }
 0x9d5   :  { %2012 = vadd.xlane.f32.xlu1 %v2011_v57 }
 0x9d6   :  { %2009 = vadd.xlane.f32.xlu0 %v2008_v16 }
 0x9d9   :  { %2018 = vadd.xlane.f32.xlu1 %v2017_v60 }
 0x9da   :  { %2015 = vadd.xlane.f32.xlu0 %v2014_v23 }
 0x9dd   :  { %2370 = vadd.xlane.f32.xlu1 %v2369_v63 }
 0x9de   :  { %2367 = vadd.xlane.f32.xlu0 %v2366_v10 }
 0x9e1   :  { %2376 = vadd.xlane.f32.xlu1 %v2375_v35 }
 0x9e2   :  { %2373 = vadd.xlane.f32.xlu0 %v2372_v27 }
 0x9e5   :  { %2382 = vadd.xlane.f32.xlu1 %v2381_v3 }
 0x9e6   :  { %2379 = vadd.xlane.f32.xlu0 %v2378_v39 }
 0x9e9   :  { %2388 = vadd.xlane.f32.xlu1 %v2387_v21 }
 0x9ea   :  { %2385 = vadd.xlane.f32.xlu0 %v2384_v2 }
 0x9ed   :  { %3223 = vadd.xlane.f32.xlu1 %v3222_v5 }
 0x9ee   :  { %3220 = vadd.xlane.f32.xlu0 %v3219_v33 }
 0x9f1   :  { %3229 = vadd.xlane.f32.xlu1 %v3228_v14 }
 0x9f2   :  { %3226 = vadd.xlane.f32.xlu0 %v3225_v13 }
 0x9f5   :  { %3235 = vadd.xlane.f32.xlu1 %v3234_v1 }
 0x9f6   :  { %3232 = vadd.xlane.f32.xlu0 %v3231_v17 }
 0x9f9   :  { %3241 = vadd.xlane.f32.xlu1 %v3240_v51 }
 0x9fa   :  { %3238 = vadd.xlane.f32.xlu0 %v3237_v29 }
 0x9fd   :  { %3593 = vadd.xlane.f32.xlu1 %v3592_v42 }
 0x9fe   :  { %3590 = vadd.xlane.f32.xlu0 %v3589_v9 }
 0xa01   :  { %3599 = vadd.xlane.f32.xlu1 %v3598_v36 }
 0xa02   :  { %3596 = vadd.xlane.f32.xlu0 %v3595_v43 }
 0xa05   :  { %3605 = vadd.xlane.f32.xlu1 %v3604_v40 }
 0xa06   :  { %3602 = vadd.xlane.f32.xlu0 %v3601_v6 }
 0xa09   :  { %3611 = vadd.xlane.f32.xlu1 %v3610_v53 }
 0xa0a   :  { %3608 = vadd.xlane.f32.xlu0 %v3607_v48 }
 0xa1a   :  { %v4399_v57 = vpop.xlane.xlu1 %4398 }
 0xa1b   :  { %v4419_v28 = vsub.f32 %v9561_v25, %v4399_v57  ;;  %v4396_v44 = vpop.xlane.xlu0 %4395 }
 0xa1c   :  { %v4418_v16 = vsub.f32 %v9563_v15, %v4396_v44 }
 0xa1d   :  { %v4428_v30 = vmul.f32 1.442695, %v4419_v28 }
 0xa1e   :  { %v4426_v56 = vmul.f32 1.442695, %v4418_v16  ;;  %v4405_v60 = vpop.xlane.xlu1 %4404 }
 0xa1f   :  { %v4421_v58 = vsub.f32 %v9575_v46, %v4405_v60  ;;  %v4402_v50 = vpop.xlane.xlu0 %4401 }
 0xa20   :  { %7551 = vpow2.f32 %v4426_v56  ;;  %v4420_v52 = vsub.f32 %v9577_v41, %v4402_v50 }
 0xa21   :  { %7553 = vpow2.f32 %v4428_v30  ;;  %v4432_v23 = vmul.f32 1.442695, %v4421_v58 }
 0xa22   :  { %v4430_v11 = vmul.f32 1.442695, %v4420_v52  ;;  %v4411_v0 = vpop.xlane.xlu1 %4410 }
 0xa23   :  { %v4423_v63 = vsub.f32 %v9589_v47, %v4411_v0  ;;  %v4408_v37 = vpop.xlane.xlu0 %4407 }
 0xa24   :  { %7555 = vpow2.f32 %v4430_v11  ;;  %v4422_v25 = vsub.f32 %v9591_v18, %v4408_v37 }
 0xa25   :  { %7557 = vpow2.f32 %v4432_v23  ;;  %v4436_v15 = vmul.f32 1.442695, %v4423_v63 }
 0xa26   :  { %v4434_v10 = vmul.f32 1.442695, %v4422_v25  ;;  %v4417_v54 = vpop.xlane.xlu1 %4416 }
 0xa27   :  { %v4425_v46 = vsub.f32 %v9603_v38, %v4417_v54  ;;  %v4414_v35 = vpop.xlane.xlu0 %4413 }
 0xa28   :  { %7559 = vpow2.f32 %v4434_v10  ;;  %v4424_v41 = vsub.f32 %v9605_v59, %v4414_v35 }
 0xa29   :  { %7561 = vpow2.f32 %v4436_v15  ;;  %v4440_v45 = vmul.f32 1.442695, %v4425_v46 }
 0xa2a   :  { %v9747_v27 = vpop.eup %7551  ;;  %v4438_v49 = vmul.f32 1.442695, %v4424_v41  ;;  %v4769_v47 = vpop.xlane.xlu1 %4768  ;;  %v10329_v41 = vld [vmem:[#allocation19_spill] sm:$0xff] }
 0xa2b   :  { %v9749_v3 = vpop.eup %7553  ;;  %v4789_v18 = vsub.f32 %v9611_v8, %v4769_v47  ;;  %6968 = vmatprep.mubr.msk.f32.mxu1 %vm724_vm3, %v9747_v27  ;;  %v4766_v62 = vpop.xlane.xlu0 %4765 }
 0xa2c   :  { %7563 = vpow2.f32 %v4438_v49  ;;  %v4788_v38 = vsub.f32 %v9613_v22, %v4766_v62  ;;  %6969 = vmatmul.mubr.msk.f32.vlgmr.msra.gmra.mrb[144].mxu1 %vm724_vm3, %v9749_v3  ;;  %v10330_v62 = vld [vmem:[#allocation21_spill] sm:$0xff] }
 0xa2d   :  { %7565 = vpow2.f32 %v4440_v45  ;;  %v4798_v59 = vmul.f32 1.442695, %v4789_v18  ;;  %7439 = vmatpush3.bf16.msra.mxu1 %v9546_v20 }
 0xa2e   :  { %v9758_v39 = vpop.eup %7555  ;;  %v4796_v61 = vmul.f32 1.442695, %v4788_v38  ;;  %7441 = vmatprep.subr.bf16.mxu1 %v9549_v4  ;;  %v4775_v8 = vpop.xlane.xlu1 %4774 }
 0xa2f   :  { %v9761_v21 = vpop.eup %7557  ;;  %v4791_v7 = vsub.f32 %v9619_v55, %v4775_v8  ;;  %6971 = vmatprep.mubr.msk.f32.mxu1 %vm724_vm3, %v9758_v39  ;;  %v4772_v22 = vpop.xlane.xlu0 %4771 }
 0xa30   :  { %7567 = vpow2.f32 %v4796_v61  ;;  %v4790_v2 = vsub.f32 %v9621_v24, %v4772_v22  ;;  %6972 = vmatmul.mubr.msk.f32.gmra.mrb[146].mxu1 %vm724_vm3, %v9761_v21 }
 0xa31   :  { %7569 = vpow2.f32 %v4798_v59  ;;  %v4802_v20 = vmul.f32 1.442695, %v4791_v7  ;;  %7443 = vmatpush3.bf16.msra.mxu1 %v9549_v4  ;;  %v10331_v7 = vld [vmem:[#allocation35_spill] sm:$0xff] }
 0xa32   :  { %v9770_v5 = vpop.eup %7559  ;;  %v4800_v33 = vmul.f32 1.442695, %v4790_v2  ;;  %7445 = vmatprep.subr.bf16.mxu1 %v9551_v34  ;;  %v4781_v55 = vpop.xlane.xlu1 %4780 }
 0xa33   :  { %v9773_v14 = vpop.eup %7561  ;;  %v4793_v13 = vsub.f32 %v9627_v12, %v4781_v55  ;;  %6974 = vmatprep.mubr.msk.f32.mxu1 %vm724_vm3, %v9770_v5  ;;  %v4778_v24 = vpop.xlane.xlu0 %4777 }
 0xa34   :  { %7571 = vpow2.f32 %v4800_v33  ;;  %v4792_v1 = vsub.f32 %v9629_v19, %v4778_v24  ;;  %6975 = vmatmul.mubr.msk.f32.gmra.mrb[148].mxu1 %vm724_vm3, %v9773_v14 }
 0xa35   :  { %7573 = vpow2.f32 %v4802_v20  ;;  %v4806_v4 = vmul.f32 1.442695, %v4793_v13  ;;  %7447 = vmatpush3.bf16.msra.mxu1 %v9551_v34  ;;  %v10332_v20 = vld [vmem:[#allocation36_spill] sm:$0xff] }
 0xa36   :  { %v9782_v17 = vpop.eup %7563  ;;  %v4804_v51 = vmul.f32 1.442695, %v4792_v1  ;;  %7449 = vmatprep.subr.bf16.mxu1 %v9553_v26  ;;  %v4787_v12 = vpop.xlane.xlu1 %4786  ;;  %v10333_v1 = vld [vmem:[#allocation38_spill] sm:$0xff] }
 0xa37   :  { %v9785_v29 = vpop.eup %7565  ;;  %v4795_v42 = vsub.f32 %v9635_v32, %v4787_v12  ;;  %6977 = vmatprep.mubr.msk.f32.mxu1 %vm724_vm3, %v9782_v17  ;;  %v4784_v19 = vpop.xlane.xlu0 %4783 }
 0xa38   :  { %7575 = vpow2.f32 %v4804_v51  ;;  %v4794_v9 = vsub.f32 %v9637_v31, %v4784_v19  ;;  %6978 = vmatmul.mubr.msk.f32.gmra.mrb[150].mxu1 %vm724_vm3, %v9785_v29 }
 0xa39   :  { %7577 = vpow2.f32 %v4806_v4  ;;  %v4810_v34 = vmul.f32 1.442695, %v4795_v42  ;;  %7451 = vmatpush3.bf16.msra.mxu1 %v9553_v26 }
 0xa3a   :  { %v9794_v36 = vpop.eup %7567  ;;  %v4808_v43 = vmul.f32 1.442695, %v4794_v9  ;;  %v9796_v40 = vpop.xlane.xlu1 %777  ;;  %v10334_v9 = vld [vmem:[#allocation37_spill] sm:$0xff] }
 0xa3b   :  { %v9798_v32 = vpop.eup %7569  ;;  %7024 = vmatprep.mubr.msk.f32.mxu1 %vm724_vm3, %v9794_v36  ;;  %v9802_v6 = vpop.xlane.xlu0 %774 }
 0xa3c   :  { %7579 = vpow2.f32 %v4808_v43  ;;  %7025 = vmatmul.mubr.msk.f32.vlgmr.msra.gmra.mrb[152].mxu1 %vm724_vm3, %v9798_v32  ;;  %v10335_v43 = vld [vmem:[#allocation40_spill] sm:$0xff] }
 0xa3d   :  { %7581 = vpow2.f32 %v4810_v34 }
 0xa3e   :  { %v9806_v31 = vpop.eup %7571  ;;  %v9808_v26 = vpop.xlane.xlu1 %783 }
 0xa3f   :  { %v9810_v53 = vpop.eup %7573  ;;  %7027 = vmatprep.mubr.msk.f32.mxu1 %vm724_vm3, %v9806_v31  ;;  %v9814_v48 = vpop.xlane.xlu0 %780 }
 0xa40   :  { %7028 = vmatmul.mubr.msk.f32.gmra.mrb[154].mxu1 %vm724_vm3, %v9810_v53 }
 0xa42   :  { %v9818_v57 = vpop.eup %7575  ;;  %v9820_v28 = vpop.xlane.xlu1 %789 }
 0xa43   :  { %v9822_v44 = vpop.eup %7577  ;;  %7030 = vmatprep.mubr.msk.f32.mxu1 %vm724_vm3, %v9818_v57  ;;  %v9826_v16 = vpop.xlane.xlu0 %786 }
 0xa44   :  { %7031 = vmatmul.mubr.msk.f32.gmra.mrb[156].mxu1 %vm724_vm3, %v9822_v44 }
 0xa46   :  { %v9830_v30 = vpop.eup %7579  ;;  %v9832_v56 = vpop.xlane.xlu1 %795 }
 0xa47   :  { %v9834_v60 = vpop.eup %7581  ;;  %7033 = vmatprep.mubr.msk.f32.mxu1 %vm724_vm3, %v9830_v30  ;;  %v9838_v58 = vpop.xlane.xlu0 %792 }
 0xa48   :  { %7034 = vmatmul.mubr.msk.f32.gmra.mrb[158].mxu1 %vm724_vm3, %v9834_v60 }
 0xa4a   :  { %v9842_v50 = vpop.xlane.xlu1 %1147 }
 0xa4b   :  { %v9844_v52 = vpop.xlane.xlu0 %1144 }
 0xa4e   :  { %v9846_v23 = vpop.xlane.xlu1 %1153 }
 0xa4f   :  { %v9848_v11 = vpop.xlane.xlu0 %1150 }
 0xa52   :  { %v9850_v0 = vpop.xlane.xlu1 %1159 }
 0xa53   :  { %v1157_v63 = vpop.xlane.xlu0 %1156 }
 0xa54   :  { %7583 = vrcp.f32 %v1157_v63 }
 0xa56   :  { %v9852_v37 = vpop.xlane.xlu1 %1165 }
 0xa57   :  { %v1163_v25 = vpop.xlane.xlu0 %1162 }
 0xa58   :  { %7585 = vrcp.f32 %v1163_v25 }
 0xa5a   :  { %v2001_v15 = vpop.xlane.xlu1 %2000 }
 0xa5b   :  { %7587 = vrcp.f32 %v2001_v15  ;;  %v1998_v10 = vpop.xlane.xlu0 %1997 }
 0xa5c   :  { %7589 = vrcp.f32 %v1998_v10 }
 0xa5e   :  { %v7584_v54 = vpop.eup %7583  ;;  %v2007_v46 = vpop.xlane.xlu1 %2006 }
 0xa5f   :  { %v2004_v35 = vpop.xlane.xlu0 %2003  ;;  %v9855_v45 = vmul.f32 %v7584_v54, %v10329_v41  ;;  %v10337_v41 = vld [vmem:[#allocation42_spill] sm:$0xff] }
 0xa60   :  { %7591 = vrcp.f32 %v2004_v35 }
 0xa61   :  { %7593 = vrcp.f32 %v2007_v46  ;;  %v10336_v46 = vld [vmem:[#allocation39_spill] sm:$0xff] }
 0xa62   :  { %v7586_v49 = vpop.eup %7585  ;;  %v2013_v47 = vpop.xlane.xlu1 %2012 }
 0xa63   :  { %v2010_v18 = vpop.xlane.xlu0 %2009  ;;  %v9858_v38 = vmul.f32 %v7586_v49, %v10330_v62 }
 0xa64   :  { %7595 = vrcp.f32 %v2010_v18 }
 0xa65   :  { %v7588_v59 = vpop.eup %7587  ;;  %7597 = vrcp.f32 %v2013_v47 }
 0xa66   :  { %v7590_v61 = vpop.eup %7589  ;;  %v2019_v8 = vpop.xlane.xlu1 %2018  ;;  %v2158_v22 = vmul.f32 %v7588_v59, %v10331_v7  ;;  %v10338_v59 = vld [vmem:[#allocation41_spill] sm:$0xff] }
 0xa67   :  { %v2016_v2 = vpop.xlane.xlu0 %2015  ;;  %v2157_v33 = vmul.f32 %v7590_v61, %v10332_v20 }
 0xa68   :  { %7599 = vrcp.f32 %v2016_v2  ;;  %4991 = vrot.lane.b32.xlu1 %v2158_v22, %s7743_s7  ;;  %v10339_v2 = vld [vmem:[#allocation45_spill] sm:$0xff] }
 0xa69   :  { %4989 = vrot.lane.b32.xlu0 %v2157_v33, %s7743_s7  ;;  %7601 = vrcp.f32 %v2019_v8 }
 0xa6a   :  { %v7592_v55 = vpop.eup %7591  ;;  %v9864_v13 = vpop.xlane.xlu1 %2370 }
 0xa6b   :  { %v9866_v24 = vpop.xlane.xlu0 %2367  ;;  %v2159_v4 = vmul.f32 %v7592_v55, %v10333_v1  ;;  %v7594_v51 = vpop.eup %7593  ;;  %v10340_v55 = vld [vmem:[#allocation46_spill] sm:$0xff] }
 0xa6c   :  { %v2160_v34 = vmul.f32 %v7594_v51, %v10334_v9 }
 0xa6d   :  { %4993 = vrot.lane.b32.xlu1 %v2159_v4, %s7743_s7 }
 0xa6e   :  { %v7596_v12 = vpop.eup %7595  ;;  %v2377_v42 = vpop.xlane.xlu1 %2376 }
 0xa6f   :  { %7603 = vrcp.f32 %v2377_v42  ;;  %v2374_v19 = vpop.xlane.xlu0 %2373  ;;  %v2161_v63 = vmul.f32 %v7596_v12, %v10335_v43  ;;  %v7598_v25 = vpop.eup %7597  ;;  %v10341_v42 = vld [vmem:[#allocation47_spill] sm:$0xff] }
 0xa70   :  { %7605 = vrcp.f32 %v2374_v19  ;;  %v2162_v35 = vmul.f32 %v7598_v25, %v10336_v46 }
 0xa71   :  { %4995 = vrot.lane.b32.xlu1 %v2160_v34, %s7743_s7  ;;  %4997 = vrot.lane.b32.xlu0 %v2161_v63, %s7743_s7  ;;  %v10342_v34 = vld [vmem:[#allocation48_spill] sm:$0xff] }
 0xa72   :  { %v7600_v15 = vpop.eup %7599  ;;  %v2383_v10 = vpop.xlane.xlu1 %2382 }
 0xa73   :  { %7607 = vrcp.f32 %v2383_v10  ;;  %v2380_v54 = vpop.xlane.xlu0 %2379  ;;  %v2163_v49 = vmul.f32 %v7600_v15, %v10337_v41  ;;  %v7602_v47 = vpop.eup %7601  ;;  %v10343_v10 = vld [vmem:[#allocation49_spill] sm:$0xff] }
 0xa74   :  { %7609 = vrcp.f32 %v2380_v54  ;;  %v2164_v61 = vmul.f32 %v7602_v47, %v10338_v59 }
 0xa75   :  { %4999 = vrot.lane.b32.xlu1 %v2162_v35, %s7743_s7  ;;  %5001 = vrot.lane.b32.xlu0 %v2163_v49, %s7743_s7  ;;  %v10344_v35 = vld [vmem:[#allocation50_spill] sm:$0xff] }
 0xa76   :  { %v2389_v18 = vpop.xlane.xlu1 %2388 }
 0xa77   :  { %7611 = vrcp.f32 %v2389_v18  ;;  %v2386_v62 = vpop.xlane.xlu0 %2385 }
 0xa78   :  { %7613 = vrcp.f32 %v2386_v62  ;;  %v10345_v62 = vld [vmem:[#allocation51_spill] sm:$0xff] }
 0xa79   :  { %v7604_v8 = vpop.eup %7603  ;;  %5003 = vrot.lane.b32.xlu1 %v2164_v61, %s7743_s7 }
 0xa7a   :  { %v7606_v7 = vpop.eup %7605  ;;  %v3224_v22 = vpop.xlane.xlu1 %3223  ;;  %v9881_v20 = vmul.f32 %v7604_v8, %v10339_v2  ;;  %v10346_v8 = vld [vmem:[#allocation52_spill] sm:$0xff] }
 0xa7b   :  { %7615 = vrcp.f32 %v3224_v22  ;;  %v3221_v33 = vpop.xlane.xlu0 %3220  ;;  %v9884_v1 = vmul.f32 %v7606_v7, %v10340_v55 }
 0xa7c   :  { %7617 = vrcp.f32 %v3221_v33  ;;  %v10347_v33 = vld [vmem:[#allocation53_spill] sm:$0xff] }
 0xa7d   :  { %v7608_v4 = vpop.eup %7607 }
 0xa7e   :  { %v7610_v51 = vpop.eup %7609  ;;  %v3230_v12 = vpop.xlane.xlu1 %3229  ;;  %v9887_v19 = vmul.f32 %v7608_v4, %v10341_v42  ;;  %v10348_v4 = vld [vmem:[#allocation54_spill] sm:$0xff] }
 0xa7f   :  { %7619 = vrcp.f32 %v3230_v12  ;;  %v3227_v9 = vpop.xlane.xlu0 %3226  ;;  %v9890_v43 = vmul.f32 %v7610_v51, %v10342_v34 }
 0xa80   :  { %7621 = vrcp.f32 %v3227_v9  ;;  %v10349_v9 = vld [vmem:[#allocation55_spill] sm:$0xff] }
 0xa81   :  { %v7612_v63 = vpop.eup %7611 }
 0xa82   :  { %v7614_v25 = vpop.eup %7613  ;;  %v3236_v15 = vpop.xlane.xlu1 %3235  ;;  %v9893_v54 = vmul.f32 %v7612_v63, %v10343_v10  ;;  %v10350_v63 = vld [vmem:[#allocation56_spill] sm:$0xff] }
 0xa83   :  { %7623 = vrcp.f32 %v3236_v15  ;;  %v3233_v46 = vpop.xlane.xlu0 %3232  ;;  %v9896_v41 = vmul.f32 %v7614_v25, %v10344_v35  ;;  %v10351_v15 = vld [vmem:[#allocation57_spill] sm:$0xff]  ;;  %v10352_v35 = vld [vmem:[#allocation58_spill] sm:$0xff] }
 0xa84   :  { %7625 = vrcp.f32 %v3233_v46 }
 0xa85   :  { %v7616_v49 = vpop.eup %7615 }
 0xa86   :  { %v7618_v47 = vpop.eup %7617  ;;  %v3242_v18 = vpop.xlane.xlu1 %3241  ;;  %v3381_v59 = vmul.f32 %v7616_v49, %v10345_v62 }
 0xa87   :  { %7627 = vrcp.f32 %v3242_v18  ;;  %v3239_v61 = vpop.xlane.xlu0 %3238  ;;  %v3380_v7 = vmul.f32 %v7618_v47, %v10346_v8  ;;  %v10353_v18 = vld [vmem:[#allocation43_spill] sm:$0xff]  ;;  %v4442_v8 = vsel %vm724_vm3, %v9747_v27, 0.0  ;;  %v4457_v27 = vsel %vm724_vm3, %v9773_v14, 0.0 }
 0xa88   :  { %7629 = vrcp.f32 %v3239_v61  ;;  %5023 = vrot.lane.b32.xlu1 %v3381_v59, %s7744_s10  ;;  %v10354_v59 = vld [vmem:[#allocation44_spill] sm:$0xff]  ;;  %v4815_v14 = vsel %vm724_vm3, %v9798_v32, 0.0 }
 0xa89   :  { %v7620_v22 = vpop.eup %7619  ;;  %7631 = vrcp.f32 %v9864_v13  ;;  %5021 = vrot.lane.b32.xlu0 %v3380_v7, %s7744_s10  ;;  %v4445_v7 = vsel %vm724_vm3, %v9749_v3, 0.0 }
 0xa8a   :  { %v7622_v2 = vpop.eup %7621  ;;  %7633 = vrcp.f32 %v9866_v24  ;;  %v3383_v55 = vmul.f32 %v7620_v22, %v10347_v33  ;;  %v4448_v22 = vsel %vm724_vm3, %v9758_v39, 0.0  ;;  %v4454_v33 = vsel %vm724_vm3, %v9770_v5, 0.0  ;;  %v3594_v3 = vpop.xlane.xlu1 %3593 }
 0xa8b   :  { %v3382_v51 = vmul.f32 %v7622_v2, %v10348_v4  ;;  %v4451_v2 = vsel %vm724_vm3, %v9761_v21, 0.0  ;;  %v3591_v39 = vpop.xlane.xlu0 %3590  ;;  %v4463_v4 = vsel %vm724_vm3, %v9785_v29, 0.0  ;;  %v4812_v21 = vsel %vm724_vm3, %v9794_v36, 0.0 }
 0xa8c   :  { %5027 = vrot.lane.b32.xlu1 %v3383_v55, %s7744_s10  ;;  %v4460_v55 = vsel %vm724_vm3, %v9782_v17, 0.0  ;;  %v4818_v17 = vsel %vm724_vm3, %v9806_v31, 0.0  ;;  %7635 = vrcp.f32 %v9796_v40  ;;  %v4821_v29 = vsel %vm724_vm3, %v9810_v53, 0.0 }
 0xa8d   :  { %v7624_v12 = vpop.eup %7623  ;;  %5025 = vrot.lane.b32.xlu0 %v3382_v51, %s7744_s10  ;;  %7637 = vrcp.f32 %v9802_v6  ;;  %v4824_v36 = vsel %vm724_vm3, %v9818_v57, 0.0  ;;  %v4827_v31 = vsel %vm724_vm3, %v9822_v44, 0.0  ;;  %v4830_v40 = vsel %vm724_vm3, %v9830_v30, 0.0  ;;  %v10355_v44 = vld [vmem:[#allocation6_spill] sm:$0xff] }
 0xa8e   :  { %v7626_v42 = vpop.eup %7625  ;;  %v3385_v34 = vmul.f32 %v7624_v12, %v10349_v9  ;;  %v3600_v5 = vpop.xlane.xlu1 %3599  ;;  %7639 = vrcp.f32 %v9814_v48  ;;  %v4833_v48 = vsel %vm724_vm3, %v9834_v60, 0.0  ;;  %v10357_v60 = vld [vmem:[#allocation9_spill] sm:$0xff] }
 0xa8f   :  { %v3384_v25 = vmul.f32 %v7626_v42, %v10350_v63  ;;  %v3597_v51 = vpop.xlane.xlu0 %3596  ;;  %7641 = vrcp.f32 %v9808_v26  ;;  %v10356_v26 = vld [vmem:[#allocation7_spill] sm:$0xff] }
 0xa90   :  { %5031 = vrot.lane.b32.xlu1 %v3385_v34, %s7744_s10  ;;  %7643 = vrcp.f32 %v9826_v16 }
 0xa91   :  { %v7628_v13 = vpop.eup %7627  ;;  %5029 = vrot.lane.b32.xlu0 %v3384_v25, %s7744_s10  ;;  %7645 = vrcp.f32 %v9820_v28 }
 0xa92   :  { %v7630_v24 = vpop.eup %7629  ;;  %v3387_v10 = vmul.f32 %v7628_v13, %v10351_v15  ;;  %v3606_v12 = vpop.xlane.xlu1 %3605  ;;  %7647 = vrcp.f32 %v9838_v58 }
 0xa93   :  { %v7632_v46 = vpop.eup %7631  ;;  %v3386_v49 = vmul.f32 %v7630_v24, %v10352_v35  ;;  %v3603_v32 = vpop.xlane.xlu0 %3602  ;;  %7649 = vrcp.f32 %v9832_v56  ;;  %v10358_v35 = vld [vmem:[#allocation8_spill] sm:$0xff] }
 0xa94   :  { %v7634_v47 = vpop.eup %7633  ;;  %5035 = vrot.lane.b32.xlu1 %v3387_v10, %s7744_s10  ;;  %v2528_v62 = vmul.f32 %v7632_v46, %v10353_v18  ;;  %7651 = vrcp.f32 %v3594_v3  ;;  %v10362_v3 = vld [vmem:[#allocation12_spill] sm:$0xff] }
 0xa95   :  { %5033 = vrot.lane.b32.xlu0 %v3386_v49, %s7744_s10  ;;  %v2527_v61 = vmul.f32 %v7634_v47, %v10354_v59  ;;  %v10359_v47 = vld [vmem:[#allocation11_spill] sm:$0xff]  ;;  %7653 = vrcp.f32 %v3591_v39 }
 0xa96   :  { %v7636_v6 = vpop.eup %7635  ;;  %v3612_v53 = vpop.xlane.xlu1 %3611  ;;  %7655 = vrcp.f32 %v3600_v5 }
 0xa97   :  { %v7638_v57 = vpop.eup %7637  ;;  %v3609_v42 = vpop.xlane.xlu0 %3608  ;;  %v935_v30 = vmul.f32 %v7636_v6, %v10355_v44  ;;  %7657 = vrcp.f32 %v3597_v51 }
 0xa98   :  { %5113 = vrot.lane.b32.xlu1 %v2528_v62, %s7743_s7  ;;  %v934_v34 = vmul.f32 %v7638_v57, %v10356_v26  ;;  %v7640_v63 = vpop.eup %7639  ;;  %7659 = vrcp.f32 %v3606_v12  ;;  %v10368_v26 = vld [vmem:[#allocation64_spill] sm:$0xff] }
 0xa99   :  { %5111 = vrot.lane.b32.xlu0 %v2527_v61, %s7743_s7  ;;  %v7642_v24 = vpop.eup %7641  ;;  %v936_v15 = vmul.f32 %v7640_v63, %v10357_v60  ;;  %7661 = vrcp.f32 %v3603_v32 }
 0xa9a   :  { %v7644_v28 = vpop.eup %7643  ;;  %v937_v49 = vmul.f32 %v7642_v24, %v10358_v35  ;;  %7663 = vrcp.f32 %v3612_v53 }
 0xa9b   :  { %v7646_v46 = vpop.eup %7645  ;;  %v938_v18 = vmul.f32 %v7644_v28, %v10359_v47  ;;  %7665 = vrcp.f32 %v3609_v42 }
 0xa9c   :  { %v7648_v62 = vpop.eup %7647  ;;  %7667 = vrcp.f32 %v9842_v50 }
 0xa9d   :  { %7669 = vrcp.f32 %v9844_v52 }
 0xab8   :  { %4443 = vadd.xlane.f32.xlu0 %v4442_v8 }
 0xabc   :  { %4446 = vadd.xlane.f32.xlu1 %v4445_v7  ;;  %4449 = vadd.xlane.f32.xlu0 %v4448_v22  ;;  %v10360_v7 = vld [vmem:[#allocation10_spill] sm:$0xff] }
 0xabd   :  { %v939_v22 = vmul.f32 %v7646_v46, %v10360_v7 }
 0xac0   :  { %4452 = vadd.xlane.f32.xlu1 %v4451_v2  ;;  %4455 = vadd.xlane.f32.xlu0 %v4454_v33  ;;  %v10361_v2 = vld [vmem:[#allocation13_spill] sm:$0xff] }
 0xac1   :  { %v940_v33 = vmul.f32 %v7648_v62, %v10361_v2 }
 0xac4   :  { %4458 = vadd.xlane.f32.xlu1 %v4457_v27  ;;  %4461 = vadd.xlane.f32.xlu0 %v4460_v55  ;;  %v7650_v27 = vpop.eup %7649 }
 0xac8   :  { %4464 = vadd.xlane.f32.xlu1 %v4463_v4  ;;  %4813 = vadd.xlane.f32.xlu0 %v4812_v21 }
 0xacc   :  { %4816 = vadd.xlane.f32.xlu1 %v4815_v14  ;;  %4819 = vadd.xlane.f32.xlu0 %v4818_v17  ;;  %v941_v17 = vmul.f32 %v7650_v27, %v10362_v3  ;;  %v10371_v27 = vld [vmem:[#allocation14_spill] sm:$0xff] }
 0xad0   :  { %4822 = vadd.xlane.f32.xlu1 %v4821_v29  ;;  %4825 = vadd.xlane.f32.xlu0 %v4824_v36  ;;  %v7652_v36 = vpop.eup %7651 }
 0xad4   :  { %4828 = vadd.xlane.f32.xlu1 %v4827_v31  ;;  %4831 = vadd.xlane.f32.xlu0 %v4830_v40  ;;  %v10364_v31 = vld [vmem:[#allocation60_spill] sm:$0xff] }
 0xad8   :  { %4834 = vadd.xlane.f32.xlu1 %v4833_v48  ;;  %v10367_v48 = vld [vmem:[#allocation63_spill] sm:$0xff] }
 0xada   :  { %v4992_v9 = vpop.permute.xlu1 %4991 }
 0xadb   :  { %v5078_v16 = vsel %vm570_vm1, %v935_v30, %v4992_v9  ;;  %v4990_v25 = vpop.permute.xlu0 %4989 }
 0xadc   :  { %v5077_v13 = vsel %vm570_vm1, %v934_v34, %v4990_v25 }
 0xadf   :  { %v4994_v10 = vpop.permute.xlu1 %4993 }
 0xae0   :  { %v9966_v58 = vsel %vm570_vm1, %v936_v15, %v4994_v10  ;;  %v10369_v15 = vld [vmem:[#allocation65_spill] sm:$0xff]  ;;  %v10370_v10 = vld [vmem:[#allocation66_spill] sm:$0xff] }
 0xae3   :  { %v4996_v59 = vpop.permute.xlu1 %4995  ;;  %v4998_v61 = vpop.permute.xlu0 %4997 }
 0xae4   :  { %v5080_v8 = vsel %vm570_vm1, %v937_v49, %v4996_v59  ;;  %v9972_v56 = vsel %vm570_vm1, %v938_v18, %v4998_v61 }
 0xae7   :  { %v5000_v55 = vpop.permute.xlu1 %4999  ;;  %v5002_v4 = vpop.permute.xlu0 %5001 }
 0xae8   :  { %v5082_v21 = vsel %vm570_vm1, %v939_v22, %v5000_v55  ;;  %v9978_v14 = vsel %vm570_vm1, %v940_v33, %v5002_v4 }
 0xae9   :  { %5117 = vrot.lane.b32.xlu1 %v9881_v20, %s7743_s7  ;;  %v7654_v20 = vpop.eup %7653 }
 0xaea   :  { %5115 = vrot.lane.b32.xlu0 %v9884_v1, %s7743_s7  ;;  %v10363_v1 = vld [vmem:[#allocation59_spill] sm:$0xff]  ;;  %v7656_v51 = vpop.eup %7655 }
 0xaeb   :  { %v5004_v29 = vpop.permute.xlu1 %5003  ;;  %v3751_v5 = vmul.f32 %v7652_v36, %v10363_v1  ;;  %v7658_v12 = vpop.eup %7657 }
 0xaec   :  { %v5084_v39 = vsel %vm570_vm1, %v941_v17, %v5004_v29  ;;  %v7660_v40 = vpop.eup %7659 }
 0xaed   :  { %5121 = vrot.lane.b32.xlu1 %v9887_v19, %s7743_s7  ;;  %v3750_v19 = vmul.f32 %v7654_v20, %v10364_v31  ;;  %v7662_v53 = vpop.eup %7661  ;;  %v3755_v44 = vmul.f32 %v7660_v40, %v10367_v48 }
 0xaee   :  { %5119 = vrot.lane.b32.xlu0 %v9890_v43, %s7743_s7  ;;  %v10365_v43 = vld [vmem:[#allocation61_spill] sm:$0xff]  ;;  %v7664_v30 = vpop.eup %7663  ;;  %v3754_v34 = vmul.f32 %v7662_v53, %v10368_v26 }
 0xaef   :  { %v3753_v32 = vmul.f32 %v7656_v51, %v10365_v43  ;;  %v7666_v63 = vpop.eup %7665  ;;  %v3757_v50 = vmul.f32 %v7664_v30, %v10369_v15 }
 0xaf0   :  { %v3756_v46 = vmul.f32 %v7666_v63, %v10370_v10 }
 0xaf1   :  { %5125 = vrot.lane.b32.xlu1 %v9893_v54, %s7743_s7  ;;  %v10366_v54 = vld [vmem:[#allocation62_spill] sm:$0xff] }
 0xaf2   :  { %5123 = vrot.lane.b32.xlu0 %v9896_v41, %s7743_s7  ;;  %v3752_v6 = vmul.f32 %v7658_v12, %v10366_v54 }
 0xaf5   :  { %5145 = vrot.lane.b32.xlu1 %v3751_v5, %s7744_s10 }
 0xaf6   :  { %5143 = vrot.lane.b32.xlu0 %v3750_v19, %s7744_s10 }
 0xaf9   :  { %5149 = vrot.lane.b32.xlu1 %v3753_v32, %s7744_s10 }
 0xafa   :  { %v5024_v41 = vpop.permute.xlu1 %5023  ;;  %5147 = vrot.lane.b32.xlu0 %v3752_v6, %s7744_s10 }
 0xafb   :  { %v10003_v57 = vsel %vm5085_vm4, %v5078_v16, %v5024_v41  ;;  %v5022_v42 = vpop.permute.xlu0 %5021 }
 0xafc   :  { %v10008_v9 = vsel %vm5085_vm4, %v5077_v13, %v5022_v42 }
 0xafd   :  { %5153 = vrot.lane.b32.xlu1 %v3755_v44, %s7744_s10 }
 0xafe   :  { %v5028_v25 = vpop.permute.xlu1 %5027  ;;  %5151 = vrot.lane.b32.xlu0 %v3754_v34, %s7744_s10 }
 0xaff   :  { %v10015_v16 = vsel %vm5085_vm4, %v5080_v8, %v5028_v25  ;;  %v6970_v24 = vpop.f32.mrb[144].mxu1  ;;  %v5026_v60 = vpop.permute.xlu0 %5025 }
 0xb00   :  { %v10020_v13 = vsel %vm5085_vm4, %v9966_v58, %v5026_v60  ;;  %v4556_v28 = vpop.f32.mrb[145].mxu1  ;;  %v7668_v58 = vpop.eup %7667 }
 0xb01   :  { %5157 = vrot.lane.b32.xlu1 %v3757_v50, %s7744_s10  ;;  %v7670_v61 = vpop.eup %7669  ;;  %v1305_v55 = vmul.f32 %v7668_v58, %v10371_v27 }
 0xb02   :  { %v5032_v52 = vpop.permute.xlu1 %5031  ;;  %5155 = vrot.lane.b32.xlu0 %v3756_v46, %s7744_s10 }
 0xb03   :  { %v10026_v35 = vsel %vm5085_vm4, %v5082_v21, %v5032_v52  ;;  %v6973_v49 = vpop.f32.mrb[146].mxu1  ;;  %v5030_v47 = vpop.permute.xlu0 %5029  ;;  %v10372_v21 = vld [vmem:[#allocation15_spill] sm:$0xff] }
 0xb04   :  { %v10030_v18 = vsel %vm5085_vm4, %v9972_v56, %v5030_v47  ;;  %v4566_v62 = vpop.f32.mrb[147].mxu1  ;;  %v1304_v56 = vmul.f32 %v7670_v61, %v10372_v21 }
 0xb06   :  { %v5036_v59 = vpop.permute.xlu1 %5035 }
 0xb07   :  { %v10033_v8 = vsel %vm5085_vm4, %v5084_v39, %v5036_v59  ;;  %v6976_v7 = vpop.f32.mrb[148].mxu1  ;;  %v5034_v22 = vpop.permute.xlu0 %5033 }
 0xb08   :  { %v10037_v2 = vsel %vm5085_vm4, %v9978_v14, %v5034_v22  ;;  %v4576_v33 = vpop.f32.mrb[149].mxu1 }
 0xb0a   :  { %v5114_v4 = vpop.permute.xlu1 %5113 }
 0xb0b   :  { %v10042_v3 = vsel %vm570_vm1, %v1305_v55, %v5114_v4  ;;  %v10044_v17 = vpop.f32.mrb[150].mxu1  ;;  %v5112_v29 = vpop.permute.xlu0 %5111 }
 0xb0c   :  { %v10047_v39 = vsel %vm570_vm1, %v1304_v56, %v5112_v29  ;;  %v4586_v36 = vpop.f32.mrb[151].mxu1 }
 0xb0f   :  { %v10049_v20 = vpop.f32.mrb[152].mxu1 }
 0xb10   :  { %v4926_v14 = vpop.f32.mrb[153].mxu1 }
 0xb13   :  { %v10051_v1 = vpop.f32.mrb[154].mxu1 }
 0xb14   :  { %v10053_v5 = vpop.f32.mrb[155].mxu1 }
 0xb17   :  { %v10055_v51 = vpop.f32.mrb[156].mxu1 }
 0xb18   :  { %v10057_v31 = vpop.f32.mrb[157].mxu1 }
 0xb1b   :  { %v10059_v19 = vpop.f32.mrb[158].mxu1 }
 0xb1c   :  { %v10061_v12 = vpop.f32.mrb[159].mxu1 }
 0xb45   :  { %v4444_v43 = vpop.xlane.xlu0 %4443 }
 0xb46   :  { %7671 = vrcp.f32 %v4444_v43 }
 0xb49   :  { %v4447_v32 = vpop.xlane.xlu1 %4446  ;;  %v4450_v40 = vpop.xlane.xlu0 %4449 }
 0xb4a   :  { %7673 = vrcp.f32 %v4447_v32 }
 0xb4b   :  { %7675 = vrcp.f32 %v4450_v40 }
 0xb4d   :  { %v4453_v54 = vpop.xlane.xlu1 %4452  ;;  %v4456_v6 = vpop.xlane.xlu0 %4455 }
 0xb4e   :  { %7677 = vrcp.f32 %v4453_v54 }
 0xb4f   :  { %7679 = vrcp.f32 %v4456_v6 }
 0xb50   :  { %v7672_v53 = vpop.eup %7671 }
 0xb51   :  { %v4459_v41 = vpop.xlane.xlu1 %4458  ;;  %v4462_v42 = vpop.xlane.xlu0 %4461  ;;  %v4603_v48 = vmul.f32 %v7672_v53, %v4556_v28 }
 0xb52   :  { %7681 = vrcp.f32 %v4459_v41 }
 0xb53   :  { %7683 = vrcp.f32 %v4462_v42  ;;  %5053 = vrot.lane.b32.xlu0 %v4603_v48, %s7745_s11 }
 0xb54   :  { %v7674_v44 = vpop.eup %7673 }
 0xb55   :  { %v7676_v30 = vpop.eup %7675  ;;  %v4465_v26 = vpop.xlane.xlu1 %4464  ;;  %v4604_v63 = vmul.f32 %v7674_v44, %v6970_v24 }
 0xb56   :  { %v4814_v34 = vpop.xlane.xlu0 %4813  ;;  %7685 = vrcp.f32 %v4465_v26  ;;  %v4605_v25 = vmul.f32 %v7676_v30, %v4566_v62 }
 0xb57   :  { %7687 = vrcp.f32 %v4814_v34  ;;  %5055 = vrot.lane.b32.xlu1 %v4604_v63, %s7745_s11 }
 0xb58   :  { %v7678_v60 = vpop.eup %7677  ;;  %5057 = vrot.lane.b32.xlu0 %v4605_v25, %s7745_s11 }
 0xb59   :  { %v7680_v15 = vpop.eup %7679  ;;  %v4817_v50 = vpop.xlane.xlu1 %4816  ;;  %v4606_v10 = vmul.f32 %v7678_v60, %v6973_v49 }
 0xb5a   :  { %v4820_v28 = vpop.xlane.xlu0 %4819  ;;  %7689 = vrcp.f32 %v4817_v50  ;;  %v4607_v46 = vmul.f32 %v7680_v15, %v4576_v33 }
 0xb5b   :  { %7691 = vrcp.f32 %v4820_v28  ;;  %5059 = vrot.lane.b32.xlu1 %v4606_v10, %s7745_s11 }
 0xb5c   :  { %v7682_v52 = vpop.eup %7681  ;;  %5061 = vrot.lane.b32.xlu0 %v4607_v46, %s7745_s11 }
 0xb5d   :  { %v7684_v24 = vpop.eup %7683  ;;  %v4823_v47 = vpop.xlane.xlu1 %4822  ;;  %v4608_v58 = vmul.f32 %v7682_v52, %v6976_v7 }
 0xb5e   :  { %v4826_v62 = vpop.xlane.xlu0 %4825  ;;  %7693 = vrcp.f32 %v4823_v47  ;;  %v4609_v59 = vmul.f32 %v7684_v24, %v4586_v36 }
 0xb5f   :  { %7695 = vrcp.f32 %v4826_v62  ;;  %5063 = vrot.lane.b32.xlu1 %v4608_v58, %s7745_s11  ;;  %v10373_v58 = vld [vmem:[#allocation17_spill] sm:$0xff] }
 0xb60   :  { %v7686_v61 = vpop.eup %7685  ;;  %5065 = vrot.lane.b32.xlu0 %v4609_v59, %s7745_s11 }
 0xb61   :  { %v7688_v49 = vpop.eup %7687  ;;  %v4829_v22 = vpop.xlane.xlu1 %4828  ;;  %v4610_v27 = vmul.f32 %v7686_v61, %v10044_v17  ;;  %v10374_v61 = vld [vmem:[#allocation16_spill] sm:$0xff] }
 0xb62   :  { %v4832_v33 = vpop.xlane.xlu0 %4831  ;;  %7697 = vrcp.f32 %v4829_v22  ;;  %v4973_v55 = vmul.f32 %v7688_v49, %v4926_v14 }
 0xb63   :  { %7699 = vrcp.f32 %v4832_v33  ;;  %5067 = vrot.lane.b32.xlu1 %v4610_v27, %s7745_s11 }
 0xb64   :  { %v7690_v4 = vpop.eup %7689  ;;  %5175 = vrot.lane.b32.xlu0 %v4973_v55, %s7745_s11 }
 0xb65   :  { %v7692_v7 = vpop.eup %7691  ;;  %v4835_v21 = vpop.xlane.xlu1 %4834  ;;  %v4974_v56 = vmul.f32 %v7690_v4, %v10049_v20 }
 0xb66   :  { %7701 = vrcp.f32 %v4835_v21  ;;  %v4975_v29 = vmul.f32 %v7692_v7, %v10053_v5 }
 0xb67   :  { %5177 = vrot.lane.b32.xlu1 %v4974_v56, %s7745_s11  ;;  %7703 = vrcp.f32 %v9848_v11 }
 0xb68   :  { %v7694_v36 = vpop.eup %7693  ;;  %5179 = vrot.lane.b32.xlu0 %v4975_v29, %s7745_s11  ;;  %7705 = vrcp.f32 %v9846_v23  ;;  %v10375_v29 = vld [vmem:[#allocation18_spill] sm:$0xff] }
 0xb69   :  { %v7696_v17 = vpop.eup %7695  ;;  %v4976_v14 = vmul.f32 %v7694_v36, %v10051_v1  ;;  %v5116_v1 = vpop.permute.xlu0 %5115  ;;  %7707 = vrcp.f32 %v9850_v0 }
 0xb6a   :  { %v4977_v43 = vmul.f32 %v7696_v17, %v10057_v31  ;;  %v5118_v31 = vpop.permute.xlu1 %5117  ;;  %7709 = vrcp.f32 %v9852_v37 }
 0xb6b   :  { %5181 = vrot.lane.b32.xlu1 %v4976_v14, %s7745_s11 }
 0xb6c   :  { %v7698_v32 = vpop.eup %7697  ;;  %5183 = vrot.lane.b32.xlu0 %v4977_v43, %s7745_s11 }
 0xb6d   :  { %v7700_v40 = vpop.eup %7699  ;;  %v4978_v20 = vmul.f32 %v7698_v32, %v10055_v51  ;;  %v5120_v53 = vpop.permute.xlu0 %5119 }
 0xb6e   :  { %v4979_v5 = vmul.f32 %v7700_v40, %v10061_v12  ;;  %v10087_v41 = vpop.permute.xlu1 %5121 }
 0xb6f   :  { %5185 = vrot.lane.b32.xlu1 %v4978_v20, %s7745_s11 }
 0xb70   :  { %v7702_v54 = vpop.eup %7701  ;;  %5187 = vrot.lane.b32.xlu0 %v4979_v5, %s7745_s11 }
 0xb71   :  { %v4980_v6 = vmul.f32 %v7702_v54, %v10059_v19  ;;  %v10089_v42 = vpop.permute.xlu0 %5123  ;;  %v7704_v52 = vpop.eup %7703 }
 0xb72   :  { %v10091_v48 = vpop.permute.xlu1 %5125  ;;  %v7706_v62 = vpop.eup %7705  ;;  %v1306_v59 = vmul.f32 %v7704_v52, %v10373_v58  ;;  %v5205_v20 = vsel %vm570_vm1, %v9858_v38, %v10089_v42 }
 0xb73   :  { %5189 = vrot.lane.b32.xlu1 %v4980_v6, %s7745_s11  ;;  %v1307_v49 = vmul.f32 %v7706_v62, %v10374_v61  ;;  %v7708_v55 = vpop.eup %7707  ;;  %v10376_v6 = vld [vmem:[#allocation20_spill] sm:$0xff] }
 0xb74   :  { %v5201_v37 = vsel %vm570_vm1, %v1306_v59, %v5116_v1  ;;  %v1309_v36 = vmul.f32 %v7708_v55, %v10375_v29  ;;  %v7710_v32 = vpop.eup %7709 }
 0xb75   :  { %v5144_v51 = vpop.permute.xlu0 %5143  ;;  %v5202_v7 = vsel %vm570_vm1, %v1307_v49, %v5118_v31  ;;  %v1311_v1 = vmul.f32 %v7710_v32, %v10376_v6 }
 0xb76   :  { %v5146_v12 = vpop.permute.xlu1 %5145 }
 0xb77   :  { %v5206_v38 = vsel %vm570_vm1, %v1311_v1, %v10091_v48 }
 0xb79   :  { %v5148_v44 = vpop.permute.xlu0 %5147 }
 0xb7a   :  { %v5150_v30 = vpop.permute.xlu1 %5149  ;;  %v5209_v22 = vsel %vm5085_vm4, %v5201_v37, %v5148_v44 }
 0xb7b   :  { %v5210_v21 = vsel %vm5085_vm4, %v5202_v7, %v5150_v30 }
 0xb7d   :  { %v5152_v26 = vpop.permute.xlu0 %5151 }
 0xb7e   :  { %v10093_v34 = vpop.permute.xlu1 %5153 }
 0xb81   :  { %v10095_v63 = vpop.permute.xlu0 %5155 }
 0xb82   :  { %v10097_v19 = vpop.permute.xlu1 %5157  ;;  %v5213_v31 = vsel %vm5085_vm4, %v5205_v20, %v10095_v63 }
 0xb83   :  { %v5214_v42 = vsel %vm5085_vm4, %v5206_v38, %v10097_v19 }
 0xbc5   :  { %v5054_v25 = vpop.permute.xlu0 %5053 }
 0xbc6   :  { %v5095_v60 = vsel %vm5094_vm5, %v10008_v9, %v5054_v25 }
 0xbc7   :  { %5223 = vst.msk [vmem:[%s10227_s8] sm:$0xff] %vm56_vm0, %v5095_v60 }
 0xbc9   :  { %v5056_v15 = vpop.permute.xlu1 %5055 }
 0xbca   :  { %v5096_v50 = vsel %vm5094_vm5, %v10003_v57, %v5056_v15  ;;  %v5058_v28 = vpop.permute.xlu0 %5057 }
 0xbcb   :  { %5224 = vst.msk [vmem:[%s10227_s8 + $0x8] sm:$0xff] %vm56_vm0, %v5096_v50  ;;  %v5097_v9 = vsel %vm5094_vm5, %v10020_v13, %v5058_v28 }
 0xbcc   :  { %5225 = vst.msk [vmem:[%s10227_s8 + $0x10] sm:$0xff] %vm56_vm0, %v5097_v9 }
 0xbcd   :  { %v5060_v11 = vpop.permute.xlu1 %5059 }
 0xbce   :  { %v5098_v57 = vsel %vm5094_vm5, %v10015_v16, %v5060_v11  ;;  %v5062_v10 = vpop.permute.xlu0 %5061 }
 0xbcf   :  { %5226 = vst.msk [vmem:[%s10227_s8 + $0x18] sm:$0xff] %vm56_vm0, %v5098_v57  ;;  %v5099_v13 = vsel %vm5094_vm5, %v10030_v18, %v5062_v10 }
 0xbd0   :  { %5227 = vst.msk [vmem:[%s10227_s8 + $0x20] sm:$0xff] %vm56_vm0, %v5099_v13 }
 0xbd1   :  { %v5064_v23 = vpop.permute.xlu1 %5063 }
 0xbd2   :  { %v5100_v16 = vsel %vm5094_vm5, %v10026_v35, %v5064_v23  ;;  %v5066_v46 = vpop.permute.xlu0 %5065  ;;  %v5207_v35 = vsel %vm5085_vm4, %v10047_v39, %v5144_v51 }
 0xbd3   :  { %5228 = vst.msk [vmem:[%s10227_s8 + $0x28] sm:$0xff] %vm56_vm0, %v5100_v16  ;;  %v5101_v18 = vsel %vm5094_vm5, %v10037_v2, %v5066_v46 }
 0xbd4   :  { %5229 = vst.msk [vmem:[%s10227_s8 + $0x30] sm:$0xff] %vm56_vm0, %v5101_v18 }
 0xbd5   :  { %v5068_v0 = vpop.permute.xlu1 %5067 }
 0xbd6   :  { %v5102_v24 = vsel %vm5094_vm5, %v10033_v8, %v5068_v0  ;;  %v5176_v47 = vpop.permute.xlu0 %5175  ;;  %v5208_v8 = vsel %vm5085_vm4, %v10042_v3, %v5146_v12  ;;  %v5203_v3 = vsel %vm570_vm1, %v9855_v45, %v5120_v53  ;;  %v5204_v45 = vsel %vm570_vm1, %v1309_v36, %v10087_v41 }
 0xbd7   :  { %5230 = vst.msk [vmem:[%s10227_s8 + $0x38] sm:$0xff] %vm56_vm0, %v5102_v24  ;;  %v5215_v2 = vsel %vm5094_vm5, %v5207_v35, %v5176_v47  ;;  %v5211_v17 = vsel %vm5085_vm4, %v5203_v3, %v5152_v26  ;;  %v5212_v5 = vsel %vm5085_vm4, %v5204_v45, %v10093_v34 }
 0xbd8   :  { %5231 = vst.msk [vmem:[%s10227_s8 + $0x40] sm:$0xff] %vm56_vm0, %v5215_v2 }
 0xbd9   :  { %v5178_v39 = vpop.permute.xlu1 %5177 }
 0xbda   :  { %v5216_v33 = vsel %vm5094_vm5, %v5208_v8, %v5178_v39  ;;  %v5180_v27 = vpop.permute.xlu0 %5179 }
 0xbdb   :  { %5232 = vst.msk [vmem:[%s10227_s8 + $0x48] sm:$0xff] %vm56_vm0, %v5216_v33  ;;  %v5217_v4 = vsel %vm5094_vm5, %v5209_v22, %v5180_v27 }
 0xbdc   :  { %5233 = vst.msk [vmem:[%s10227_s8 + $0x50] sm:$0xff] %vm56_vm0, %v5217_v4 }
 0xbdd   :  { %v5182_v56 = vpop.permute.xlu1 %5181 }
 0xbde   :  { %v5218_v14 = vsel %vm5094_vm5, %v5210_v21, %v5182_v56  ;;  %v5184_v43 = vpop.permute.xlu0 %5183 }
 0xbdf   :  { %5234 = vst.msk [vmem:[%s10227_s8 + $0x58] sm:$0xff] %vm56_vm0, %v5218_v14  ;;  %v5219_v40 = vsel %vm5094_vm5, %v5211_v17, %v5184_v43 }
 0xbe0   :  { %5235 = vst.msk [vmem:[%s10227_s8 + $0x60] sm:$0xff] %vm56_vm0, %v5219_v40 }
 0xbe1   :  { %v5186_v54 = vpop.permute.xlu1 %5185 }
 0xbe2   :  { %v5220_v53 = vsel %vm5094_vm5, %v5212_v5, %v5186_v54  ;;  %v5188_v41 = vpop.permute.xlu0 %5187 }
 0xbe3   :  { %5236 = vst.msk [vmem:[%s10227_s8 + $0x68] sm:$0xff] %vm56_vm0, %v5220_v53  ;;  %v5221_v51 = vsel %vm5094_vm5, %v5213_v31, %v5188_v41 }
 0xbe4   :  { %5237 = vst.msk [vmem:[%s10227_s8 + $0x70] sm:$0xff] %vm56_vm0, %v5221_v51 }
 0xbe5   :  { %v5190_v12 = vpop.permute.xlu1 %5189 }
 0xbe6   :  { %v5222_v44 = vsel %vm5094_vm5, %v5214_v42, %v5190_v12 }
 0xbe7   :  { %5238 = vst.msk [vmem:[%s10227_s8 + $0x78] sm:$0xff] %vm56_vm0, %v5222_v44 }

</bundles_post_ra>
